<compile_context>
chip_gen: v7x
topology: tpu7x:2x2x1
jax: 0.10.0
libtpu: 0.0.40
codegen_flags: <defaults>
</compile_context>

<pallas_src>
import jax
import jax.numpy as jnp
import numpy as np
from jax import lax
from jax.experimental import pallas as pl
from jax.experimental.pallas import tpu as pltpu

LANE = 128


def _round_up(x, m):
    return (x + m - 1) // m * m


def bottleneck_kernel(x_ref, w1_ref, b1_ref, w2_ref, b2_ref, w3_ref, b3_ref,
                      o_ref, pad_ref, col_ref):
    H = x_ref.shape[1]
    W = x_ref.shape[2]
    Cin = x_ref.shape[3]            # padded input channels (== padded Cout)
    Wp = w1_ref.shape[1]            # padded bottleneck width
    Cout = w3_ref.shape[1]          # padded output channels

    # Zero only the halo of the padded 3x3-conv scratch; the interior is fully
    # overwritten every grid step.  Done every step so correctness holds even
    # when the batch grid axis is split across TensorCores ("parallel").
    zrow = jnp.zeros((1, W + 2, Wp), pad_ref.dtype)
    pad_ref[0:1, :, :] = zrow
    pad_ref[H + 1:H + 2, :, :] = zrow
    zcol = jnp.zeros((H + 2, 1, Wp), pad_ref.dtype)
    pad_ref[:, 0:1, :] = zcol
    pad_ref[:, W + 1:W + 2, :] = zcol

    x = x_ref[0]                                   # (H, W, Cin) bf16
    xm = x.reshape(H * W, Cin)

    # ---- conv1x1 #1 (BN1 scale folded into w1) + bias + ReLU ----------------
    y1 = jnp.dot(xm, w1_ref[...], preferred_element_type=jnp.float32)
    y1 = jnp.maximum(y1 + b1_ref[...], 0.0)        # (H*W, Wp) f32

    # ---- conv3x3 (stride=1, padding=1) via kw-im2col + 3 MXU matmuls --------
    pad_ref[1:H + 1, 1:W + 1, :] = y1.reshape(H, W, Wp).astype(pad_ref.dtype)
    for kw in range(3):
        col_ref[:, :, kw * Wp:(kw + 1) * Wp] = pad_ref[:, kw:kw + W, :]
    acc = jnp.zeros((H * W, Wp), jnp.float32)
    for kh in range(3):
        lhs = col_ref[kh:kh + H].reshape(H * W, 3 * Wp)
        acc = acc + jnp.dot(lhs, w2_ref[kh], preferred_element_type=jnp.float32)
    y2 = jnp.maximum(acc + b2_ref[...], 0.0)       # (H*W, Wp) f32

    # ---- conv1x1 #3 (BN3 folded) + bias, identity residual, final ReLU ------
    y3 = jnp.dot(y2.astype(jnp.bfloat16), w3_ref[...],
                 preferred_element_type=jnp.float32)
    y3 = y3 + b3_ref[...]
    out = jnp.maximum(y3 + xm.astype(jnp.float32), 0.0)
    o_ref[0] = out.reshape(H, W, Cout).astype(o_ref.dtype)


def bottleneck_pallas(x_nhwc, params, *, out_dtype=jnp.float32):
    """x_nhwc: (N,H,W,Cp) bf16, channel-padded.  params: folded/padded weights."""
    N, H, W, Cin = x_nhwc.shape
    w1, b1, w2, b2, w3, b3 = params
    Wp = w1.shape[1]
    Cout = w3.shape[1]

    def full(shape):
        # Constant block index -> the weight tile stays resident in VMEM
        # across grid steps (no re-DMA).
        return pl.BlockSpec(shape, lambda n, _s=shape: (0,) * len(_s))

    return pl.pallas_call(
        bottleneck_kernel,
        out_shape=jax.ShapeDtypeStruct((N, H, W, Cout), out_dtype),
        grid_spec=pltpu.PrefetchScalarGridSpec(
            num_scalar_prefetch=0,
            grid=(N,),
            in_specs=[
                pl.BlockSpec((1, H, W, Cin), lambda n: (n, 0, 0, 0)),
                full((Cin, Wp)), full((1, Wp)),
                full((3, 3 * Wp, Wp)), full((1, Wp)),
                full((Wp, Cout)), full((1, Cout)),
            ],
            out_specs=pl.BlockSpec((1, H, W, Cout), lambda n: (n, 0, 0, 0)),
            scratch_shapes=[
                pltpu.VMEM((H + 2, W + 2, Wp), jnp.bfloat16),   # zero-padded y1
                pltpu.VMEM((H + 2, W, 3 * Wp), jnp.bfloat16),   # kw-im2col buffer
            ],
        ),
        compiler_params=pltpu.CompilerParams(
            dimension_semantics=("parallel",),     # batch axis -> 2 TCs on v7x
            vmem_limit_bytes=32 * 1024 * 1024),
    )(x_nhwc, w1, b1, w2, b2, w3, b3)


def prepare_inputs(x_nchw, w1_oihw, w2_oihw, w3_oihw, bn1, bn2, bn3, eps=1e-5):
    """Fold BN scales into conv weights, pad channels to multiples of 128,
    cast the matmul path to bf16, transpose x to NHWC."""
    N, Cin, H, W = x_nchw.shape
    width = w1_oihw.shape[0]
    Cout = w3_oihw.shape[0]
    assert Cin == Cout, "identity residual requires in_chn == out_chn*expansion"

    Cp = _round_up(max(Cin, Cout), LANE)
    Wp = _round_up(width, LANE)

    def fold(gamma, beta, mean, var):
        scale = gamma / jnp.sqrt(var + eps)
        bias = beta - mean * scale
        return scale, bias

    s1, bb1 = fold(*bn1)
    s2, bb2 = fold(*bn2)
    s3, bb3 = fold(*bn3)

    # conv1x1 #1: OIHW (width,Cin,1,1) -> (Cin,width), scale folded per out-col
    w1 = w1_oihw[:, :, 0, 0].T * s1[None, :]
    w1p = jnp.zeros((Cp, Wp), jnp.float32).at[:Cin, :width].set(w1)
    b1p = jnp.zeros((1, Wp), jnp.float32).at[0, :width].set(bb1)

    # conv3x3: OIHW (width,width,3,3) -> (kh,kw,cin,cout), scale folded, kw->K
    w2 = jnp.transpose(w2_oihw, (2, 3, 1, 0)) * s2[None, None, None, :]
    w2p = jnp.zeros((3, 3, Wp, Wp), jnp.float32).at[:, :, :width, :width].set(w2)
    w2p = w2p.reshape(3, 3 * Wp, Wp)
    b2p = jnp.zeros((1, Wp), jnp.float32).at[0, :width].set(bb2)

    # conv1x1 #3: OIHW (Cout,width,1,1) -> (width,Cout), scale folded
    w3 = w3_oihw[:, :, 0, 0].T * s3[None, :]
    w3p = jnp.zeros((Wp, Cp), jnp.float32).at[:width, :Cout].set(w3)
    b3p = jnp.zeros((1, Cp), jnp.float32).at[0, :Cout].set(bb3)

    x_nhwc = jnp.transpose(x_nchw, (0, 2, 3, 1))
    x_p = jnp.zeros((N, H, W, Cp), jnp.bfloat16).at[..., :Cin].set(
        x_nhwc.astype(jnp.bfloat16))

    params = (w1p.astype(jnp.bfloat16), b1p,
              w2p.astype(jnp.bfloat16), b2p,
              w3p.astype(jnp.bfloat16), b3p)
    return x_p, params, Cout


if __name__ == "__main__":
    key = jax.random.PRNGKey(0)
    N, H, W = 2, 16, 16
    out_chn = 4
    in_chn = out_chn * 4          # expansion=4; identity residual: Cin == Cout*4
    width = out_chn               # base_width=64, groups=1 -> width = out_chn
    Cout = out_chn * 4
    eps = 1e-5

    ks = jax.random.split(key, 8)
    x_nchw = jax.random.normal(ks[0], (N, in_chn, H, W), jnp.float32)

    # conv weights in PyTorch OIHW layout
    w1_t = jax.random.normal(ks[1], (width, in_chn, 1, 1), jnp.float32) * 0.1
    w2_t = jax.random.normal(ks[2], (width, width, 3, 3), jnp.float32) * 0.1
    w3_t = jax.random.normal(ks[3], (Cout, width, 1, 1), jnp.float32) * 0.1

    def bn_params(k, C):
        k1, k2, k3, k4 = jax.random.split(k, 4)
        gamma = jax.random.uniform(k1, (C,), jnp.float32, 0.5, 1.5)
        beta = jax.random.normal(k2, (C,), jnp.float32) * 0.1
        mean = jax.random.normal(k3, (C,), jnp.float32) * 0.1
        var = jax.random.uniform(k4, (C,), jnp.float32, 0.5, 1.5)
        return (gamma, beta, mean, var)

    bn1 = bn_params(ks[4], width)
    bn2 = bn_params(ks[5], width)
    bn3 = bn_params(ks[6], Cout)

    x_p, params, Cout_real = prepare_inputs(x_nchw, w1_t, w2_t, w3_t,
                                            bn1, bn2, bn3, eps)
    out_p = bottleneck_pallas(x_p, params)
    out = jnp.transpose(out_p[..., :Cout_real], (0, 3, 1, 2))   # back to NCHW
    jax.block_until_ready(out)

    # ---- pure-JAX f32 reference (NCHW, matching PyTorch semantics) ----
    def ref(x):
        def bn(y, p):
            g, be, m, v = p
            return ((y - m[None, :, None, None])
                    / jnp.sqrt(v + eps)[None, :, None, None]
                    * g[None, :, None, None] + be[None, :, None, None])
        y = lax.conv_general_dilated(x, w1_t, (1, 1), "VALID",
                                     dimension_numbers=("NCHW", "OIHW", "NCHW"))
        y = jax.nn.relu(bn(y, bn1))
        y = lax.conv_general_dilated(y, w2_t, (1, 1), ((1, 1), (1, 1)),
                                     dimension_numbers=("NCHW", "OIHW", "NCHW"))
        y = jax.nn.relu(bn(y, bn2))
        y = lax.conv_general_dilated(y, w3_t, (1, 1), "VALID",
                                     dimension_numbers=("NCHW", "OIHW", "NCHW"))
        y = bn(y, bn3)
        return jax.nn.relu(y + x)

    expected = ref(x_nchw)
    # bf16 matmul path (f32 accumulation) -> slightly looser tolerance
    np.testing.assert_allclose(np.asarray(out), np.asarray(expected),
                               rtol=3e-2, atol=3e-2)
    print("KERNEL_OK")
</pallas_src>

<mosaic_0001>
module attributes {stable_mosaic.version = 11 : i64} {
  func.func @bottleneck_kernel(%arg0: i32, %arg1: memref<1x16x16x128xbf16, #tpu.memory_space<vmem>>, %arg2: memref<128x128xbf16, #tpu.memory_space<vmem>>, %arg3: memref<1x128xf32, #tpu.memory_space<vmem>>, %arg4: memref<3x384x128xbf16, #tpu.memory_space<vmem>>, %arg5: memref<1x128xf32, #tpu.memory_space<vmem>>, %arg6: memref<128x128xbf16, #tpu.memory_space<vmem>>, %arg7: memref<1x128xf32, #tpu.memory_space<vmem>>, %arg8: memref<1x16x16x128xf32, #tpu.memory_space<vmem>>, %arg9: memref<18x18x128xbf16, #tpu.memory_space<vmem>>, %arg10: memref<18x16x384xbf16, #tpu.memory_space<vmem>>) attributes {dimension_semantics = [#tpu.dimension_semantics<parallel>], iteration_bounds = array<i64: 2>, scalar_prefetch = 0 : i64, scratch_operands = 2 : i64, tpu.core_type = #tpu.core_type<tc>, window_params = [{transform_indices = @transform_0, window_bounds = array<i64: 1, 16, 16, 128>}, {pipeline_mode = #tpu.pipeline_mode<synchronous>, transform_indices = @transform_1, window_bounds = array<i64: 128, 128>}, {pipeline_mode = #tpu.pipeline_mode<synchronous>, transform_indices = @transform_2, window_bounds = array<i64: 1, 128>}, {pipeline_mode = #tpu.pipeline_mode<synchronous>, transform_indices = @transform_3, window_bounds = array<i64: 3, 384, 128>}, {pipeline_mode = #tpu.pipeline_mode<synchronous>, transform_indices = @transform_4, window_bounds = array<i64: 1, 128>}, {pipeline_mode = #tpu.pipeline_mode<synchronous>, transform_indices = @transform_5, window_bounds = array<i64: 128, 128>}, {pipeline_mode = #tpu.pipeline_mode<synchronous>, transform_indices = @transform_6, window_bounds = array<i64: 1, 128>}, {transform_indices = @transform_7, window_bounds = array<i64: 1, 16, 16, 128>}]} {
    %cst = arith.constant 0.000000e+00 : bf16
    %0 = vector.broadcast %cst : bf16 to vector<1x18x128xbf16>
    %c0 = arith.constant 0 : index
    %c0_0 = arith.constant 0 : index
    %c0_1 = arith.constant 0 : index
    %1 = vector.load %arg9[%c0, %c0_0, %c0_1] : memref<18x18x128xbf16, #tpu.memory_space<vmem>>, vector<1x18x128xbf16>
    tpu.vector_store %arg9[%c0, %c0_0, %c0_1], %0 {strides = array<i32>} : memref<18x18x128xbf16, #tpu.memory_space<vmem>>, vector<1x18x128xbf16>,
    %c17 = arith.constant 17 : index
    %c0_2 = arith.constant 0 : index
    %c0_3 = arith.constant 0 : index
    %2 = vector.load %arg9[%c17, %c0_2, %c0_3] : memref<18x18x128xbf16, #tpu.memory_space<vmem>>, vector<1x18x128xbf16>
    tpu.vector_store %arg9[%c17, %c0_2, %c0_3], %0 {strides = array<i32>} : memref<18x18x128xbf16, #tpu.memory_space<vmem>>, vector<1x18x128xbf16>,
    %cst_4 = arith.constant 0.000000e+00 : bf16
    %3 = vector.broadcast %cst_4 : bf16 to vector<18x1x128xbf16>
    %c0_5 = arith.constant 0 : index
    %c0_6 = arith.constant 0 : index
    %c0_7 = arith.constant 0 : index
    %4 = vector.load %arg9[%c0_5, %c0_6, %c0_7] : memref<18x18x128xbf16, #tpu.memory_space<vmem>>, vector<18x1x128xbf16>
    tpu.vector_store %arg9[%c0_5, %c0_6, %c0_7], %3 {strides = array<i32>} : memref<18x18x128xbf16, #tpu.memory_space<vmem>>, vector<18x1x128xbf16>,
    %c0_8 = arith.constant 0 : index
    %c17_9 = arith.constant 17 : index
    %c0_10 = arith.constant 0 : index
    %5 = vector.load %arg9[%c0_8, %c17_9, %c0_10] : memref<18x18x128xbf16, #tpu.memory_space<vmem>>, vector<18x1x128xbf16>
    tpu.vector_store %arg9[%c0_8, %c17_9, %c0_10], %3 {strides = array<i32>} : memref<18x18x128xbf16, #tpu.memory_space<vmem>>, vector<18x1x128xbf16>,
    %c0_11 = arith.constant 0 : index
    %c0_12 = arith.constant 0 : index
    %c0_13 = arith.constant 0 : index
    %c0_14 = arith.constant 0 : index
    %6 = vector.load %arg1[%c0_11, %c0_12, %c0_13, %c0_14] : memref<1x16x16x128xbf16, #tpu.memory_space<vmem>>, vector<1x16x16x128xbf16>
    %7 = vector.shape_cast %6 : vector<1x16x16x128xbf16> to vector<16x16x128xbf16>
    %8 = vector.shape_cast %7 : vector<16x16x128xbf16> to vector<256x128xbf16>
    %c0_15 = arith.constant 0 : index
    %c0_16 = arith.constant 0 : index
    %9 = vector.load %arg2[%c0_15, %c0_16] : memref<128x128xbf16, #tpu.memory_space<vmem>>, vector<128x128xbf16>
    %cst_17 = arith.constant dense<0.000000e+00> : vector<256x128xf32>
    %10 = tpu.matmul %8, %9, %cst_17 {dimension_numbers = #tpu.dot_dimension_numbers<[1], [0], [0], [1], [0, 0, 1, 1], [], []>} : vector<256x128xbf16>, vector<128x128xbf16>, vector<256x128xf32> -> vector<256x128xf32>
    %c0_18 = arith.constant 0 : index
    %c0_19 = arith.constant 0 : index
    %11 = vector.load %arg3[%c0_18, %c0_19] : memref<1x128xf32, #tpu.memory_space<vmem>>, vector<1x128xf32>
    %12 = vector.broadcast %11 : vector<1x128xf32> to vector<256x128xf32>
    %13 = arith.addf %10, %12 : vector<256x128xf32>
    %cst_20 = arith.constant 0.000000e+00 : f32
    %14 = vector.broadcast %cst_20 : f32 to vector<256x128xf32>
    %15 = arith.maximumf %13, %14 : vector<256x128xf32>
    %16 = vector.shape_cast %15 : vector<256x128xf32> to vector<16x16x128xf32>
    %17 = arith.truncf %16 : vector<16x16x128xf32> to vector<16x16x128xbf16>
    %c1 = arith.constant 1 : index
    %c1_21 = arith.constant 1 : index
    %c0_22 = arith.constant 0 : index
    %18 = vector.load %arg9[%c1, %c1_21, %c0_22] : memref<18x18x128xbf16, #tpu.memory_space<vmem>>, vector<16x16x128xbf16>
    tpu.vector_store %arg9[%c1, %c1_21, %c0_22], %17 {strides = array<i32>} : memref<18x18x128xbf16, #tpu.memory_space<vmem>>, vector<16x16x128xbf16>,
    %c0_23 = arith.constant 0 : index
    %c0_24 = arith.constant 0 : index
    %c0_25 = arith.constant 0 : index
    %19 = vector.load %arg9[%c0_23, %c0_24, %c0_25] : memref<18x18x128xbf16, #tpu.memory_space<vmem>>, vector<18x16x128xbf16>
    %c0_26 = arith.constant 0 : index
    %c0_27 = arith.constant 0 : index
    %c0_28 = arith.constant 0 : index
    %20 = vector.load %arg10[%c0_26, %c0_27, %c0_28] : memref<18x16x384xbf16, #tpu.memory_space<vmem>>, vector<18x16x128xbf16>
    tpu.vector_store %arg10[%c0_26, %c0_27, %c0_28], %19 {strides = array<i32>} : memref<18x16x384xbf16, #tpu.memory_space<vmem>>, vector<18x16x128xbf16>,
    %c0_29 = arith.constant 0 : index
    %c1_30 = arith.constant 1 : index
    %c0_31 = arith.constant 0 : index
    %21 = vector.load %arg9[%c0_29, %c1_30, %c0_31] : memref<18x18x128xbf16, #tpu.memory_space<vmem>>, vector<18x16x128xbf16>
    %c0_32 = arith.constant 0 : index
    %c0_33 = arith.constant 0 : index
    %c128 = arith.constant 128 : index
    %22 = vector.load %arg10[%c0_32, %c0_33, %c128] : memref<18x16x384xbf16, #tpu.memory_space<vmem>>, vector<18x16x128xbf16>
    tpu.vector_store %arg10[%c0_32, %c0_33, %c128], %21 {strides = array<i32>} : memref<18x16x384xbf16, #tpu.memory_space<vmem>>, vector<18x16x128xbf16>,
    %c0_34 = arith.constant 0 : index
    %c2 = arith.constant 2 : index
    %c0_35 = arith.constant 0 : index
    %23 = vector.load %arg9[%c0_34, %c2, %c0_35] : memref<18x18x128xbf16, #tpu.memory_space<vmem>>, vector<18x16x128xbf16>
    %c0_36 = arith.constant 0 : index
    %c0_37 = arith.constant 0 : index
    %c256 = arith.constant 256 : index
    %24 = vector.load %arg10[%c0_36, %c0_37, %c256] : memref<18x16x384xbf16, #tpu.memory_space<vmem>>, vector<18x16x128xbf16>
    tpu.vector_store %arg10[%c0_36, %c0_37, %c256], %23 {strides = array<i32>} : memref<18x16x384xbf16, #tpu.memory_space<vmem>>, vector<18x16x128xbf16>,
    %cst_38 = arith.constant 0.000000e+00 : f32
    %25 = vector.broadcast %cst_38 : f32 to vector<256x128xf32>
    %c0_39 = arith.constant 0 : index
    %c0_40 = arith.constant 0 : index
    %c0_41 = arith.constant 0 : index
    %26 = vector.load %arg10[%c0_39, %c0_40, %c0_41] : memref<18x16x384xbf16, #tpu.memory_space<vmem>>, vector<16x16x384xbf16>
    %27 = vector.shape_cast %26 : vector<16x16x384xbf16> to vector<256x384xbf16>
    %c0_42 = arith.constant 0 : index
    %c0_43 = arith.constant 0 : index
    %c0_44 = arith.constant 0 : index
    %28 = vector.load %arg4[%c0_42, %c0_43, %c0_44] : memref<3x384x128xbf16, #tpu.memory_space<vmem>>, vector<1x384x128xbf16>
    %29 = vector.shape_cast %28 : vector<1x384x128xbf16> to vector<384x128xbf16>
    %cst_45 = arith.constant dense<0.000000e+00> : vector<256x128xf32>
    %30 = tpu.matmul %27, %29, %cst_45 {dimension_numbers = #tpu.dot_dimension_numbers<[1], [0], [0], [1], [0, 0, 1, 1], [], []>} : vector<256x384xbf16>, vector<384x128xbf16>, vector<256x128xf32> -> vector<256x128xf32>
    %31 = arith.addf %25, %30 : vector<256x128xf32>
    %c1_46 = arith.constant 1 : index
    %c0_47 = arith.constant 0 : index
    %c0_48 = arith.constant 0 : index
    %32 = vector.load %arg10[%c1_46, %c0_47, %c0_48] : memref<18x16x384xbf16, #tpu.memory_space<vmem>>, vector<16x16x384xbf16>
    %33 = vector.shape_cast %32 : vector<16x16x384xbf16> to vector<256x384xbf16>
    %c1_49 = arith.constant 1 : index
    %c0_50 = arith.constant 0 : index
    %c0_51 = arith.constant 0 : index
    %34 = vector.load %arg4[%c1_49, %c0_50, %c0_51] : memref<3x384x128xbf16, #tpu.memory_space<vmem>>, vector<1x384x128xbf16>
    %35 = vector.shape_cast %34 : vector<1x384x128xbf16> to vector<384x128xbf16>
    %cst_52 = arith.constant dense<0.000000e+00> : vector<256x128xf32>
    %36 = tpu.matmul %33, %35, %cst_52 {dimension_numbers = #tpu.dot_dimension_numbers<[1], [0], [0], [1], [0, 0, 1, 1], [], []>} : vector<256x384xbf16>, vector<384x128xbf16>, vector<256x128xf32> -> vector<256x128xf32>
    %37 = arith.addf %31, %36 : vector<256x128xf32>
    %c2_53 = arith.constant 2 : index
    %c0_54 = arith.constant 0 : index
    %c0_55 = arith.constant 0 : index
    %38 = vector.load %arg10[%c2_53, %c0_54, %c0_55] : memref<18x16x384xbf16, #tpu.memory_space<vmem>>, vector<16x16x384xbf16>
    %39 = vector.shape_cast %38 : vector<16x16x384xbf16> to vector<256x384xbf16>
    %c2_56 = arith.constant 2 : index
    %c0_57 = arith.constant 0 : index
    %c0_58 = arith.constant 0 : index
    %40 = vector.load %arg4[%c2_56, %c0_57, %c0_58] : memref<3x384x128xbf16, #tpu.memory_space<vmem>>, vector<1x384x128xbf16>
    %41 = vector.shape_cast %40 : vector<1x384x128xbf16> to vector<384x128xbf16>
    %cst_59 = arith.constant dense<0.000000e+00> : vector<256x128xf32>
    %42 = tpu.matmul %39, %41, %cst_59 {dimension_numbers = #tpu.dot_dimension_numbers<[1], [0], [0], [1], [0, 0, 1, 1], [], []>} : vector<256x384xbf16>, vector<384x128xbf16>, vector<256x128xf32> -> vector<256x128xf32>
    %43 = arith.addf %37, %42 : vector<256x128xf32>
    %c0_60 = arith.constant 0 : index
    %c0_61 = arith.constant 0 : index
    %44 = vector.load %arg5[%c0_60, %c0_61] : memref<1x128xf32, #tpu.memory_space<vmem>>, vector<1x128xf32>
    %45 = vector.broadcast %44 : vector<1x128xf32> to vector<256x128xf32>
    %46 = arith.addf %43, %45 : vector<256x128xf32>
    %cst_62 = arith.constant 0.000000e+00 : f32
    %47 = vector.broadcast %cst_62 : f32 to vector<256x128xf32>
    %48 = arith.maximumf %46, %47 : vector<256x128xf32>
    %49 = arith.truncf %48 : vector<256x128xf32> to vector<256x128xbf16>
    %c0_63 = arith.constant 0 : index
    %c0_64 = arith.constant 0 : index
    %50 = vector.load %arg6[%c0_63, %c0_64] : memref<128x128xbf16, #tpu.memory_space<vmem>>, vector<128x128xbf16>
    %cst_65 = arith.constant dense<0.000000e+00> : vector<256x128xf32>
    %51 = tpu.matmul %49, %50, %cst_65 {dimension_numbers = #tpu.dot_dimension_numbers<[1], [0], [0], [1], [0, 0, 1, 1], [], []>} : vector<256x128xbf16>, vector<128x128xbf16>, vector<256x128xf32> -> vector<256x128xf32>
    %c0_66 = arith.constant 0 : index
    %c0_67 = arith.constant 0 : index
    %52 = vector.load %arg7[%c0_66, %c0_67] : memref<1x128xf32, #tpu.memory_space<vmem>>, vector<1x128xf32>
    %53 = vector.broadcast %52 : vector<1x128xf32> to vector<256x128xf32>
    %54 = arith.addf %51, %53 : vector<256x128xf32>
    %55 = arith.extf %8 : vector<256x128xbf16> to vector<256x128xf32>
    %56 = arith.addf %54, %55 : vector<256x128xf32>
    %cst_68 = arith.constant 0.000000e+00 : f32
    %57 = vector.broadcast %cst_68 : f32 to vector<256x128xf32>
    %58 = arith.maximumf %56, %57 : vector<256x128xf32>
    %59 = vector.shape_cast %58 : vector<256x128xf32> to vector<16x16x128xf32>
    %c0_69 = arith.constant 0 : index
    %c0_70 = arith.constant 0 : index
    %c0_71 = arith.constant 0 : index
    %c0_72 = arith.constant 0 : index
    %60 = vector.load %arg8[%c0_69, %c0_70, %c0_71, %c0_72] : memref<1x16x16x128xf32, #tpu.memory_space<vmem>>, vector<1x16x16x128xf32>
    %61 = vector.shape_cast %60 : vector<1x16x16x128xf32> to vector<16x16x128xf32>
    %62 = vector.shape_cast %59 : vector<16x16x128xf32> to vector<1x16x16x128xf32>
    tpu.vector_store %arg8[%c0_69, %c0_70, %c0_71, %c0_72], %62 {strides = array<i32>} : memref<1x16x16x128xf32, #tpu.memory_space<vmem>>, vector<1x16x16x128xf32>,
    return
  }
  func.func @transform_0(%arg0: i32) -> (i32, i32, i32, i32) {
    %c0_i32 = arith.constant 0 : i32
    %c0_i32_0 = arith.constant 0 : i32
    %c0_i32_1 = arith.constant 0 : i32
    %c0_i32_2 = arith.constant 0 : i32
    return %arg0, %c0_i32, %c0_i32_0, %c0_i32_1 : i32, i32, i32, i32
  }
  func.func @transform_1(%arg0: i32) -> (i32, i32) {
    %c0_i32 = arith.constant 0 : i32
    %c0_i32_0 = arith.constant 0 : i32
    %c0_i32_1 = arith.constant 0 : i32
    return %c0_i32, %c0_i32_0 : i32, i32
  }
  func.func @transform_2(%arg0: i32) -> (i32, i32) {
    %c0_i32 = arith.constant 0 : i32
    %c0_i32_0 = arith.constant 0 : i32
    %c0_i32_1 = arith.constant 0 : i32
    return %c0_i32, %c0_i32_0 : i32, i32
  }
  func.func @transform_3(%arg0: i32) -> (i32, i32, i32) {
    %c0_i32 = arith.constant 0 : i32
    %c0_i32_0 = arith.constant 0 : i32
    %c0_i32_1 = arith.constant 0 : i32
    %c0_i32_2 = arith.constant 0 : i32
    return %c0_i32, %c0_i32_0, %c0_i32_1 : i32, i32, i32
  }
  func.func @transform_4(%arg0: i32) -> (i32, i32) {
    %c0_i32 = arith.constant 0 : i32
    %c0_i32_0 = arith.constant 0 : i32
    %c0_i32_1 = arith.constant 0 : i32
    return %c0_i32, %c0_i32_0 : i32, i32
  }
  func.func @transform_5(%arg0: i32) -> (i32, i32) {
    %c0_i32 = arith.constant 0 : i32
    %c0_i32_0 = arith.constant 0 : i32
    %c0_i32_1 = arith.constant 0 : i32
    return %c0_i32, %c0_i32_0 : i32, i32
  }
  func.func @transform_6(%arg0: i32) -> (i32, i32) {
    %c0_i32 = arith.constant 0 : i32
    %c0_i32_0 = arith.constant 0 : i32
    %c0_i32_1 = arith.constant 0 : i32
    return %c0_i32, %c0_i32_0 : i32, i32
  }
  func.func @transform_7(%arg0: i32) -> (i32, i32, i32, i32) {
    %c0_i32 = arith.constant 0 : i32
    %c0_i32_0 = arith.constant 0 : i32
    %c0_i32_1 = arith.constant 0 : i32
    %c0_i32_2 = arith.constant 0 : i32
    return %arg0, %c0_i32, %c0_i32_0, %c0_i32_1 : i32, i32, i32, i32
  }
}

</mosaic_0001>

<bundles_post_ra>
// kernel: tpu_custom_call.1
= control target key start
LH: loop header
LB: loop body
LE: loop exit
PB: predicated region body
PF: predicated region fallthrough
CT: control target
= control target key end

     0   :  { %12 = vsyncpa [#allocation5], 0  ;;  %s7615_s0 = inlined_call_operand.hbm [shape: bf16[2,16,16,128], index: 0, kind: input, shape index: {}]   ;;  %s7616_s1 = inlined_call_operand.hbm [shape: bf16[128,128], index: 1, kind: input, shape index: {}]   ;;  %s7617_s2 = inlined_call_operand.vmem [shape: f32[1,128], index: 2, kind: input, shape index: {}]   ;;  %s7618_s3 = inlined_call_operand.hbm [shape: bf16[3,384,128], index: 3, kind: input, shape index: {}]   ;;  %s7619_s4 = inlined_call_operand.vmem [shape: f32[1,128], index: 4, kind: input, shape index: {}]   ;;  %s7620_s5 = inlined_call_operand.hbm [shape: bf16[128,128], index: 5, kind: input, shape index: {}]   ;;  %s7621_s6 = inlined_call_operand.vmem [shape: f32[1,128], index: 6, kind: input, shape index: {}]   ;;  %s7622_s7 = inlined_call_operand.hbm [shape: f32[2,16,16,128], index: 7, kind: output, shape index: {}]  }
   0x1   :  { %14 = vsyncpa [#allocation5 + $0x1], 0 }
   0x2   :  { %15 = vsyncpa [#allocation8], 0 }
   0x3   :  { %16 = vsyncpa [#allocation11], 0 }
   0x4   :  { %17 = vsyncpa [#allocation6], 0 }
   0x5   :  { %19 = vsyncpa [#allocation6 + $0x1], 0  ;;  %s6279_s24 = smov 0   ;;  %s6281_s25 = smov 0  }
   0x6   :  { %s6283_s26 = smov 0   ;;  %s6285_s27 = smov 0  }
   0x7 LB: > { %s6300_s28 = sadd.s32 4294967295, %s6227_s27   ;;  %s4574_s29 = sadd.s32 4294967294, %s6227_s27   ;;  %s6227_s27 = sphi %s6285_s27, %s7656_s27   ;;  %s6223_s26 = sphi %s6283_s26, %s7655_s26   ;;  %s6219_s25 = sphi %s6281_s25, %s7654_s25   ;;  %s6215_s24 = sphi %s6279_s24, %s7653_s24  }
   0x8   : > { %p45_p0 = scmp.ne.s32.totalorder %s6219_s25, %s6215_s24  ;;  %p7623_p1 = scmp.eq.s32.totalorder %s6300_s28, 0 }
   0x9   : > { %p201_p3 = scmp.eq.s32.totalorder %s4574_s29, 1  ;;  %p4575_p5 = scmp.ge.s32.totalorder %s6227_s27, 1 }
   0xa   : > { %p6309_p4 = por %p7623_p1, %p45_p0  ;;  %p208_p7 = scmp.lt.s32.totalorder %s6227_s27, 3 }
   0xb   : > { %p6314_p6 = por %p201_p3, %p45_p0  ;;  %s6229_s10 = smov [#allocation7]  }
   0xc   : > { %s7627_s30 = scalar_select %p6309_p4, 1, 0 }
   0xd   : > { %s7628_s8 = scalar_select %p6314_p6, 1, 0 }
   0xe   : > { %p6319_p8 = pnand %p4575_p5, %p208_p7  ;;  %s220_s11 = sshll.u32 %s6229_s10, 4  ;;  %s6323_s11 = int_to_ptr.vmem [resolvable:$true] %s220_s11 }
   0xf   : > { %7629 = sst [smem:[#allocation17_spill]] %s7628_s8  ;;  %s6230_s13 = smov [#allocation9]  }
  0x10   : > { %s7630_s9 = scalar_select %p6319_p8, 1, 0 }
  0x11   : > { %p5745_p9 = pneg %p6319_p8  ;;  %s236_s14 = sshll.u32 %s6230_s13, 4  ;;  %s6334_s14 = int_to_ptr.vmem [resolvable:$true] %s236_s14 }
  0x12   : > { %s6231_s15 = smov [#allocation10]   ;;  %s6039_s19 = scalar_lea.hbm %s7616_s1, 1024 }
  0x13   : > { %p6330_p11 = pnand %p5745_p9, %p7623_p1  ;;  %s6336_s16 = sshll.u32 %s6231_s15, 4  ;;  %s253_s16 = int_to_ptr.vmem [resolvable:$true] %s6336_s16 }
  0x14   : > { %p6040_p12 = scmp.ne.s32.totalorder %s7616_s1, %s6039_s19  ;;  %p6046_p5 = scmp.lt.u32.totalorder %s6039_s19, %s7616_s1 }
  0x15   : > { %p6346_p13 = pneg %p6330_p11 }
  0x17   : > { %p6042_p0 = pnand %p6346_p13, %p6040_p12 }
  0x19   : > { %p6043_p3 = pneg %p6042_p0 }
  0x1b   : > { %p6048_p7 = pnand %p6046_p5, %p6043_p3 }
  0x1d   : > { %6051 = shalt.err (!%p6048_p7)
}
  0x1e   : > { %s6052_s10 = scalar_lea.vmem %s6323_s11, 1024  ;;  %p6060_p2 = scmp.lt.s32.totalorder %s6323_s11, %s6323_s11 }
  0x1f   : > { %p6053_p9 = scmp.ne.s32.totalorder %s6323_s11, %s6052_s10  ;;  %p6061_p6 = scmp.lt.s32.totalorder %s6052_s10, %s6052_s10 }
  0x21   : > { %p6055_p10 = pnand %p6053_p9, %p6346_p13  ;;  %p6062_p12 = por %p6061_p6, %p6060_p2 }
  0x23   : > { %p6056_p1 = pneg %p6055_p10 }
  0x25   : > { %p6063_p0 = pnand %p6062_p12, %p6056_p1 }
  0x27   : > { %6066 = shalt.err (!%p6063_p0)
}
  0x28   : > { %s6232_s13 = smov 64   ;;  %s6233_s15 = smov 4  }
  0x29   : > { %5748 = dma.hbm_to_vmem [thread:$0]  (!%p6330_p11), %s7616_s1, 1024, %s6323_s11, [#allocation8], %s6232_s13, %s6232_s13, %s6233_s15  }
  0x2a   : > { %s6067_s21 = scalar_lea.hbm %s7618_s3, 9216 }
  0x2b   : > { %p6068_p1 = scmp.ne.s32.totalorder %s7618_s3, %s6067_s21  ;;  %p6074_p10 = scmp.lt.u32.totalorder %s6067_s21, %s7618_s3 }
  0x2d   : > { %p6070_p2 = pnand %p6068_p1, %p6346_p13 }
  0x2f   : > { %p6071_p6 = pneg %p6070_p2 }
  0x31   : > { %p6076_p3 = pnand %p6074_p10, %p6071_p6 }
  0x33   : > { %6079 = shalt.err (!%p6076_p3)
}
  0x34   : > { %s6080_s11 = scalar_lea.vmem %s6334_s14, 9216  ;;  %p6088_p12 = scmp.lt.s32.totalorder %s6334_s14, %s6334_s14 }
  0x35   : > { %p6081_p5 = scmp.ne.s32.totalorder %s6334_s14, %s6080_s11  ;;  %p6089_p0 = scmp.lt.s32.totalorder %s6080_s11, %s6080_s11 }
  0x37   : > { %p6083_p7 = pnand %p6081_p5, %p6346_p13  ;;  %p6090_p1 = por %p6089_p0, %p6088_p12 }
  0x39   : > { %p6084_p9 = pneg %p6083_p7 }
  0x3b   : > { %p6091_p2 = pnand %p6090_p1, %p6084_p9 }
  0x3d   : > { %6094 = shalt.err (!%p6091_p2)
}
  0x3e   : > { %5751 = dma.hbm_to_vmem [thread:$0]  (!%p6330_p11), %s7618_s3, 9216, %s6334_s14, [#allocation8], %s6232_s13, %s6232_s13, %s6233_s15  }
  0x3f   : > { %s6095_s20 = scalar_lea.hbm %s7620_s5, 1024 }
  0x40   : > { %p6096_p6 = scmp.ne.s32.totalorder %s7620_s5, %s6095_s20  ;;  %p6102_p5 = scmp.lt.u32.totalorder %s6095_s20, %s7620_s5 }
  0x42   : > { %p6098_p10 = pnand %p6096_p6, %p6346_p13 }
  0x44   : > { %p6099_p3 = pneg %p6098_p10 }
  0x46   : > { %p6104_p7 = pnand %p6102_p5, %p6099_p3 }
  0x48   : > { %6107 = shalt.err (!%p6104_p7)
}
  0x49   : > { %s6108_s11 = scalar_lea.vmem %s253_s16, 1024  ;;  %p6116_p1 = scmp.lt.s32.totalorder %s253_s16, %s253_s16 }
  0x4a   : > { %p6109_p9 = scmp.ne.s32.totalorder %s253_s16, %s6108_s11  ;;  %p6117_p2 = scmp.lt.s32.totalorder %s6108_s11, %s6108_s11 }
  0x4c   : > { %p6111_p12 = pnand %p6109_p9, %p6346_p13  ;;  %p6118_p4 = por %p6117_p2, %p6116_p1 }
  0x4e   : > { %p6112_p0 = pneg %p6111_p12 }
  0x50   : > { %p6119_p8 = pnand %p6118_p4, %p6112_p0 }
  0x52   : > { %6122 = shalt.err (!%p6119_p8)
}
  0x53   : > { %5754 = dma.hbm_to_vmem [thread:$0]  (!%p6330_p11), %s7620_s5, 1024, %s253_s16, [#allocation11], %s6232_s13, %s6232_s13, %s6233_s15  }
  0x54   : > { %s6419_s22 = sadd.s32 1, %s6227_s27   ;;  %s32_s17 = sadd.s32 1, %s6223_s26 }
  0x55   : > { %s29_s12 = ssub.s32 %s6227_s27, %s6419_s22  ;;  %p39_p8 = scmp.ne.s32.totalorder %s6223_s26, %s6219_s25 }
  0x56   : > { %p30_p4 = scmp.eq.s32.totalorder %s29_s12, 0  ;;  %p40_p13 = scmp.eq.s32.totalorder %s6227_s27, 0 }
  0x57   : > { %p5766_p6 = scmp.lt.s32.totalorder %s6227_s27, 2  ;;  %p7633_p3 = scmp.eq.s32.totalorder %s6300_s28, 1 }
  0x58   : > { %s6429_s18 = scalar_select %p30_p4, %s6223_s26, %s32_s17  }
  0x59   : > { %p41_p10 = por %p40_p13, %p39_p8  ;;  %p6433_p5 = por %p7633_p3, %p39_p8 }
  0x5a   : > { %s269_s20 = sand.u32 1, %s6223_s26   ;;  %s4823_s21 = sshll.u32 %s6227_s27, 11 }
  0x5b   : > { %s4580_s16 = sshll.u32 %s269_s20, 7  ;;  %s6442_s10 = scalar_lea.hbm %s7615_s0, %s4823_s21 }
  0x5c   : > { %s273_s11 = scalar_lea.vmem [#allocation4], %s4580_s16  ;;  %p6444_p11 = pnand %p5766_p6, %p41_p10 }
  0x5d   : > { %s280_s14 = sshll.u32 %s273_s11, 4  ;;  %s6450_s12 = scalar_lea.sflag [#allocation5], %s269_s20  ;;  %s6448_s14 = int_to_ptr.vmem [resolvable:$true] %s280_s14 }
  0x5e   : > { %s6123_s17 = scalar_lea.hbm %s6442_s10, 2048  ;;  %p6125_p9 = pneg %p6444_p11 }
  0x5f   : > { %p6124_p7 = scmp.ne.s32.totalorder %s6442_s10, %s6123_s17  ;;  %s6128_s23 = scalar_lea.hbm %s7615_s0, 4096 }
  0x60   : > { %p6129_p1 = scmp.lt.u32.totalorder %s6442_s10, %s7615_s0  ;;  %p6130_p2 = scmp.lt.u32.totalorder %s6128_s23, %s6123_s17 }
  0x61   : > { %p6126_p12 = pnand %p6125_p9, %p6124_p7  ;;  %p6132_p8 = scmp.lt.u32.totalorder %s6123_s17, %s6442_s10 }
  0x62   : > { %p6131_p4 = por %p6130_p2, %p6129_p1 }
  0x63   : > { %p6127_p0 = pneg %p6126_p12 }
  0x64   : > { %p6133_p13 = por %p6132_p8, %p6131_p4 }
  0x66   : > { %p6134_p6 = pnand %p6133_p13, %p6127_p0 }
  0x68   : > { %6137 = shalt.err (!%p6134_p6)
}
  0x69   : > { %s6138_s20 = scalar_lea.vmem %s6448_s14, 2048  ;;  %s6234_s21 = smov [#allocation4]  }
  0x6a   : > { %p6139_p10 = scmp.ne.s32.totalorder %s6448_s14, %s6138_s20  ;;  %s6143_s16 = sshll.u32 %s6234_s21, 4  ;;  %s6144_s16 = int_to_ptr.vmem [resolvable:$false] %s6143_s16 }
  0x6b   : > { %s6145_s29 = scalar_lea.vmem %s6144_s16, 4096  ;;  %p6146_p12 = scmp.lt.s32.totalorder %s6448_s14, %s6144_s16 }
  0x6c   : > { %p6141_p3 = pnand %p6139_p10, %p6125_p9  ;;  %p6147_p1 = scmp.lt.s32.totalorder %s6145_s29, %s6138_s20 }
  0x6e   : > { %p6142_p7 = pneg %p6141_p3  ;;  %p6148_p2 = por %p6147_p1, %p6146_p12 }
  0x70   : > { %p6149_p4 = pnand %p6148_p2, %p6142_p7 }
  0x72   : > { %6152 = shalt.err (!%p6149_p4)
}
  0x73   : > { %5758 = dma.hbm_to_vmem [thread:$0]  (!%p6444_p11), %s6442_s10, 2048, %s6448_s14, %s6450_s12, %s6232_s13, %s6232_s13, %s6233_s15  }
  0x74   : > { %p7636_p9 = scmp.ne.s32.totalorder %s7630_s9, 0 }
  0x75   : > { %s6484_s17 = sand.u32 (!%p7636_p9), 1, %s6219_s25   ;;  %p7637_p0 = scmp.ne.s32.totalorder (!%p7636_p9), %s7627_s30, 0 }
  0x76   : > { %292 = sbr.rel (%p7636_p9) target bundleno = 1218 (0x4c2), region = 48  ;;  %s4584_s23 = sshll.u32 (!%p7636_p9), %s6484_s17, 7 }
  0x77   : > { %s295_s11 = scalar_lea.sflag (!%p7636_p9), [#allocation5], %s6484_s17  ;;  %s6488_s20 = scalar_lea.vmem (!%p7636_p9), [#allocation4], %s4584_s23 }
  0x7d   : > { %6198 = dma.done.wait (%p7637_p0), %s295_s11, 2048  }
  0x7e   : > { %6200 = vsyncadd (%p7637_p0), %s295_s11, 4294965248  ;;  %p7638_p11 = scmp.eq.s32.totalorder %s6300_s28, 0 }
  0x80   : > { %6202 = dma.done.wait (%p7638_p11), [#allocation8], 10240   ;;  %p7639_p8 = pmov %p7638_p11 }
  0x82   : > { %6204 = vsyncadd (%p7639_p8), [#allocation8], 4294957056  ;;  %p7640_p13 = pmov %p7639_p8 }
  0x83   : > { %p7641_p6 = pmov %p7639_p8 }
  0x84   : > { %6206 = dma.done.wait (%p7640_p13), [#allocation11], 1024  }
  0x85   : > { %6208 = vsyncadd (%p7641_p6), [#allocation11], 4294966272  ;;  %v5811_v0 = vld [vmem:[#allocation7] sm:$0xff]   ;;  %v5812_v1 = vld [vmem:[#allocation7 + $0x8] sm:$0xff]   ;;  %vm349_vm0 = vcmask 1040384   ;;  %vm1273_vm5 = vcmask 1043456  }
  0x86   : > { %5313 = vmatprep.subr.bf16.mxu0 %v5811_v0  ;;  %5553 = vmatprep.subr.bf16.mxu1 %v5811_v0  ;;  %v5813_v2 = vld [vmem:[#allocation7 + $0x10] sm:$0xff]   ;;  %v5814_v3 = vld [vmem:[#allocation7 + $0x18] sm:$0xff]   ;;  %v462_v4 = vld [vmem:[%s6488_s20] sm:$0xff]   ;;  %vm350_vm1 = vsmask.f32 256  ;;  %vm2198_vm9 = vcmask 1046528  }
  0x87   : > { %5314 = vmatpush3.bf16.msra.mxu0 %v5811_v0  ;;  %5561 = vmatpush3.bf16.msra.mxu1 %v5811_v0  ;;  %v478_v5 = vld [vmem:[%s6488_s20 + $0x40] sm:$0xff]   ;;  %vm6506_vm2 = vmand %vm349_vm0, %vm350_vm1  ;;  %v5816_v9 = vld [vmem:[#allocation7 + $0x28] sm:$0xff]   ;;  %vm406_vm3 = vsmask.f32 7938  ;;  %vm950_vm6 = vsmask.f32 4368 }
  0x88   : > { %5315 = vmatprep.subr.bf16.mxu0 %v5812_v1  ;;  %5554 = vmatprep.subr.bf16.mxu1 %v5812_v1  ;;  %v5815_v6 = vld [vmem:[#allocation7 + $0x20] sm:$0xff]   ;;  %v5817_v11 = vld [vmem:[#allocation7 + $0x30] sm:$0xff]   ;;  %v5818_v12 = vld [vmem:[#allocation7 + $0x38] sm:$0xff]   ;;  %vm1747_vm10 = vsmask.f32 7424  ;;  %s4588_s21 = sshll.u32 %s6484_s17, 8 }
  0x89   : > { %5329 = vmatprep.mubr.bf16.mxu0 %v462_v4  ;;  %5345 = vmatprep.mubr.bf16.mxu1 %v478_v5  ;;  %v358_v8 = vld [vmem:[#allocation2 + $0x18] sm:$0x1]  ;;  %v464_v13 = vld [vmem:[%s6488_s20 + $0x8] sm:$0xff]   ;;  %v466_v14 = vld [vmem:[%s6488_s20 + $0x10] sm:$0xff]   ;;  %s7488_s16 = scalar_lea.vmem [#allocation12], %s4588_s21  ;;  %s4856_s29 = sshll.u32 %s6300_s28, 12 }
  0x8a   : > { %v359_v10 = vsel %vm6506_vm2, 0, %v358_v8  ;;  %v480_v15 = vld [vmem:[%s6488_s20 + $0x48] sm:$0xff]   ;;  %v5835_v16 = vld [vmem:[#allocation9 + $0x140] sm:$0xff]   ;;  %v482_v17 = vld [vmem:[%s6488_s20 + $0x50] sm:$0xff]   ;;  %s4472_s23 = sshll.u32 %s7488_s16, 4  ;;  %s7566_s30 = scalar_lea.hbm %s7622_s7, %s4856_s29  ;;  %s7568_s23 = int_to_ptr.vmem [resolvable:$true] %s4472_s23 }
  0x8b   : > { %5316 = vmatpush3.bf16.msra.mxu0 %v5812_v1  ;;  %5562 = vmatpush3.bf16.msra.mxu1 %v5812_v1  ;;  %360 = vst [vmem:[#allocation2 + $0x18] sm:$0x1] %v359_v10  ;;  %v468_v18 = vld [vmem:[%s6488_s20 + $0x18] sm:$0xff]   ;;  %v470_v19 = vld [vmem:[%s6488_s20 + $0x20] sm:$0xff]   ;;  %v472_v22 = vld [vmem:[%s6488_s20 + $0x28] sm:$0xff]   ;;  %s4459_s28 = scalar_lea.sflag [#allocation6], %s6484_s17 }
  0x8c   : > { %5317 = vmatprep.subr.bf16.mxu0 %v5813_v2  ;;  %5555 = vmatprep.subr.bf16.mxu1 %v5813_v2  ;;  %v484_v20 = vld [vmem:[%s6488_s20 + $0x58] sm:$0xff]   ;;  %v486_v21 = vld [vmem:[%s6488_s20 + $0x60] sm:$0xff]   ;;  %v474_v23 = vld [vmem:[%s6488_s20 + $0x30] sm:$0xff]   ;;  %s6153_s9 = scalar_lea.vmem %s7568_s23, 4096  ;;  %s6236_s13 = smov [#allocation12]  }
  0x8d   : > { %v488_v24 = vld [vmem:[%s6488_s20 + $0x68] sm:$0xff]   ;;  %v490_v25 = vld [vmem:[%s6488_s20 + $0x70] sm:$0xff]   ;;  %v476_v26 = vld [vmem:[%s6488_s20 + $0x38] sm:$0xff]   ;;  %p6154_p10 = scmp.ne.s32.totalorder %s7568_s23, %s6153_s9  ;;  %s6157_s15 = sshll.u32 %s6236_s13, 4  ;;  %s6158_s15 = int_to_ptr.vmem [resolvable:$false] %s6157_s15 }
  0x8e   : > { %v492_v27 = vld [vmem:[%s6488_s20 + $0x78] sm:$0xff]   ;;  %v5836_v28 = vld [vmem:[#allocation9 + $0x148] sm:$0xff]   ;;  %v5837_v29 = vld [vmem:[#allocation9 + $0x100] sm:$0xff]   ;;  %s6159_s10 = scalar_lea.vmem %s6158_s15, 8192  ;;  %p6160_p12 = scmp.lt.s32.totalorder %s7568_s23, %s6158_s15 }
  0x8f   : > { %5318 = vmatpush3.bf16.msra.mxu0 %v5813_v2  ;;  %5563 = vmatpush3.bf16.msra.mxu1 %v5813_v2  ;;  %v5838_v30 = vld [vmem:[#allocation9 + $0xc0] sm:$0xff]   ;;  %vm6528_vm4 = vmand %vm349_vm0, %vm406_vm3  ;;  %v355_v32 = vld [vmem:[#allocation2 + $0xc] sm:$0x1]  ;;  %p6155_p3 = pnand %p6154_p10, %p6433_p5  ;;  %p6161_p1 = scmp.lt.s32.totalorder %s6159_s10, %s6153_s9 }
  0x90   : > { %5319 = vmatprep.subr.bf16.mxu0 %v5814_v3  ;;  %5556 = vmatprep.subr.bf16.mxu1 %v5814_v3  ;;  %v5839_v33 = vld [vmem:[#allocation9 + $0x150] sm:$0xff]   ;;  %v5840_v34 = vld [vmem:[#allocation9 + $0x108] sm:$0xff]   ;;  %v356_v35 = vsel %vm6506_vm2, 0, %v355_v32  ;;  %v411_v39 = vld [vmem:[#allocation2 + $0x14] sm:$0x1] }
  0x91   : > { %v414_v36 = vld [vmem:[#allocation2 + $0x20] sm:$0x1]  ;;  %357 = vst [vmem:[#allocation2 + $0xc] sm:$0x1] %v356_v35  ;;  %v412_v40 = vsel %vm6528_vm4, 0, %v411_v39  ;;  %v5842_v47 = vld [vmem:[#allocation9 + $0x158] sm:$0xff]   ;;  %vm6622_vm7 = vmand %vm1273_vm5, %vm406_vm3  ;;  %p6156_p7 = pneg %p6155_p3  ;;  %p6162_p2 = por %p6161_p1, %p6160_p12 }
  0x92   : > { %v5841_v37 = vld [vmem:[#allocation9 + $0xc8] sm:$0xff]   ;;  %v415_v38 = vsel %vm6528_vm4, 0, %v414_v36  ;;  %413 = vst [vmem:[#allocation2 + $0x14] sm:$0x1] %v412_v40  ;;  %v364_v41 = vld [vmem:[#allocation2 + $0x30] sm:$0x1]  ;;  %vm6633_vm8 = vmor %vm350_vm1, %vm950_vm6 }
  0x93   : > { %5320 = vmatpush3.bf16.msra.mxu0 %v5814_v3  ;;  %5564 = vmatpush3.bf16.msra.mxu1 %v5814_v3  ;;  %416 = vst [vmem:[#allocation2 + $0x20] sm:$0x1] %v415_v38  ;;  %v365_v42 = vsel %vm6506_vm2, 0, %v364_v41  ;;  %v361_v43 = vld [vmem:[#allocation2 + $0x24] sm:$0x1]  ;;  %v5843_v48 = vld [vmem:[#allocation9 + $0x110] sm:$0xff]   ;;  %p6163_p4 = pnand %p6162_p2, %p6156_p7 }
  0x94   : > { %5321 = vmatprep.subr.bf16.mxu0 %v5815_v6  ;;  %5557 = vmatprep.subr.bf16.mxu1 %v5815_v6  ;;  %366 = vst [vmem:[#allocation2 + $0x30] sm:$0x1] %v365_v42  ;;  %v362_v44 = vsel %vm6506_vm2, 0, %v361_v43  ;;  %v420_v45 = vld [vmem:[#allocation2 + $0x38] sm:$0x1]  ;;  %v5844_v49 = vld [vmem:[#allocation9 + $0xd0] sm:$0xff]  }
  0x95   : > { %363 = vst [vmem:[#allocation2 + $0x24] sm:$0x1] %v362_v44  ;;  %v421_v46 = vsel %vm6528_vm4, 0, %v420_v45  ;;  %v5845_v50 = vld [vmem:[#allocation9 + $0x160] sm:$0xff]   ;;  %v5846_v51 = vld [vmem:[#allocation9 + $0x118] sm:$0xff]   ;;  %v5848_v55 = vld [vmem:[#allocation9 + $0x168] sm:$0xff]  }
  0x96   : > { %422 = vst [vmem:[#allocation2 + $0x38] sm:$0x1] %v421_v46  ;;  %v5847_v52 = vld [vmem:[#allocation9 + $0xd8] sm:$0xff]   ;;  %v417_v53 = vld [vmem:[#allocation2 + $0x2c] sm:$0x1]  ;;  %v5849_v56 = vld [vmem:[#allocation9 + $0x120] sm:$0xff]  }
  0x97   : > { %5322 = vmatpush3.bf16.msra.mxu0 %v5815_v6  ;;  %5565 = vmatpush3.bf16.msra.mxu1 %v5815_v6  ;;  %v418_v54 = vsel %vm6528_vm4, 0, %v417_v53  ;;  %v5850_v57 = vld [vmem:[#allocation9 + $0xe0] sm:$0xff]   ;;  %v370_v58 = vld [vmem:[#allocation2 + $0x48] sm:$0x1]  ;;  %v426_v62 = vld [vmem:[#allocation2 + $0x50] sm:$0x1] }
  0x98   : > { %5323 = vmatprep.subr.bf16.mxu0 %v5816_v9  ;;  %5558 = vmatprep.subr.bf16.mxu1 %v5816_v9  ;;  %419 = vst [vmem:[#allocation2 + $0x2c] sm:$0x1] %v418_v54  ;;  %v371_v59 = vsel %vm6506_vm2, 0, %v370_v58  ;;  %v367_v60 = vld [vmem:[#allocation2 + $0x3c] sm:$0x1]  ;;  %v5851_v63 = vld [vmem:[#allocation9 + $0x170] sm:$0xff]  }
  0x99   : > { %372 = vst [vmem:[#allocation2 + $0x48] sm:$0x1] %v371_v59  ;;  %v368_v61 = vsel %vm6506_vm2, 0, %v367_v60  ;;  %v5852_v0 = vld [vmem:[#allocation9 + $0x128] sm:$0xff]   ;;  %v427_v1 = vsel %vm6528_vm4, 0, %v426_v62  ;;  %v5854_v5 = vld [vmem:[#allocation9 + $0x178] sm:$0xff]  }
  0x9a   : > { %369 = vst [vmem:[#allocation2 + $0x3c] sm:$0x1] %v368_v61  ;;  %v5853_v2 = vld [vmem:[#allocation9 + $0xe8] sm:$0xff]   ;;  %428 = vst [vmem:[#allocation2 + $0x50] sm:$0x1] %v427_v1  ;;  %v5931_v53 = vld [vmem:[#allocation9 + $0x1c0] sm:$0xff]  }
  0x9b   : > { %5324 = vmatpush3.bf16.msra.mxu0 %v5816_v9  ;;  %5566 = vmatpush3.bf16.msra.mxu1 %v5816_v9  ;;  %v423_v3 = vld [vmem:[#allocation2 + $0x44] sm:$0x1]  ;;  %v376_v6 = vld [vmem:[#allocation2 + $0x60] sm:$0x1]  ;;  %v373_v9 = vld [vmem:[#allocation2 + $0x54] sm:$0x1] }
  0x9c   : > { %5325 = vmatprep.subr.bf16.mxu0 %v5817_v11  ;;  %5559 = vmatprep.subr.bf16.mxu1 %v5817_v11  ;;  %v424_v4 = vsel %vm6528_vm4, 0, %v423_v3  ;;  %v377_v8 = vsel %vm6506_vm2, 0, %v376_v6  ;;  %v374_v10 = vsel %vm6506_vm2, 0, %v373_v9  ;;  %v441_v35 = vld [vmem:[#allocation2 + $0x8c] sm:$0x1]  ;;  %v6235_v54 = vmov 0  }
  0x9d   : > { %425 = vst [vmem:[#allocation2 + $0x44] sm:$0x1] %v424_v4  ;;  %378 = vst [vmem:[#allocation2 + $0x60] sm:$0x1] %v377_v8  ;;  %v442_v36 = vsel %vm6528_vm4, 0, %v441_v35 }
  0x9e   : > { %375 = vst [vmem:[#allocation2 + $0x54] sm:$0x1] %v374_v10  ;;  %443 = vst [vmem:[#allocation2 + $0x8c] sm:$0x1] %v442_v36  ;;  %v391_v39 = vld [vmem:[#allocation2 + $0x9c] sm:$0x1] }
  0x9f   : > { %5326 = vmatpush3.bf16.msra.mxu0 %v5817_v11  ;;  %5567 = vmatpush3.bf16.msra.mxu1 %v5817_v11  ;;  %v432_v11 = vld [vmem:[#allocation2 + $0x68] sm:$0x1]  ;;  %v392_v40 = vsel %vm6506_vm2, 0, %v391_v39  ;;  %v450_v41 = vld [vmem:[#allocation2 + $0xb0] sm:$0x1] }
  0xa0   : > { %5327 = vmatprep.subr.bf16.mxu0 %v5818_v12  ;;  %5560 = vmatprep.subr.bf16.mxu1 %v5818_v12  ;;  %393 = vst [vmem:[#allocation2 + $0x9c] sm:$0x1] %v392_v40  ;;  %v451_v42 = vsel %vm6528_vm4, 0, %v450_v41  ;;  %v447_v43 = vld [vmem:[#allocation2 + $0xa4] sm:$0x1] }
  0xa1   : > { %452 = vst [vmem:[#allocation2 + $0xb0] sm:$0x1] %v451_v42  ;;  %v448_v44 = vsel %vm6528_vm4, 0, %v447_v43  ;;  %v400_v45 = vld [vmem:[#allocation2 + $0xc0] sm:$0x1] }
  0xa2   : > { %449 = vst [vmem:[#allocation2 + $0xa4] sm:$0x1] %v448_v44  ;;  %v401_v46 = vsel %vm6506_vm2, 0, %v400_v45  ;;  %342 = vst [vmem:[#allocation2] sm:$0xf] %v6235_v54 }
  0xa3   : > { %5328 = vmatpush3.bf16.msra.mxu0 %v5818_v12  ;;  %5568 = vmatpush3.bf16.msra.mxu1 %v5818_v12  ;;  %v5855_v12 = vld [vmem:[#allocation9 + $0x130] sm:$0xff]   ;;  %402 = vst [vmem:[#allocation2 + $0xc0] sm:$0x1] %v401_v46  ;;  %343 = vst [vmem:[#allocation2 + $0x4] sm:$0xf] %v6235_v54 }
  0xa4   : > { %5361 = vmatprep.subr.bf16.mxu0 %v5835_v16  ;;  %4881 = vmatprep.subr.bf16.mxu1 %v5837_v29  ;;  %344 = vst [vmem:[#allocation2 + $0x8] sm:$0x1] %v6235_v54  ;;  %346 = vst [vmem:[#allocation2 + $0xcc] sm:$0xf] %v6235_v54 }
  0xa5   : > { %347 = vst [vmem:[#allocation2 + $0xd0] sm:$0xf] %v6235_v54  ;;  %348 = vst [vmem:[#allocation2 + $0xd4] sm:$0x1] %v6235_v54 }
  0xa6   : > { %5330 = vmatmul.mubr.bf16.vlgmr.msra.gmra.mrb[0].mxu0 %v464_v13  ;;  %5346 = vmatmul.mubr.bf16.vlgmr.msra.gmra.mrb[0].mxu1 %v480_v15  ;;  %v433_v13 = vsel %vm6528_vm4, 0, %v432_v11  ;;  %v382_v15 = vld [vmem:[#allocation2 + $0x78] sm:$0x1] }
  0xa7   : > { %5333 = vmatprep.mubr.bf16.mxu0 %v466_v14  ;;  %5349 = vmatprep.mubr.bf16.mxu1 %v482_v17  ;;  %v5856_v14 = vld [vmem:[#allocation9 + $0xf0] sm:$0xff]   ;;  %434 = vst [vmem:[#allocation2 + $0x68] sm:$0x1] %v433_v13  ;;  %v429_v17 = vld [vmem:[#allocation2 + $0x5c] sm:$0x1] }
  0xa8   : > { %5362 = vmatpush3.bf16.msra.mxu0 %v5835_v16  ;;  %4882 = vmatpush3.bf16.msra.mxu1 %v5838_v30  ;;  %v383_v16 = vsel %vm6506_vm2, 0, %v382_v15  ;;  %v385_v30 = vld [vmem:[#allocation2 + $0x84] sm:$0x1] }
  0xa9   : > { %5363 = vmatprep.subr.bf16.mxu0 %v5836_v28  ;;  %4883 = vmatprep.subr.bf16.mxu1 %v5840_v34  ;;  %384 = vst [vmem:[#allocation2 + $0x78] sm:$0x1] %v383_v16  ;;  %v386_v32 = vsel %vm6506_vm2, 0, %v385_v30  ;;  %v1275_v30 = vld [vmem:[#allocation2 + $0xc] sm:$0xf] }
  0xaa   : > { %387 = vst [vmem:[#allocation2 + $0x84] sm:$0x1] %v386_v32  ;;  %v5982_v7 = vld [vmem:[#allocation2] sm:$0xfe]  }
  0xac   : > { %5364 = vmatpush3.bf16.msra.mxu0 %v5836_v28  ;;  %4884 = vmatpush3.bf16.msra.mxu1 %v5841_v37  ;;  %v388_v28 = vld [vmem:[#allocation2 + $0x90] sm:$0x1]  ;;  %v394_v37 = vld [vmem:[#allocation2 + $0xa8] sm:$0x1] }
  0xad   : > { %5365 = vmatprep.subr.bf16.mxu0 %v5839_v33  ;;  %4885 = vmatprep.subr.bf16.mxu1 %v5843_v48  ;;  %v389_v29 = vsel %vm6506_vm2, 0, %v388_v28  ;;  %v395_v38 = vsel %vm6506_vm2, 0, %v394_v37  ;;  %v456_v48 = vld [vmem:[#allocation2 + $0xc8] sm:$0x1] }
  0xae   : > { %5334 = vmatmul.mubr.bf16.gmra.mrb[4].mxu0 %v468_v18  ;;  %5350 = vmatmul.mubr.bf16.gmra.mrb[4].mxu1 %v484_v20  ;;  %v379_v18 = vld [vmem:[#allocation2 + $0x6c] sm:$0x1]  ;;  %390 = vst [vmem:[#allocation2 + $0x90] sm:$0x1] %v389_v29  ;;  %396 = vst [vmem:[#allocation2 + $0xa8] sm:$0x1] %v395_v38 }
  0xaf   : > { %5337 = vmatprep.mubr.bf16.mxu0 %v470_v19  ;;  %5353 = vmatprep.mubr.bf16.mxu1 %v486_v21  ;;  %v430_v19 = vsel %vm6528_vm4, 0, %v429_v17  ;;  %v380_v20 = vsel %vm6506_vm2, 0, %v379_v18  ;;  %v438_v21 = vld [vmem:[#allocation2 + $0x80] sm:$0x1] }
  0xb0   : > { %5366 = vmatpush3.bf16.msra.mxu0 %v5839_v33  ;;  %4886 = vmatpush3.bf16.msra.mxu1 %v5844_v49  ;;  %431 = vst [vmem:[#allocation2 + $0x5c] sm:$0x1] %v430_v19  ;;  %381 = vst [vmem:[#allocation2 + $0x6c] sm:$0x1] %v380_v20  ;;  %v444_v33 = vld [vmem:[#allocation2 + $0x98] sm:$0x1] }
  0xb1   : > { %5367 = vmatprep.subr.bf16.mxu0 %v5842_v47  ;;  %4887 = vmatprep.subr.bf16.mxu1 %v5846_v51  ;;  %v445_v34 = vsel %vm6528_vm4, 0, %v444_v33  ;;  %v453_v51 = vld [vmem:[#allocation2 + $0xbc] sm:$0x1] }
  0xb2   : > { %446 = vst [vmem:[#allocation2 + $0x98] sm:$0x1] %v445_v34 }
  0xb4   : > { %5368 = vmatpush3.bf16.msra.mxu0 %v5842_v47  ;;  %4888 = vmatpush3.bf16.msra.mxu1 %v5847_v52  ;;  %v397_v47 = vld [vmem:[#allocation2 + $0xb4] sm:$0x1]  ;;  %v454_v52 = vsel %vm6528_vm4, 0, %v453_v51 }
  0xb5   : > { %5369 = vmatprep.subr.bf16.mxu0 %v5845_v50  ;;  %4889 = vmatprep.subr.bf16.mxu1 %v5849_v56  ;;  %v398_v49 = vsel %vm6506_vm2, 0, %v397_v47  ;;  %455 = vst [vmem:[#allocation2 + $0xbc] sm:$0x1] %v454_v52 }
  0xb6   : > { %5338 = vmatmul.mubr.bf16.gmra.mrb[8].mxu0 %v472_v22  ;;  %5354 = vmatmul.mubr.bf16.gmra.mrb[8].mxu1 %v488_v24  ;;  %v435_v22 = vld [vmem:[#allocation2 + $0x74] sm:$0x1]  ;;  %399 = vst [vmem:[#allocation2 + $0xb4] sm:$0x1] %v398_v49 }
  0xb7   : > { %5341 = vmatprep.mubr.bf16.mxu0 %v474_v23  ;;  %5357 = vmatprep.mubr.bf16.mxu1 %v490_v25  ;;  %v439_v23 = vsel %vm6528_vm4, 0, %v438_v21  ;;  %v436_v24 = vsel %vm6528_vm4, 0, %v435_v22  ;;  %v5860_v25 = vld [vmem:[#allocation9 + $0x138] sm:$0xff]  }
  0xb8   : > { %5370 = vmatpush3.bf16.msra.mxu0 %v5845_v50  ;;  %4890 = vmatpush3.bf16.msra.mxu1 %v5850_v57  ;;  %440 = vst [vmem:[#allocation2 + $0x80] sm:$0x1] %v439_v23  ;;  %437 = vst [vmem:[#allocation2 + $0x74] sm:$0x1] %v436_v24  ;;  %v457_v50 = vsel %vm6528_vm4, 0, %v456_v48 }
  0xb9   : > { %5371 = vmatprep.subr.bf16.mxu0 %v5848_v55  ;;  %4891 = vmatprep.subr.bf16.mxu1 %v5852_v0  ;;  %458 = vst [vmem:[#allocation2 + $0xc8] sm:$0x1] %v457_v50  ;;  %v1282_v23 = vld [vmem:[#allocation2 + $0x18] sm:$0xf] }
  0xbc   : > { %5372 = vmatpush3.bf16.msra.mxu0 %v5848_v55  ;;  %4892 = vmatpush3.bf16.msra.mxu1 %v5853_v2  ;;  %v6597_v55 = vld [vmem:[%s7617_s2] ss:$0 sm:$0xff] }
  0xbd   : > { %5373 = vmatprep.subr.bf16.mxu0 %v5851_v63  ;;  %4893 = vmatprep.subr.bf16.mxu1 %v5855_v12 }
  0xbe   : > { %5342 = vmatmul.mubr.bf16.gmra.mrb[12].mxu0 %v476_v26  ;;  %5358 = vmatmul.mubr.bf16.gmra.mrb[12].mxu1 %v492_v27  ;;  %v5864_v26 = vld [vmem:[#allocation9 + $0xf8] sm:$0xff]   ;;  %v5859_v27 = vld [vmem:[#allocation9 + $0x40] sm:$0xff]  }
  0xc0   : > { %5374 = vmatpush3.bf16.msra.mxu0 %v5851_v63  ;;  %4894 = vmatpush3.bf16.msra.mxu1 %v5856_v14 }
  0xc1   : > { %5375 = vmatprep.subr.bf16.mxu0 %v5854_v5  ;;  %4895 = vmatprep.subr.bf16.mxu1 %v5860_v25 }
  0xc4   : > { %5376 = vmatpush3.bf16.msra.mxu0 %v5854_v5  ;;  %4896 = vmatpush3.bf16.msra.mxu1 %v5864_v26 }
  0xc5   : > { %5017 = vmatprep.subr.bf16.mxu0 %v5859_v27  ;;  %5153 = vmatprep.subr.bf16.mxu1 %v5931_v53  ;;  %v1286_v53 = vld [vmem:[#allocation2 + $0x20] sm:$0x1] }
 0x179   : > { %v5331_v56 = vpop.f32.mrb[0].mxu0  ;;  %v5347_v59 = vpop.f32.mrb[0].mxu1 }
 0x17a   : > { %v704_v57 = vadd.f32 %v5331_v56, %v6597_v55  ;;  %v695_v58 = vpop.f32.mrb[1].mxu0  ;;  %v768_v62 = vadd.f32 %v5347_v59, %v6597_v55  ;;  %v759_v63 = vpop.f32.mrb[1].mxu1 }
 0x17b   : > { %v696_v60 = vadd.f32 %v6597_v55, %v695_v58  ;;  %v5332_v61 = vpop.f32.mrb[2].mxu0  ;;  %v760_v3 = vadd.f32 %v6597_v55, %v759_v63  ;;  %v5348_v4 = vpop.f32.mrb[2].mxu1 }
 0x17c   : > { %v824_v0 = vmax.f32 %v704_v57, 0.0  ;;  %v707_v1 = vadd.f32 %v5332_v61, %v6597_v55  ;;  %v698_v2 = vpop.f32.mrb[3].mxu0  ;;  %v840_v8 = vmax.f32 %v768_v62, 0.0  ;;  %v6606_v9 = vadd.f32 %v5348_v4, %v6597_v55  ;;  %v762_v10 = vpop.f32.mrb[3].mxu1  ;;  %v1279_v61 = vld [vmem:[#allocation2 + $0x14] sm:$0x1] }
 0x17d   : > { %v822_v5 = vmax.f32 %v696_v60, 0.0  ;;  %v699_v6 = vadd.f32 %v6597_v55, %v698_v2  ;;  %v838_v13 = vmax.f32 %v760_v3, 0.0  ;;  %v6609_v14 = vadd.f32 %v6597_v55, %v762_v10 }
 0x17e   : > { %v4826_v11 = vpack.c.bf16 %v824_v0, %v824_v0  ;;  %v825_v12 = vmax.f32 %v707_v1, 0.0  ;;  %v6611_v17 = vpack.c.bf16 %v840_v8, %v840_v8  ;;  %v841_v18 = vmax.f32 %v6606_v9, 0.0 }
 0x17f   : > { %v4824_v15 = vpack.c.bf16 %v822_v5, %v822_v5  ;;  %v823_v16 = vmax.f32 %v699_v6, 0.0  ;;  %v6614_v22 = vpack.c.bf16 %v838_v13, %v838_v13 }
 0x180   : > { %v970_v19 = vshrl.u32 %v4826_v11, 16  ;;  %v973_v20 = vshll.u32 %v4826_v11, 16  ;;  %v4827_v21 = vpack.c.bf16 %v825_v12, %v825_v12  ;;  %v1106_v28 = vshrl.u32 %v6611_v17, 16  ;;  %v1296_v11 = vld [vmem:[#allocation2 + $0x30] sm:$0xf] }
 0x181   : > { %v953_v24 = vshrl.u32 %v4824_v15, 16  ;;  %v956_v25 = vshll.u32 %v4824_v15, 16  ;;  %v4825_v26 = vpack.c.bf16 %v823_v16, %v823_v16  ;;  %v5335_v27 = vpop.f32.mrb[4].mxu0  ;;  %v6618_v36 = vpop.f32.mrb[4].mxu1 }
 0x182   : > { %v972_v29 = vrot.slane %v970_v19, 7  ;;  %v978_v32 = vshrl.u32 %v4827_v21, 16  ;;  %v981_v33 = vshll.u32 %v4827_v21, 16  ;;  %v720_v34 = vadd.f32 %v5335_v27, %v6597_v55  ;;  %v711_v35 = vpop.f32.mrb[5].mxu0  ;;  %v6627_v43 = vpop.f32.mrb[5].mxu1 }
 0x183   : > { %v955_v38 = vrot.slane %v953_v24, 7  ;;  %v961_v39 = vshrl.u32 %v4825_v26, 16  ;;  %v964_v40 = vshll.u32 %v4825_v26, 16  ;;  %v712_v41 = vadd.f32 %v6597_v55, %v711_v35  ;;  %v5336_v42 = vpop.f32.mrb[6].mxu0  ;;  %v6629_v49 = vpop.f32.mrb[6].mxu1 }
 0x184   : > { %v975_v44 = vor.u32 %v973_v20, %v972_v29  ;;  %v976_v45 = vrot.slane %v972_v29, 4  ;;  %v980_v46 = vrot.slane %v978_v32, 7  ;;  %v828_v47 = vmax.f32 %v720_v34, 0.0  ;;  %v714_v48 = vpop.f32.mrb[7].mxu0  ;;  %v6637_v57 = vpop.f32.mrb[7].mxu1 }
 0x185   : > { %v958_v50 = vor.u32 %v956_v25, %v955_v38  ;;  %v959_v51 = vrot.slane %v955_v38, 4  ;;  %v963_v54 = vrot.slane %v961_v39, 7  ;;  %v826_v56 = vmax.f32 %v712_v41, 0.0  ;;  %v1289_v19 = vld [vmem:[#allocation2 + $0x24] sm:$0xf] }
 0x186   : > { %v1283_v58 = vsel %vm6622_vm7, %v975_v44, %v1282_v23  ;;  %v983_v59 = vor.u32 %v981_v33, %v980_v46  ;;  %v985_v60 = vrot.slane %v980_v46, 4  ;;  %v4830_v62 = vpack.c.bf16 %v828_v47, %v828_v47 }
 0x187   : > { %1284 = vst [vmem:[#allocation2 + $0x18] sm:$0xf] %v1283_v58  ;;  %v1276_v63 = vsel %vm6622_vm7, %v958_v50, %v1275_v30  ;;  %v966_v0 = vor.u32 %v964_v40, %v963_v54  ;;  %v968_v1 = vrot.slane %v963_v54, 4  ;;  %v4828_v2 = vpack.c.bf16 %v826_v56, %v826_v56 }
 0x188   : > { %1277 = vst [vmem:[#allocation2 + $0xc] sm:$0xf] %v1276_v63  ;;  %v984_v3 = vsel %vm6633_vm8, %v976_v45, %v983_v59  ;;  %v1287_v4 = vsel %vm6506_vm2, %v985_v60, %v1286_v53  ;;  %v1004_v5 = vshrl.u32 %v4830_v62, 16  ;;  %v1007_v6 = vshll.u32 %v4830_v62, 16  ;;  %v1300_v63 = vld [vmem:[#allocation2 + $0x38] sm:$0x1] }
 0x189   : > { %1285 = vst [vmem:[#allocation2 + $0x1c] sm:$0xf] %v984_v3  ;;  %1288 = vst [vmem:[#allocation2 + $0x20] sm:$0x1] %v1287_v4  ;;  %v967_v8 = vsel %vm6633_vm8, %v959_v51, %v966_v0  ;;  %v1280_v10 = vsel %vm6506_vm2, %v968_v1, %v1279_v61  ;;  %v987_v12 = vshrl.u32 %v4828_v2, 16  ;;  %v990_v13 = vshll.u32 %v4828_v2, 16 }
 0x18a   : > { %v5339_v15 = vpop.f32.mrb[8].mxu0  ;;  %1278 = vst [vmem:[#allocation2 + $0x10] sm:$0xf] %v967_v8  ;;  %1281 = vst [vmem:[#allocation2 + $0x14] sm:$0x1] %v1280_v10  ;;  %v6651_v16 = vrot.slane %v1004_v5, 7  ;;  %v723_v20 = vadd.f32 %v5336_v42, %v6597_v55  ;;  %v715_v21 = vadd.f32 %v6597_v55, %v714_v48 }
 0x18b   : > { %v736_v23 = vadd.f32 %v5339_v15, %v6597_v55  ;;  %v727_v24 = vpop.f32.mrb[9].mxu0  ;;  %v6656_v25 = vpop.f32.mrb[8].mxu1  ;;  %v6658_v26 = vrot.slane %v987_v12, 7  ;;  %v6661_v30 = vrot.slane %v1106_v28, 7  ;;  %v1109_v32 = vshll.u32 %v6611_v17, 16 }
 0x18c   : > { %v728_v27 = vadd.f32 %v6597_v55, %v727_v24  ;;  %v5340_v29 = vpop.f32.mrb[10].mxu0  ;;  %v6664_v33 = vpop.f32.mrb[9].mxu1  ;;  %v1009_v34 = vor.u32 %v1007_v6, %v6651_v16  ;;  %v1010_v35 = vrot.slane %v6651_v16, 4  ;;  %v829_v38 = vmax.f32 %v723_v20, 0.0  ;;  %v1293_v0 = vld [vmem:[#allocation2 + $0x2c] sm:$0x1] }
 0x18d   : > { %v827_v39 = vmax.f32 %v715_v21, 0.0  ;;  %v730_v40 = vpop.f32.mrb[11].mxu0  ;;  %v6668_v41 = vpop.f32.mrb[10].mxu1  ;;  %v992_v42 = vor.u32 %v990_v13, %v6658_v26  ;;  %v993_v44 = vrot.slane %v6658_v26, 4  ;;  %v832_v45 = vmax.f32 %v736_v23, 0.0 }
 0x18e   : > { %v830_v28 = vmax.f32 %v728_v27, 0.0  ;;  %v6672_v46 = vpop.f32.mrb[11].mxu1  ;;  %v1297_v47 = vsel %vm6622_vm7, %v1009_v34, %v1296_v11  ;;  %v4831_v48 = vpack.c.bf16 %v829_v38, %v829_v38  ;;  %v739_v51 = vadd.f32 %v5340_v29, %v6597_v55  ;;  %v1310_v10 = vld [vmem:[#allocation2 + $0x48] sm:$0xf]  ;;  %v1303_v11 = vld [vmem:[#allocation2 + $0x3c] sm:$0xf] }
 0x18f   : > { %v4829_v50 = vpack.c.bf16 %v827_v39, %v827_v39  ;;  %1298 = vst [vmem:[#allocation2 + $0x30] sm:$0xf] %v1297_v47  ;;  %v1290_v53 = vsel %vm6622_vm7, %v992_v42, %v1289_v19  ;;  %v4834_v54 = vpack.c.bf16 %v832_v45, %v832_v45  ;;  %v731_v58 = vadd.f32 %v6597_v55, %v730_v40 }
 0x190   : > { %v4832_v56 = vpack.c.bf16 %v830_v28, %v830_v28  ;;  %1291 = vst [vmem:[#allocation2 + $0x24] sm:$0xf] %v1290_v53  ;;  %v1012_v59 = vshrl.u32 %v4831_v48, 16  ;;  %v1015_v60 = vshll.u32 %v4831_v48, 16  ;;  %v833_v12 = vmax.f32 %v739_v51, 0.0 }
 0x191   : > { %v995_v61 = vshrl.u32 %v4829_v50, 16  ;;  %v998_v62 = vshll.u32 %v4829_v50, 16  ;;  %v1038_v1 = vshrl.u32 %v4834_v54, 16  ;;  %v1041_v2 = vshll.u32 %v4834_v54, 16  ;;  %v5343_v5 = vpop.f32.mrb[12].mxu0  ;;  %v6700_v50 = vpop.f32.mrb[12].mxu1 }
 0x192   : > { %v1021_v3 = vshrl.u32 %v4832_v56, 16  ;;  %v1024_v4 = vshll.u32 %v4832_v56, 16  ;;  %v1014_v6 = vrot.slane %v1012_v59, 7  ;;  %v831_v13 = vmax.f32 %v731_v58, 0.0  ;;  %v743_v15 = vpop.f32.mrb[13].mxu0  ;;  %v6706_v58 = vpop.f32.mrb[13].mxu1 }
 0x193   : > { %v997_v8 = vrot.slane %v995_v61, 7  ;;  %v6680_v16 = vrot.slane %v1038_v1, 7  ;;  %v752_v20 = vadd.f32 %v5343_v5, %v6597_v55  ;;  %v744_v21 = vadd.f32 %v6597_v55, %v743_v15  ;;  %v5344_v23 = vpop.f32.mrb[14].mxu0  ;;  %v1338_v56 = vld [vmem:[#allocation2 + $0x78] sm:$0xf] }
 0x194   : > { %v6682_v19 = vrot.slane %v1021_v3, 7  ;;  %v1017_v24 = vor.u32 %v1015_v60, %v1014_v6  ;;  %v1019_v26 = vrot.slane %v1014_v6, 4  ;;  %v6686_v34 = vpop.f32.mrb[15].mxu0  ;;  %v4835_v53 = vpack.c.bf16 %v833_v12, %v833_v12  ;;  %v1314_v3 = vld [vmem:[#allocation2 + $0x50] sm:$0x1] }
 0x195   : > { %v1000_v27 = vor.u32 %v998_v62, %v997_v8  ;;  %v1002_v29 = vrot.slane %v997_v8, 4  ;;  %v1043_v38 = vor.u32 %v1041_v2, %v6680_v16  ;;  %v1044_v39 = vrot.slane %v6680_v16, 4  ;;  %v6712_v62 = vpop.f32.mrb[14].mxu1 }
 0x196   : > { %v1026_v40 = vor.u32 %v1024_v4, %v6682_v19  ;;  %v1027_v42 = vrot.slane %v6682_v19, 4  ;;  %v1018_v45 = vsel %vm6633_vm8, %v1010_v35, %v1017_v24  ;;  %v1301_v28 = vsel %vm6506_vm2, %v1019_v26, %v1300_v63  ;;  %v1307_v4 = vld [vmem:[#allocation2 + $0x44] sm:$0x1] }
 0x197   : > { %v1001_v47 = vsel %vm6633_vm8, %v993_v44, %v1000_v27  ;;  %v1294_v48 = vsel %vm6506_vm2, %v1002_v29, %v1293_v0  ;;  %1299 = vst [vmem:[#allocation2 + $0x34] sm:$0xf] %v1018_v45  ;;  %1302 = vst [vmem:[#allocation2 + $0x38] sm:$0x1] %v1301_v28  ;;  %v1311_v51 = vsel %vm6622_vm7, %v1043_v38, %v1310_v10  ;;  %v836_v44 = vmax.f32 %v752_v20, 0.0 }
 0x198   : > { %1292 = vst [vmem:[#allocation2 + $0x28] sm:$0xf] %v1001_v47  ;;  %1295 = vst [vmem:[#allocation2 + $0x2c] sm:$0x1] %v1294_v48  ;;  %v1304_v35 = vsel %vm6622_vm7, %v1026_v40, %v1303_v11  ;;  %v4833_v54 = vpack.c.bf16 %v831_v13, %v831_v13  ;;  %v834_v59 = vmax.f32 %v744_v21, 0.0  ;;  %v1111_v60 = vor.u32 %v1109_v32, %v6661_v30  ;;  %v6717_v11 = vpop.f32.mrb[15].mxu1 }
 0x199   : > { %1312 = vst [vmem:[#allocation2 + $0x48] sm:$0xf] %v1311_v51  ;;  %1305 = vst [vmem:[#allocation2 + $0x3c] sm:$0xf] %v1304_v35  ;;  %v1112_v61 = vrot.slane %v6661_v30, 4  ;;  %v1046_v63 = vshrl.u32 %v4835_v53, 16  ;;  %v4838_v5 = vpack.c.bf16 %v836_v44, %v836_v44  ;;  %v755_v10 = vadd.f32 %v5344_v23, %v6597_v55 }
 0x19a   : > { %v1049_v0 = vshll.u32 %v4835_v53, 16  ;;  %v1029_v1 = vshrl.u32 %v4833_v54, 16  ;;  %v1032_v2 = vshll.u32 %v4833_v54, 16  ;;  %v4836_v6 = vpack.c.bf16 %v834_v59, %v834_v59  ;;  %v1324_v29 = vld [vmem:[#allocation2 + $0x60] sm:$0xf] }
 0x19b   : > { %v1339_v8 = vsel %vm6622_vm7, %v1111_v60, %v1338_v56  ;;  %v1048_v17 = vrot.slane %v1046_v63, 7  ;;  %v1089_v12 = vshrl.u32 %v6614_v22, 16  ;;  %v1092_v13 = vshll.u32 %v6614_v22, 16  ;;  %v1317_v38 = vld [vmem:[#allocation2 + $0x54] sm:$0xf] }
 0x19c   : > { %v1031_v32 = vrot.slane %v1029_v1, 7  ;;  %1340 = vst [vmem:[#allocation2 + $0x78] sm:$0xf] %v1339_v8  ;;  %v1072_v15 = vshrl.u32 %v4838_v5, 16  ;;  %v1075_v16 = vshll.u32 %v4838_v5, 16  ;;  %v1055_v19 = vshrl.u32 %v4836_v6, 16 }
 0x19d   : > { %v1058_v20 = vshll.u32 %v4836_v6, 16  ;;  %v1051_v21 = vor.u32 %v1049_v0, %v1048_v17  ;;  %v1053_v24 = vrot.slane %v1048_v17, 4  ;;  %v837_v45 = vmax.f32 %v755_v10, 0.0  ;;  %v1331_v35 = vld [vmem:[#allocation2 + $0x6c] sm:$0xf] }
 0x19e   : > { %v1034_v26 = vor.u32 %v1032_v2, %v1031_v32  ;;  %v1036_v27 = vrot.slane %v1031_v32, 4  ;;  %v6721_v23 = vrot.slane %v1072_v15, 7  ;;  %v6723_v40 = vrot.slane %v1055_v19, 7  ;;  %v5858_v53 = vld [vmem:[#allocation2 + $0x14] ss:$0 sps:$4 sm:$0x11]  }
 0x19f   : > { %v6725_v28 = vrot.slane %v1089_v12, 7  ;;  %v1052_v22 = vsel %vm6633_vm8, %v1044_v39, %v1051_v21  ;;  %v1315_v47 = vsel %vm6506_vm2, %v1053_v24, %v1314_v3  ;;  %v5857_v59 = vld [vmem:[#allocation2 + $0xc] sm:$0xfe]   ;;  %v5861_v60 = vld [vmem:[#allocation2 + $0x18] sm:$0xfe]   ;;  %v747_v1 = vadd.f32 %v6597_v55, %v6686_v34 }
 0x1a0   : > { %v1035_v48 = vsel %vm6633_vm8, %v1027_v42, %v1034_v26  ;;  %v1308_v51 = vsel %vm6506_vm2, %v1036_v27, %v1307_v4  ;;  %1313 = vst [vmem:[#allocation2 + $0x4c] sm:$0xf] %v1052_v22  ;;  %1316 = vst [vmem:[#allocation2 + $0x50] sm:$0x1] %v1315_v47  ;;  %v1077_v54 = vor.u32 %v1075_v16, %v6721_v23  ;;  %v1078_v56 = vrot.slane %v6721_v23, 4  ;;  %v5863_v22 = vld [vmem:[#allocation9] sm:$0xff]  }
 0x1a1   : > { %1306 = vst [vmem:[#allocation2 + $0x40] sm:$0xf] %v1035_v48  ;;  %1309 = vst [vmem:[#allocation2 + $0x44] sm:$0x1] %v1308_v51  ;;  %v1060_v39 = vor.u32 %v1058_v20, %v6723_v40  ;;  %v1061_v44 = vrot.slane %v6723_v40, 4  ;;  %v4839_v42 = vpack.c.bf16 %v837_v45, %v837_v45  ;;  %v1094_v63 = vor.u32 %v1092_v13, %v6725_v28  ;;  %v5865_v47 = vld [vmem:[#allocation2 + $0xc] sm:$0xff]  }
 0x1a2   : > { %v1095_v0 = vrot.slane %v6725_v28, 4  ;;  %v1325_v2 = vsel %vm6622_vm7, %v1077_v54, %v1324_v29  ;;  %v4843_v4 = vpack.c.bf16 %v841_v18, %v841_v18  ;;  %v839_v5 = vmax.f32 %v6609_v14, 0.0  ;;  %v5862_v6 = vld [vmem:[#allocation2 + $0x20] ss:$0 sps:$4 sm:$0x11]  }
 0x1a3   : > { %v1318_v3 = vsel %vm6622_vm7, %v1060_v39, %v1317_v38  ;;  %1326 = vst [vmem:[#allocation2 + $0x60] sm:$0xf] %v1325_v2  ;;  %v1080_v8 = vshrl.u32 %v4839_v42, 16  ;;  %v1083_v10 = vshll.u32 %v4839_v42, 16  ;;  %v1332_v34 = vsel %vm6622_vm7, %v1094_v63, %v1331_v35  ;;  %v1328_v32 = vld [vmem:[#allocation2 + $0x68] sm:$0x1] }
 0x1a4   : > { %1319 = vst [vmem:[#allocation2 + $0x54] sm:$0xf] %v1318_v3  ;;  %v835_v17 = vmax.f32 %v747_v1, 0.0  ;;  %1333 = vst [vmem:[#allocation2 + $0x6c] sm:$0xf] %v1332_v34  ;;  %v1114_v12 = vshrl.u32 %v4843_v4, 16  ;;  %v4841_v15 = vpack.c.bf16 %v839_v5, %v839_v5  ;;  %v784_v34 = vadd.f32 %v6618_v36, %v6597_v55 }
 0x1a5   : > { %v1117_v13 = vshll.u32 %v4843_v4, 16  ;;  %v2202_v16 = vrot.slane %v5857_v59, 1  ;;  %v1082_v9 = vrot.slane %v1080_v8, 7  ;;  %v1342_v18 = vld [vmem:[#allocation2 + $0x80] sm:$0x1]  ;;  %v2203_v20 = vrot.slane %v5858_v53, 1 }
 0x1a6   : > { %v4837_v19 = vpack.c.bf16 %v835_v17, %v835_v17  ;;  %v2205_v14 = vrot.slane %v5861_v60, 1  ;;  %v1116_v21 = vrot.slane %v1114_v12, 7  ;;  %v1097_v24 = vshrl.u32 %v4841_v15, 16  ;;  %v5872_v48 = vld [vmem:[#allocation9 + $0x48] sm:$0xff]   ;;  %v1321_v51 = vld [vmem:[#allocation2 + $0x5c] sm:$0x1] }
 0x1a7   : > { %v1100_v26 = vshll.u32 %v4841_v15, 16  ;;  %v2206_v27 = vrot.slane %v5862_v6, 1  ;;  %v1085_v29 = vor.u32 %v1083_v10, %v1082_v9  ;;  %v1087_v38 = vrot.slane %v1082_v9, 4  ;;  %v1335_v63 = vld [vmem:[#allocation2 + $0x74] sm:$0x1]  ;;  %v5875_v2 = vld [vmem:[#allocation9 + $0x8] sm:$0xff]  }
 0x1a8   : > { %v1063_v23 = vshrl.u32 %v4837_v19, 16  ;;  %v1066_v45 = vshll.u32 %v4837_v19, 16  ;;  %v1119_v35 = vor.u32 %v1117_v13, %v1116_v21  ;;  %v1121_v54 = vrot.slane %v1116_v21, 4  ;;  %v5866_v6 = vld [vmem:[#allocation2 + $0x14] ss:$0 sps:$4 sm:$0x11]  }
 0x1a9   : > { %v1099_v39 = vrot.slane %v1097_v24, 7  ;;  %v6754_v59 = vsel %vm2198_vm9, %v2202_v16, %v2203_v20  ;;  %v1086_v53 = vsel %vm6633_vm8, %v1078_v56, %v1085_v29  ;;  %v1329_v60 = vsel %vm6506_vm2, %v1087_v38, %v1328_v32  ;;  %v5881_v15 = vld [vmem:[#allocation9 + $0x50] sm:$0xff]   ;;  %v5907_v37 = vld [vmem:[#allocation2 + $0x50] ss:$0 sps:$4 sm:$0x11]  }
 0x1aa   : > { %v1065_v42 = vrot.slane %v1063_v23, 7  ;;  %5377 = vmatprep.mubr.bf16.mxu0 %v6754_v59  ;;  %v6762_v1 = vsel %vm2198_vm9, %v2205_v14, %v2206_v27  ;;  %1327 = vst [vmem:[#allocation2 + $0x64] sm:$0xf] %v1086_v53  ;;  %1330 = vst [vmem:[#allocation2 + $0x68] sm:$0x1] %v1329_v60  ;;  %v1120_v3 = vsel %vm6633_vm8, %v1112_v61, %v1119_v35  ;;  %v6775_v61 = vld [vmem:[#allocation2 + $0x18] sm:$0xff]  }
 0x1ab   : > { %v1343_v56 = vsel %vm6506_vm2, %v1121_v54, %v1342_v18  ;;  %v1102_v4 = vor.u32 %v1100_v26, %v1099_v39  ;;  %v1104_v5 = vrot.slane %v1099_v39, 4  ;;  %5378 = vmatmul.mubr.bf16.vlgmr.msra.gmra.mrb[16].mxu0 %v6762_v1  ;;  %1341 = vst [vmem:[#allocation2 + $0x7c] sm:$0xf] %v1120_v3  ;;  %v776_v30 = vadd.f32 %v6597_v55, %v6627_v43  ;;  %v6789_v9 = vld [vmem:[#allocation2 + $0x24] sm:$0xfe]   ;;  %v5893_v39 = vld [vmem:[#allocation9 + $0x18] sm:$0xff]  }
 0x1ac   : > { %v1068_v8 = vor.u32 %v1066_v45, %v1065_v42  ;;  %v1070_v10 = vrot.slane %v1065_v42, 4  ;;  %1344 = vst [vmem:[#allocation2 + $0x80] sm:$0x1] %v1343_v56  ;;  %5018 = vmatpush3.bf16.msra.mxu0 %v5863_v22  ;;  %v1761_v12 = vshrl.u32 %v5865_v47, 16  ;;  %v1763_v13 = vshll.u32 %v5865_v47, 16  ;;  %v5884_v19 = vld [vmem:[#allocation9 + $0x10] sm:$0xff]  }
 0x1ad   : > { %v1103_v17 = vsel %vm6633_vm8, %v1095_v0, %v1102_v4  ;;  %v1336_v32 = vsel %vm6506_vm2, %v1104_v5, %v1335_v63  ;;  %5019 = vmatprep.subr.bf16.mxu0 %v5872_v48  ;;  %v844_v28 = vmax.f32 %v784_v34, 0.0  ;;  %v842_v16 = vmax.f32 %v776_v30, 0.0  ;;  %v5869_v0 = vld [vmem:[#allocation2 + $0x20] ss:$0 sps:$4 sm:$0x11]   ;;  %v5890_v45 = vld [vmem:[#allocation9 + $0x58] sm:$0xff]  }
 0x1ae   : > { %v1069_v36 = vsel %vm6633_vm8, %v1061_v44, %v1068_v8  ;;  %v1322_v43 = vsel %vm6506_vm2, %v1070_v10, %v1321_v51  ;;  %1334 = vst [vmem:[#allocation2 + $0x70] sm:$0xf] %v1103_v17  ;;  %1337 = vst [vmem:[#allocation2 + $0x74] sm:$0x1] %v1336_v32  ;;  %v1765_v18 = vrot.slane %v1763_v13, 1  ;;  %v1768_v20 = vshll.u32 %v5866_v6, 16 }
 0x1af   : > { %1320 = vst [vmem:[#allocation2 + $0x58] sm:$0xf] %v1069_v36  ;;  %1323 = vst [vmem:[#allocation2 + $0x5c] sm:$0x1] %v1322_v43  ;;  %v787_v40 = vadd.f32 %v6629_v49, %v6597_v55  ;;  %v779_v44 = vadd.f32 %v6597_v55, %v6637_v57  ;;  %v4846_v14 = vpack.c.bf16 %v844_v28, %v844_v28  ;;  %v1773_v24 = vshrl.u32 %v6775_v61, 16  ;;  %v5934_v22 = vld [vmem:[#allocation9 + $0x180] sm:$0xff]  }
 0x1b0   : > { %v4844_v21 = vpack.c.bf16 %v842_v16, %v842_v16  ;;  %v1775_v26 = vshll.u32 %v6775_v61, 16  ;;  %5020 = vmatpush3.bf16.msra.mxu0 %v5875_v2  ;;  %v1766_v27 = vor.u32 %v1765_v18, %v1761_v12  ;;  %v1770_v29 = vrot.slane %v1768_v20, 1  ;;  %v5943_v47 = vld [vmem:[#allocation9 + $0x1c8] sm:$0xff]   ;;  %v5871_v57 = vld [vmem:[#allocation2 + $0x2c] ss:$0 sps:$4 sm:$0x11]  }
 0x1b1   : > { %v845_v38 = vmax.f32 %v787_v40, 0.0  ;;  %v843_v23 = vmax.f32 %v779_v44, 0.0  ;;  %5021 = vmatprep.subr.bf16.mxu0 %v5881_v15  ;;  %v1140_v48 = vshrl.u32 %v4846_v14, 16  ;;  %v1143_v49 = vshll.u32 %v4846_v14, 16  ;;  %v6797_v54 = vld [vmem:[#allocation2 + $0x30] sm:$0xfe]  }
 0x1b2   : > { %v1123_v51 = vshrl.u32 %v4844_v21, 16  ;;  %v1126_v35 = vshll.u32 %v4844_v21, 16  ;;  %v1352_v53 = vld [vmem:[#allocation2 + $0x90] sm:$0xf]  ;;  %v1345_v60 = vld [vmem:[#allocation2 + $0x84] sm:$0xf]  ;;  %v6800_v42 = vsel %vm1747_vm10, %v1766_v27, %v1770_v29 }
 0x1b3   : > { %v4847_v63 = vpack.c.bf16 %v845_v38, %v845_v38  ;;  %v6802_v2 = vld [vmem:[#allocation2 + $0xc] sm:$0xff]   ;;  %v4845_v3 = vpack.c.bf16 %v843_v23, %v843_v23  ;;  %v1777_v56 = vrot.slane %v1775_v26, 1  ;;  %v1142_v4 = vrot.slane %v1140_v48, 7  ;;  %2659 = vmatprep.mubr.bf16.mxu1 %v6800_v42  ;;  %v5874_v10 = vld [vmem:[#allocation2 + $0x38] ss:$0 sps:$4 sm:$0x11]  }
 0x1b4   : > { %v1125_v5 = vrot.slane %v1123_v51, 7  ;;  %v1780_v6 = vshll.u32 %v5869_v0, 16  ;;  %v2208_v8 = vrot.slane %v6789_v9, 1  ;;  %5022 = vmatpush3.bf16.msra.mxu0 %v5884_v19  ;;  %2660 = vmatmul.mubr.bf16.vlgmr.msra.gmra.mrb[16].mxu1 %v6802_v2  ;;  %v5899_v32 = vld [vmem:[#allocation9 + $0x60] sm:$0xff]   ;;  %v5946_v12 = vld [vmem:[#allocation9 + $0x188] sm:$0xff]   ;;  %v2209_v14 = vrot.slane %v5871_v57, 1 }
 0x1b5   : > { %v1148_v34 = vshrl.u32 %v4847_v63, 16  ;;  %v1151_v30 = vshll.u32 %v4847_v63, 16  ;;  %v1131_v61 = vshrl.u32 %v4845_v3, 16  ;;  %v1134_v17 = vshll.u32 %v4845_v3, 16  ;;  %5023 = vmatprep.subr.bf16.mxu0 %v5890_v45  ;;  %v1356_v28 = vld [vmem:[#allocation2 + $0x98] sm:$0x1]  ;;  %5154 = vmatpush3.bf16.msra.mxu1 %v5934_v22 }
 0x1b6   : > { %v1145_v13 = vor.u32 %v1143_v49, %v1142_v4  ;;  %v1146_v15 = vrot.slane %v1142_v4, 4  ;;  %v1128_v36 = vor.u32 %v1126_v35, %v1125_v5  ;;  %v1129_v43 = vrot.slane %v1125_v5, 4  ;;  %v1349_v16 = vld [vmem:[#allocation2 + $0x8c] sm:$0x1]  ;;  %5155 = vmatprep.subr.bf16.mxu1 %v5943_v47  ;;  %v6812_v26 = vld [vmem:[#allocation2 + $0x3c] sm:$0xfe]  }
 0x1b7   : > { %v1150_v0 = vrot.slane %v1148_v34, 7  ;;  %v1133_v9 = vrot.slane %v1131_v61, 7  ;;  %v1778_v18 = vor.u32 %v1777_v56, %v1773_v24  ;;  %v1782_v19 = vrot.slane %v1780_v6, 1  ;;  %v5878_v20 = vld [vmem:[#allocation2 + $0x2c] ss:$0 sps:$4 sm:$0x11]  }
 0x1b8   : > { %v1353_v40 = vsel %vm6622_vm7, %v1145_v13, %v1352_v53  ;;  %v1346_v44 = vsel %vm6622_vm7, %v1128_v36, %v1345_v60  ;;  %v2211_v21 = vrot.slane %v6797_v54, 1  ;;  %5024 = vmatpush3.bf16.msra.mxu0 %v5893_v39  ;;  %v5902_v27 = vld [vmem:[#allocation9 + $0x20] sm:$0xff]   ;;  %v5908_v29 = vld [vmem:[#allocation9 + $0x68] sm:$0xff]   ;;  %v6820_v51 = vsel %vm2198_vm9, %v2208_v8, %v2209_v14  ;;  %v5952_v54 = vld [vmem:[#allocation9 + $0x1d0] sm:$0xff]  }
 0x1b9   : > { %1354 = vst [vmem:[#allocation2 + $0x90] sm:$0xf] %v1353_v40  ;;  %1347 = vst [vmem:[#allocation2 + $0x84] sm:$0xf] %v1346_v44  ;;  %v1153_v24 = vor.u32 %v1151_v30, %v1150_v0  ;;  %v1155_v38 = vrot.slane %v1150_v0, 4  ;;  %v1136_v23 = vor.u32 %v1134_v17, %v1133_v9  ;;  %v1138_v45 = vrot.slane %v1133_v9, 4  ;;  %5025 = vmatprep.subr.bf16.mxu0 %v5899_v32 }
 0x1ba   : > { %v6814_v22 = vld [vmem:[#allocation2 + $0x18] sm:$0xff]   ;;  %v5877_v47 = vld [vmem:[#allocation2 + $0x24] sm:$0xff]   ;;  %v6817_v49 = vsel %vm1747_vm10, %v1778_v18, %v1782_v19  ;;  %v2212_v35 = vrot.slane %v5874_v10, 1  ;;  %v800_v57 = vadd.f32 %v6656_v25, %v6597_v55  ;;  %5156 = vmatpush3.bf16.msra.mxu1 %v5946_v12  ;;  %5381 = vmatprep.mubr.bf16.mxu0 %v6820_v51  ;;  %v792_v4 = vadd.f32 %v6597_v55, %v6664_v33  ;;  %v5926_v14 = vld [vmem:[#allocation9 + $0x78] sm:$0xff]  }
 0x1bb   : > { %v5880_v48 = vld [vmem:[#allocation2 + $0x44] ss:$0 sps:$4 sm:$0x11]   ;;  %v1154_v39 = vsel %vm6633_vm8, %v1146_v15, %v1153_v24  ;;  %v1357_v53 = vsel %vm6506_vm2, %v1155_v38, %v1356_v28  ;;  %v1137_v60 = vsel %vm6633_vm8, %v1129_v43, %v1136_v23  ;;  %v1350_v63 = vsel %vm6506_vm2, %v1138_v45, %v1349_v16  ;;  %2667 = vmatprep.mubr.bf16.mxu1 %v6817_v49  ;;  %v5955_v3 = vld [vmem:[#allocation9 + $0x190] sm:$0xff]   ;;  %v1359_v24 = vld [vmem:[#allocation2 + $0x9c] sm:$0xf] }
 0x1bc   : > { %1355 = vst [vmem:[#allocation2 + $0x94] sm:$0xf] %v1154_v39  ;;  %1358 = vst [vmem:[#allocation2 + $0x98] sm:$0x1] %v1357_v53  ;;  %v6835_v25 = vsel %vm2198_vm9, %v2211_v21, %v2212_v35  ;;  %v848_v56 = vmax.f32 %v800_v57, 0.0  ;;  %v803_v5 = vadd.f32 %v6668_v41, %v6597_v55  ;;  %5026 = vmatpush3.bf16.msra.mxu0 %v5902_v27  ;;  %v5911_v8 = vld [vmem:[#allocation9 + $0x28] sm:$0xff]   ;;  %2668 = vmatmul.mubr.bf16.gmra.mrb[20].mxu1 %v6814_v22 }
 0x1bd   : > { %1348 = vst [vmem:[#allocation2 + $0x88] sm:$0xf] %v1137_v60  ;;  %1351 = vst [vmem:[#allocation2 + $0x8c] sm:$0x1] %v1350_v63  ;;  %v6841_v6 = vld [vmem:[#allocation2 + $0x48] sm:$0xfe]   ;;  %5382 = vmatmul.mubr.bf16.gmra.mrb[20].mxu0 %v6835_v25  ;;  %v795_v10 = vadd.f32 %v6597_v55, %v6672_v46  ;;  %5027 = vmatprep.subr.bf16.mxu0 %v5908_v29 }
 0x1be   : > { %v1785_v34 = vshrl.u32 %v5877_v47, 16  ;;  %v1787_v30 = vshll.u32 %v5877_v47, 16  ;;  %v1792_v61 = vshll.u32 %v5878_v20, 16  ;;  %v5917_v17 = vld [vmem:[#allocation9 + $0x70] sm:$0xff]   ;;  %v4850_v32 = vpack.c.bf16 %v848_v56, %v848_v56  ;;  %5157 = vmatprep.subr.bf16.mxu1 %v5952_v54  ;;  %v1370_v53 = vld [vmem:[#allocation2 + $0xb0] sm:$0x1] }
 0x1bf   : > { %v846_v33 = vmax.f32 %v792_v4, 0.0  ;;  %v849_v12 = vmax.f32 %v803_v5, 0.0  ;;  %v2214_v41 = vrot.slane %v6812_v26, 1  ;;  %v847_v13 = vmax.f32 %v795_v10, 0.0  ;;  %5158 = vmatpush3.bf16.msra.mxu1 %v5955_v3  ;;  %v5920_v9 = vld [vmem:[#allocation9 + $0x30] sm:$0xff]   ;;  %v6859_v63 = vld [vmem:[#allocation2 + $0x30] sm:$0xff]  }
 0x1c0   : > { %v1789_v15 = vrot.slane %v1787_v30, 1  ;;  %v1794_v36 = vrot.slane %v1792_v61, 1  ;;  %v2215_v43 = vrot.slane %v5880_v48, 1  ;;  %v1174_v28 = vshrl.u32 %v4850_v32, 16  ;;  %5028 = vmatpush3.bf16.msra.mxu0 %v5911_v8  ;;  %v1366_v18 = vld [vmem:[#allocation2 + $0xa8] sm:$0xf] }
 0x1c1   : > { %v1177_v16 = vshll.u32 %v4850_v32, 16  ;;  %v4848_v0 = vpack.c.bf16 %v846_v33, %v846_v33  ;;  %v4851_v55 = vpack.c.bf16 %v849_v12, %v849_v12  ;;  %v5883_v46 = vld [vmem:[#allocation2 + $0x50] ss:$0 sps:$4 sm:$0x11]   ;;  %v4849_v19 = vpack.c.bf16 %v847_v13, %v847_v13  ;;  %5029 = vmatprep.subr.bf16.mxu0 %v5917_v17  ;;  %v6856_v48 = vld [vmem:[#allocation2 + $0x24] sm:$0xff]   ;;  %v6861_v56 = vld [vmem:[#allocation9 + $0x80] sm:$0xff]  }
 0x1c2   : > { %v1790_v20 = vor.u32 %v1789_v15, %v1785_v34  ;;  %v6849_v40 = vsel %vm2198_vm9, %v2214_v41, %v2215_v43  ;;  %v2217_v44 = vrot.slane %v6841_v6, 1  ;;  %v1176_v21 = vrot.slane %v1174_v28, 7  ;;  %v1363_v60 = vld [vmem:[#allocation2 + $0xa4] sm:$0x1]  ;;  %v5929_v3 = vld [vmem:[#allocation9 + $0x38] sm:$0xff]  }
 0x1c3   : > { %v1157_v26 = vshrl.u32 %v4848_v0, 16  ;;  %v1160_v27 = vshll.u32 %v4848_v0, 16  ;;  %v1182_v29 = vshrl.u32 %v4851_v55, 16  ;;  %5385 = vmatprep.mubr.bf16.mxu0 %v6849_v40  ;;  %v1185_v38 = vshll.u32 %v4851_v55, 16  ;;  %v6021_v6 = vld [vmem:[%s7617_s2] ss:$0 sm:$0xff] }
 0x1c4   : > { %v1165_v23 = vshrl.u32 %v4849_v19, 16  ;;  %v1168_v45 = vshll.u32 %v4849_v19, 16  ;;  %v6854_v47 = vsel %vm1747_vm10, %v1790_v20, %v1794_v36  ;;  %v1179_v35 = vor.u32 %v1177_v16, %v1176_v21  ;;  %5030 = vmatpush3.bf16.msra.mxu0 %v5920_v9  ;;  %v5887_v32 = vld [vmem:[#allocation2 + $0x38] ss:$0 sps:$4 sm:$0x11]  }
 0x1c5   : > { %v1180_v57 = vrot.slane %v1176_v21, 4  ;;  %v1159_v54 = vrot.slane %v1157_v26, 7  ;;  %v1184_v39 = vrot.slane %v1182_v29, 7  ;;  %2675 = vmatprep.mubr.bf16.mxu1 %v6854_v47  ;;  %v2218_v5 = vrot.slane %v5883_v46, 1  ;;  %5031 = vmatprep.subr.bf16.mxu0 %v5926_v14  ;;  %v6881_v28 = vld [vmem:[#allocation2 + $0x60] sm:$0xfe]  }
 0x1c6   : > { %v1167_v4 = vrot.slane %v1165_v23, 7  ;;  %v816_v8 = vadd.f32 %v6021_v6, %v6700_v50  ;;  %v808_v10 = vadd.f32 %v6021_v6, %v6706_v58  ;;  %2676 = vmatmul.mubr.bf16.gmra.mrb[24].mxu1 %v6856_v48  ;;  %v1367_v34 = vsel %vm6622_vm7, %v1179_v35, %v1366_v18  ;;  %v6874_v50 = vld [vmem:[#allocation2 + $0x54] sm:$0xfe]   ;;  %v5892_v23 = vld [vmem:[#allocation2 + $0x68] ss:$0 sps:$4 sm:$0x11]  }
 0x1c7   : > { %v1162_v30 = vor.u32 %v1160_v27, %v1159_v54  ;;  %v1163_v61 = vrot.slane %v1159_v54, 4  ;;  %v1187_v17 = vor.u32 %v1185_v38, %v1184_v39  ;;  %1368 = vst [vmem:[#allocation2 + $0xa8] sm:$0xf] %v1367_v34  ;;  %v1189_v33 = vrot.slane %v1184_v39, 4  ;;  %v1373_v35 = vld [vmem:[#allocation2 + $0xb4] sm:$0xf] }
 0x1c8   : > { %v1170_v12 = vor.u32 %v1168_v45, %v1167_v4  ;;  %v1172_v41 = vrot.slane %v1167_v4, 4  ;;  %v6872_v13 = vsel %vm2198_vm9, %v2217_v44, %v2218_v5  ;;  %v852_v36 = vmax.f32 %v816_v8, 0.0  ;;  %5032 = vmatpush3.bf16.msra.mxu0 %v5929_v3  ;;  %v5889_v44 = vld [vmem:[#allocation2 + $0x5c] ss:$0 sps:$4 sm:$0x11]  }
 0x1c9   : > { %v1360_v58 = vsel %vm6622_vm7, %v1162_v30, %v1359_v24  ;;  %v1188_v15 = vsel %vm6633_vm8, %v1180_v57, %v1187_v17  ;;  %5386 = vmatmul.mubr.bf16.gmra.mrb[24].mxu0 %v6872_v13  ;;  %v850_v43 = vmax.f32 %v808_v10, 0.0  ;;  %v1371_v16 = vsel %vm6506_vm2, %v1189_v33, %v1370_v53  ;;  %5409 = vmatprep.subr.bf16.mxu0 %v6861_v56  ;;  %v1380_v45 = vld [vmem:[#allocation2 + $0xc0] sm:$0xf]  ;;  %v5894_v53 = vld [vmem:[#allocation2 + $0x6c] sm:$0xfe]  }
 0x1ca   : > { %1361 = vst [vmem:[#allocation2 + $0x9c] sm:$0xf] %v1360_v58  ;;  %1369 = vst [vmem:[#allocation2 + $0xac] sm:$0xf] %v1188_v15  ;;  %v1171_v0 = vsel %vm6633_vm8, %v1163_v61, %v1170_v12  ;;  %v1364_v55 = vsel %vm6506_vm2, %v1172_v41, %v1363_v60  ;;  %v819_v46 = vadd.f32 %v6021_v6, %v6712_v62  ;;  %v1797_v20 = vshrl.u32 %v6859_v63, 16  ;;  %v5897_v30 = vld [vmem:[#allocation2 + $0x3c] sm:$0xff]  }
 0x1cb   : > { %1372 = vst [vmem:[#allocation2 + $0xb0] sm:$0x1] %v1371_v16  ;;  %1362 = vst [vmem:[#allocation2 + $0xa0] sm:$0xf] %v1171_v0  ;;  %v4854_v9 = vpack.c.bf16 %v852_v36, %v852_v36  ;;  %v4852_v18 = vpack.c.bf16 %v850_v43, %v850_v43  ;;  %v811_v19 = vadd.f32 %v6021_v6, %v6717_v11  ;;  %v1799_v21 = vshll.u32 %v6859_v63, 16  ;;  %v6899_v43 = vld [vmem:[#allocation2 + $0x30] sm:$0xff]  }
 0x1cc   : > { %1365 = vst [vmem:[#allocation2 + $0xa4] sm:$0x1] %v1364_v55  ;;  %v853_v14 = vmax.f32 %v819_v46, 0.0  ;;  %v1804_v26 = vshll.u32 %v5887_v32, 16  ;;  %v2220_v27 = vrot.slane %v6874_v50, 1  ;;  %v2221_v4 = vrot.slane %v5889_v44, 1 }
 0x1cd   : > { %v1208_v62 = vshrl.u32 %v4854_v9, 16  ;;  %v1211_v29 = vshll.u32 %v4854_v9, 16  ;;  %v1191_v24 = vshrl.u32 %v4852_v18, 16  ;;  %v1194_v38 = vshll.u32 %v4852_v18, 16  ;;  %v1384_v12 = vld [vmem:[#allocation2 + $0xc8] sm:$0x1] }
 0x1ce   : > { %v4855_v57 = vpack.c.bf16 %v853_v14, %v853_v14  ;;  %v851_v11 = vmax.f32 %v811_v19, 0.0  ;;  %v1801_v54 = vrot.slane %v1799_v21, 1  ;;  %v1806_v39 = vrot.slane %v1804_v26, 1  ;;  %v5895_v34 = vld [vmem:[#allocation2 + $0x74] ss:$0 sps:$4 sm:$0x11]  }
 0x1cf   : > { %v1210_v60 = vrot.slane %v1208_v62, 7  ;;  %v1193_v3 = vrot.slane %v1191_v24, 7  ;;  %v2223_v63 = vrot.slane %v6881_v28, 1  ;;  %v5898_v41 = vld [vmem:[#allocation2 + $0x44] ss:$0 sps:$4 sm:$0x11]   ;;  %v6909_v46 = vsel %vm2198_vm9, %v2220_v27, %v2221_v4 }
 0x1d0   : > { %v1216_v5 = vshrl.u32 %v4855_v57, 16  ;;  %v1219_v6 = vshll.u32 %v4855_v57, 16  ;;  %v4853_v8 = vpack.c.bf16 %v851_v11, %v851_v11  ;;  %v1802_v10 = vor.u32 %v1801_v54, %v1797_v20  ;;  %v6901_v28 = vld [vmem:[#allocation2 + $0x78] sm:$0xfe]   ;;  %v5903_v16 = vld [vmem:[#allocation2 + $0x84] sm:$0xfe]   ;;  %5389 = vmatprep.mubr.bf16.mxu0 %v6909_v46 }
 0x1d1   : > { %v1213_v61 = vor.u32 %v1211_v29, %v1210_v60  ;;  %v1214_v17 = vrot.slane %v1210_v60, 4  ;;  %v1196_v32 = vor.u32 %v1194_v38, %v1193_v3  ;;  %v1197_v33 = vrot.slane %v1193_v3, 4  ;;  %v5901_v18 = vld [vmem:[#allocation2 + $0x80] ss:$0 sps:$4 sm:$0x11]   ;;  %v5915_v60 = vld [vmem:[#allocation2 + $0x54] sm:$0xff]  }
 0x1d2   : > { %v1218_v50 = vrot.slane %v1216_v5, 7  ;;  %v1199_v58 = vshrl.u32 %v4853_v8, 16  ;;  %v1202_v15 = vshll.u32 %v4853_v8, 16  ;;  %v6897_v36 = vsel %vm1747_vm10, %v1802_v10, %v1806_v39  ;;  %v5904_v19 = vld [vmem:[#allocation2 + $0x8c] ss:$0 sps:$4 sm:$0x11]  }
 0x1d3   : > { %v1381_v0 = vsel %vm6622_vm7, %v1213_v61, %v1380_v45  ;;  %v1374_v55 = vsel %vm6622_vm7, %v1196_v32, %v1373_v35  ;;  %2683 = vmatprep.mubr.bf16.mxu1 %v6897_v36  ;;  %v2224_v9 = vrot.slane %v5892_v23, 1  ;;  %v2226_v21 = vrot.slane %v5894_v53, 1  ;;  %v1377_v26 = vld [vmem:[#allocation2 + $0xbc] sm:$0x1]  ;;  %v5906_v35 = vld [vmem:[#allocation2 + $0x48] sm:$0xff]   ;;  %v5964_v32 = vld [vmem:[#allocation9 + $0x198] sm:$0xff]  }
 0x1d4   : > { %1382 = vst [vmem:[#allocation2 + $0xc0] sm:$0xf] %v1381_v0  ;;  %1375 = vst [vmem:[#allocation2 + $0xb4] sm:$0xf] %v1374_v55  ;;  %v1221_v20 = vor.u32 %v1219_v6, %v1218_v50  ;;  %v1223_v44 = vrot.slane %v1218_v50, 4  ;;  %v1201_v14 = vrot.slane %v1199_v58, 7  ;;  %2684 = vmatmul.mubr.bf16.gmra.mrb[28].mxu1 %v6899_v43 }
 0x1d5   : > { %v6914_v62 = vsel %vm2198_vm9, %v2223_v63, %v2224_v9  ;;  %v2227_v27 = vrot.slane %v5895_v34, 1  ;;  %v1811_v29 = vshll.u32 %v5897_v30, 16  ;;  %v1809_v11 = vshrl.u32 %v5897_v30, 16  ;;  %v6924_v53 = vld [vmem:[#allocation2 + $0x90] sm:$0xfe]   ;;  %v6932_v61 = vld [vmem:[#allocation2 + $0x3c] sm:$0xff]  }
 0x1d6   : > { %v1222_v24 = vsel %vm6633_vm8, %v1214_v17, %v1221_v20  ;;  %v1385_v38 = vsel %vm6506_vm2, %v1223_v44, %v1384_v12  ;;  %v1204_v23 = vor.u32 %v1202_v15, %v1201_v14  ;;  %v1206_v45 = vrot.slane %v1201_v14, 4  ;;  %5390 = vmatmul.mubr.bf16.gmra.mrb[28].mxu0 %v6914_v62  ;;  %v5961_v30 = vld [vmem:[#allocation9 + $0x1d8] sm:$0xff]   ;;  %v5910_v12 = vld [vmem:[#allocation2 + $0x98] ss:$0 sps:$4 sm:$0x11]  }
 0x1d7   : > { %1383 = vst [vmem:[#allocation2 + $0xc4] sm:$0xf] %v1222_v24  ;;  %1386 = vst [vmem:[#allocation2 + $0xc8] sm:$0x1] %v1385_v38  ;;  %v6922_v57 = vsel %vm2198_vm9, %v2226_v21, %v2227_v27  ;;  %v1813_v54 = vrot.slane %v1811_v29, 1  ;;  %v1816_v39 = vshll.u32 %v5898_v41, 16  ;;  %5159 = vmatprep.subr.bf16.mxu1 %v5961_v30 }
 0x1d8   : > { %v1205_v3 = vsel %vm6633_vm8, %v1197_v33, %v1204_v23  ;;  %v1378_v4 = vsel %vm6506_vm2, %v1206_v45, %v1377_v26  ;;  %5393 = vmatprep.mubr.bf16.mxu0 %v6922_v57  ;;  %v2229_v63 = vrot.slane %v6901_v28, 1  ;;  %v2232_v5 = vrot.slane %v5903_v16, 1  ;;  %v5913_v41 = vld [vmem:[#allocation2 + $0xa4] ss:$0 sps:$4 sm:$0x11]   ;;  %5160 = vmatpush3.bf16.msra.mxu1 %v5964_v32 }
 0x1d9   : > { %1376 = vst [vmem:[#allocation2 + $0xb8] sm:$0xf] %v1205_v3  ;;  %1379 = vst [vmem:[#allocation2 + $0xbc] sm:$0x1] %v1378_v4  ;;  %v1814_v6 = vor.u32 %v1813_v54, %v1809_v11  ;;  %v1818_v8 = vrot.slane %v1816_v39, 1  ;;  %v2230_v10 = vrot.slane %v5901_v18, 1 }
 0x1da   : > { %v2233_v34 = vrot.slane %v5904_v19, 1  ;;  %v1823_v17 = vshll.u32 %v5906_v35, 16  ;;  %v1828_v52 = vshll.u32 %v5907_v37, 16  ;;  %v5916_v50 = vld [vmem:[#allocation2 + $0x5c] ss:$0 sps:$4 sm:$0x11]  }
 0x1db   : > { %v6935_v33 = vsel %vm1747_vm10, %v1814_v6, %v1818_v8  ;;  %v1821_v15 = vshrl.u32 %v5906_v35, 16  ;;  %v5912_v16 = vld [vmem:[#allocation2 + $0x9c] sm:$0xfe]   ;;  %v6942_v0 = vsel %vm2198_vm9, %v2229_v63, %v2230_v10  ;;  %v2235_v55 = vrot.slane %v6924_v53, 1  ;;  %v5918_v21 = vld [vmem:[#allocation2 + $0xa8] sm:$0xfe]  }
 0x1dc   : > { %2691 = vmatprep.mubr.bf16.mxu1 %v6935_v33  ;;  %v6939_v58 = vsel %vm2198_vm9, %v2232_v5, %v2233_v34  ;;  %v1825_v28 = vrot.slane %v1823_v17, 1  ;;  %v1835_v9 = vshll.u32 %v5915_v60, 16  ;;  %v5924_v18 = vld [vmem:[#allocation2 + $0x60] sm:$0xff]   ;;  %v5967_v19 = vld [vmem:[#allocation9 + $0x1e0] sm:$0xff]   ;;  %v1830_v44 = vrot.slane %v1828_v52, 1  ;;  %v6952_v54 = vld [vmem:[#allocation2 + $0x48] sm:$0xff]  }
 0x1dd   : > { %2692 = vmatmul.mubr.bf16.gmra.mrb[32].mxu1 %v6932_v61  ;;  %v1833_v14 = vshrl.u32 %v5915_v60, 16  ;;  %v5919_v37 = vld [vmem:[#allocation2 + $0xb0] ss:$0 sps:$4 sm:$0x11]   ;;  %v1840_v27 = vshll.u32 %v5916_v50, 16  ;;  %5161 = vmatprep.subr.bf16.mxu1 %v5967_v19  ;;  %v2238_v24 = vrot.slane %v5912_v16, 1 }
 0x1de   : > { %5394 = vmatmul.mubr.bf16.gmra.mrb[32].mxu0 %v6942_v0  ;;  %v1826_v20 = vor.u32 %v1825_v28, %v1821_v15  ;;  %v1837_v26 = vrot.slane %v1835_v9, 1  ;;  %v2239_v38 = vrot.slane %v5913_v41, 1  ;;  %v2236_v23 = vrot.slane %v5910_v12, 1  ;;  %v352_v53 = vld [vmem:[#allocation2] sm:$0x1]  ;;  %v5932_v8 = vld [vmem:[#allocation2 + $0x6c] sm:$0xff]  }
 0x1df   : > { %5397 = vmatprep.mubr.bf16.mxu0 %v6939_v58  ;;  %v1847_v39 = vshll.u32 %v5924_v18, 16  ;;  %v408_v60 = vld [vmem:[#allocation2 + $0x8] sm:$0x1]  ;;  %v1842_v3 = vrot.slane %v1840_v27, 1  ;;  %v2241_v5 = vrot.slane %v5918_v21, 1  ;;  %v2242_v6 = vrot.slane %v5919_v37, 1 }
 0x1e0   : > { %v6949_v29 = vsel %vm1747_vm10, %v1826_v20, %v1830_v44  ;;  %v1838_v45 = vor.u32 %v1837_v26, %v1833_v14  ;;  %v5921_v35 = vld [vmem:[#allocation2 + $0xb4] sm:$0xfe]   ;;  %v5922_v11 = vld [vmem:[#allocation2 + $0xbc] ss:$0 sps:$4 sm:$0x11]   ;;  %v6955_v63 = vsel %vm2198_vm9, %v2238_v24, %v2239_v38  ;;  %v6958_v10 = vsel %vm2198_vm9, %v2235_v55, %v2236_v23 }
 0x1e1   : > { %2699 = vmatprep.mubr.bf16.mxu1 %v6949_v29  ;;  %v5925_v4 = vld [vmem:[#allocation2 + $0x68] ss:$0 sps:$4 sm:$0x11]   ;;  %v1845_v30 = vshrl.u32 %v5924_v18, 16  ;;  %v1849_v17 = vrot.slane %v1847_v39, 1  ;;  %v2244_v52 = vrot.slane %v5921_v35, 1  ;;  %v6974_v20 = vsel %vm2198_vm9, %v2241_v5, %v2242_v6 }
 0x1e2   : > { %v6962_v34 = vsel %vm1747_vm10, %v1838_v45, %v1842_v3  ;;  %v2245_v32 = vrot.slane %v5922_v11, 1  ;;  %v1852_v12 = vshll.u32 %v5925_v4, 16  ;;  %v5933_v41 = vld [vmem:[#allocation2 + $0x74] ss:$0 sps:$4 sm:$0x11]   ;;  %v353_v50 = vsel %vm6506_vm2, 0, %v352_v53 }
 0x1e3   : > { %v409_v15 = vsel %vm6528_vm4, 0, %v408_v60  ;;  %354 = vst [vmem:[#allocation2] sm:$0x1] %v353_v50  ;;  %v1850_v28 = vor.u32 %v1849_v17, %v1845_v30  ;;  %v1859_v16 = vshll.u32 %v5932_v8, 16  ;;  %v5927_v55 = vld [vmem:[#allocation2 + $0xc0] sm:$0xfe]  }
 0x1e4   : > { %410 = vst [vmem:[#allocation2 + $0x8] sm:$0x1] %v409_v15  ;;  %v5928_v9 = vld [vmem:[#allocation2 + $0xc8] ss:$0 sps:$4 sm:$0x11]   ;;  %v6971_v18 = vld [vmem:[#allocation2 + $0x54] sm:$0xff]   ;;  %v6977_v44 = vsel %vm2198_vm9, %v2244_v52, %v2245_v32 }
 0x1e5   : > { %2700 = vmatmul.mubr.bf16.gmra.mrb[36].mxu1 %v6952_v54  ;;  %v1854_v19 = vrot.slane %v1852_v12, 1  ;;  %v5940_v14 = vld [vmem:[#allocation2 + $0x78] sm:$0xff]   ;;  %v1857_v37 = vshrl.u32 %v5932_v8, 16  ;;  %v1861_v26 = vrot.slane %v1859_v16, 1  ;;  %v1864_v27 = vshll.u32 %v5933_v41, 16  ;;  %v6986_v5 = vld [vmem:[#allocation2 + $0x60] sm:$0xff]  }
 0x1e6   : > { %5398 = vmatmul.mubr.bf16.gmra.mrb[36].mxu0 %v6958_v10  ;;  %2707 = vmatprep.mubr.bf16.mxu1 %v6962_v34  ;;  %v2247_v24 = vrot.slane %v5927_v55, 1  ;;  %v2248_v38 = vrot.slane %v5928_v9, 1  ;;  %v5941_v45 = vld [vmem:[#allocation2 + $0x80] ss:$0 sps:$4 sm:$0x11]   ;;  %v1871_v11 = vshll.u32 %v5940_v14, 16 }
 0x1e7   : > { %5401 = vmatprep.mubr.bf16.mxu0 %v6955_v63  ;;  %v6981_v21 = vsel %vm1747_vm10, %v1850_v28, %v1854_v19  ;;  %v1862_v39 = vor.u32 %v1861_v26, %v1857_v37  ;;  %v1866_v53 = vrot.slane %v1864_v27, 1  ;;  %v5944_v8 = vld [vmem:[#allocation2 + $0x84] sm:$0xff]   ;;  %v1869_v52 = vshrl.u32 %v5940_v14, 16  ;;  %v5945_v15 = vld [vmem:[#allocation2 + $0x8c] ss:$0 sps:$4 sm:$0x11]  }
 0x1e8   : > { %v6989_v30 = vsel %vm2198_vm9, %v2247_v24, %v2248_v38  ;;  %v1873_v41 = vrot.slane %v1871_v11, 1  ;;  %v1876_v50 = vshll.u32 %v5941_v45, 16  ;;  %v1883_v9 = vshll.u32 %v5944_v8, 16  ;;  %v6998_v14 = vld [vmem:[#allocation2 + $0x6c] sm:$0xff]   ;;  %v5947_v26 = vld [vmem:[#allocation9 + $0x88] sm:$0xff]   ;;  %v5970_v45 = vld [vmem:[#allocation9 + $0x1a0] sm:$0xff]  }
 0x1e9   : > { %v6993_v32 = vsel %vm1747_vm10, %v1862_v39, %v1866_v53  ;;  %v1888_v37 = vshll.u32 %v5945_v15, 16  ;;  %v5949_v27 = vld [vmem:[#allocation2 + $0x90] sm:$0xff]   ;;  %v1881_v38 = vshrl.u32 %v5944_v8, 16  ;;  %5162 = vmatpush3.bf16.msra.mxu1 %v5970_v45  ;;  %v5971_v53 = vld [vmem:[#allocation9 + $0x1e8] sm:$0xff]   ;;  %v7007_v8 = vld [vmem:[#allocation2 + $0x78] sm:$0xff]  }
 0x1ea   : > { %v5935_v23 = vld [vmem:[#allocation2] sm:$0xff]   ;;  %v1874_v16 = vor.u32 %v1873_v41, %v1869_v52  ;;  %v1878_v55 = vrot.slane %v1876_v50, 1  ;;  %v1895_v39 = vshll.u32 %v5949_v27, 16  ;;  %5163 = vmatprep.subr.bf16.mxu1 %v5971_v53  ;;  %v1893_v52 = vshrl.u32 %v5949_v27, 16  ;;  %v5977_v15 = vld [vmem:[#allocation9 + $0x1f8] sm:$0xff]  }
 0x1eb   : > { %v5936_v35 = vld [vmem:[#allocation2 + $0x8] ss:$0 sps:$4 sm:$0x11]   ;;  %v1749_v60 = vshrl.u32 %v5935_v23, 16  ;;  %v1751_v3 = vshll.u32 %v5935_v23, 16  ;;  %v5938_v19 = vld [vmem:[#allocation2] sm:$0xff]  }
 0x1ec   : > { %v1756_v4 = vshll.u32 %v5936_v35, 16  ;;  %v7002_v24 = vsel %vm1747_vm10, %v1874_v16, %v1878_v55  ;;  %v1885_v23 = vrot.slane %v1883_v9, 1  ;;  %v5956_v35 = vld [vmem:[#allocation9 + $0x90] sm:$0xff]   ;;  %v1890_v11 = vrot.slane %v1888_v37, 1  ;;  %v5953_v50 = vld [vmem:[#allocation2 + $0x9c] sm:$0xff]   ;;  %v5978_v16 = vld [vmem:[#allocation9 + $0x1b8] sm:$0xff]  }
 0x1ed   : > { %2708 = vmatmul.mubr.bf16.gmra.mrb[40].mxu1 %v6971_v18  ;;  %v1753_v6 = vrot.slane %v1751_v3, 1  ;;  %v1907_v37 = vshll.u32 %v5953_v50, 16  ;;  %v5983_v31 = vld [vmem:[#allocation2 + $0x8] ss:$0 sps:$4 sm:$0x11]  }
 0x1ee   : > { %5402 = vmatmul.mubr.bf16.gmra.mrb[40].mxu0 %v6974_v20  ;;  %2715 = vmatprep.mubr.bf16.mxu1 %v6981_v21  ;;  %v1758_v17 = vrot.slane %v1756_v4, 1  ;;  %v1886_v3 = vor.u32 %v1885_v23, %v1881_v38  ;;  %v5950_v4 = vld [vmem:[#allocation2 + $0x98] ss:$0 sps:$4 sm:$0x11]   ;;  %v1905_v38 = vshrl.u32 %v5953_v50, 16 }
 0x1ef   : > { %5405 = vmatprep.mubr.bf16.mxu0 %v6977_v44  ;;  %v1754_v12 = vor.u32 %v1753_v6, %v1749_v60  ;;  %v5972_v60 = vld [vmem:[#allocation9 + $0x1a8] sm:$0xff]   ;;  %v5974_v6 = vld [vmem:[#allocation9 + $0x1f0] sm:$0xff]   ;;  %v1900_v41 = vshll.u32 %v5950_v4, 16  ;;  %v1909_v23 = vrot.slane %v1907_v37, 1  ;;  %v7025_v4 = vld [vmem:[#allocation2 + $0x90] sm:$0xff]  }
 0x1f0   : > { %5164 = vmatpush3.bf16.msra.mxu1 %v5972_v60  ;;  %v5959_v60 = vld [vmem:[#allocation2 + $0xb0] ss:$0 sps:$4 sm:$0x11]  }
 0x1f1   : > { %v1759_v28 = vsel %vm1747_vm10, %v1754_v12, %v1758_v17  ;;  %v5965_v17 = vld [vmem:[#allocation9 + $0x98] sm:$0xff]   ;;  %v1897_v12 = vrot.slane %v1895_v39, 1  ;;  %5165 = vmatprep.subr.bf16.mxu1 %v5974_v6  ;;  %v1902_v9 = vrot.slane %v1900_v41, 1  ;;  %v1910_v39 = vor.u32 %v1909_v23, %v1905_v38  ;;  %v7034_v41 = vld [vmem:[#allocation9 + $0x200] sm:$0xff]   ;;  %v5968_v38 = vld [vmem:[#allocation2 + $0xc0] sm:$0xff]  }
 0x1f2   : > { %v5981_v6 = vld [vmem:[#allocation9 + $0xb8] sm:$0xff]  }
 0x1f3   : > { %v1898_v55 = vor.u32 %v1897_v12, %v1893_v52  ;;  %v1924_v52 = vshll.u32 %v5959_v60, 16  ;;  %v5962_v12 = vld [vmem:[#allocation2 + $0xb4] sm:$0xff]   ;;  %v1941_v60 = vshrl.u32 %v5968_v38, 16 }
 0x1f5   : > { %2716 = vmatmul.mubr.bf16.gmra.mrb[44].mxu1 %v6986_v5  ;;  %v7020_v27 = vsel %vm1747_vm10, %v1898_v55, %v1902_v9  ;;  %v7036_v55 = vld [vmem:[#allocation2 + $0x9c] sm:$0xff]  }
 0x1f6   : > { %5406 = vmatmul.mubr.bf16.gmra.mrb[44].mxu0 %v6989_v30  ;;  %2723 = vmatprep.mubr.bf16.mxu1 %v6993_v32 }
 0x1f7   : > { %3125 = vmatprep.mubr.bf16.mxu0 %v1759_v28  ;;  %v5976_v28 = vld [vmem:[#allocation9 + $0xa0] sm:$0xff]  }
 0x1fd   : > { %2724 = vmatmul.mubr.bf16.gmra.mrb[48].mxu1 %v6998_v14 }
 0x1fe   : > { %3126 = vmatmul.mubr.bf16.vlgmr.msra.gmra.mrb[48].mxu0 %v5938_v19  ;;  %2731 = vmatprep.mubr.bf16.mxu1 %v7002_v24  ;;  %v5954_v19 = vld [vmem:[#allocation2 + $0xa4] ss:$0 sps:$4 sm:$0x11]  }
 0x1ff   : > { %5410 = vmatpush3.bf16.msra.mxu0 %v6861_v56  ;;  %3133 = vmatprep.mubr.bf16.mxu0 %v6800_v42  ;;  %v5975_v56 = vld [vmem:[#allocation9 + $0x1b0] sm:$0xff]   ;;  %v7011_v42 = vsel %vm1747_vm10, %v1886_v3, %v1890_v11  ;;  %v1912_v45 = vshll.u32 %v5954_v19, 16  ;;  %v1929_v19 = vshrl.u32 %v5962_v12, 16 }
 0x200   : > { %5411 = vmatprep.subr.bf16.mxu0 %v5947_v26  ;;  %5166 = vmatpush3.bf16.msra.mxu1 %v5975_v56  ;;  %v5980_v11 = vld [vmem:[#allocation9 + $0xb0] sm:$0xff]  }
 0x201   : > { %5167 = vmatprep.subr.bf16.mxu1 %v5977_v15  ;;  %v1914_v53 = vrot.slane %v1912_v45, 1  ;;  %v1926_v15 = vrot.slane %v1924_v52, 1  ;;  %v7055_v52 = vld [vmem:[#allocation2 + $0xb4] sm:$0xff]  }
 0x203   : > { %5412 = vmatpush3.bf16.msra.mxu0 %v5947_v26  ;;  %v7016_v26 = vld [vmem:[#allocation2 + $0x84] sm:$0xff]  }
 0x204   : > { %5413 = vmatprep.subr.bf16.mxu0 %v5956_v35  ;;  %5168 = vmatpush3.bf16.msra.mxu1 %v5978_v16  ;;  %v1931_v16 = vshll.u32 %v5962_v12, 16 }
 0x205   : > { %2732 = vmatmul.mubr.bf16.gmra.mrb[52].mxu1 %v7007_v8 }
 0x206   : > { %3134 = vmatmul.mubr.bf16.gmra.mrb[52].mxu0 %v6802_v2  ;;  %2739 = vmatprep.mubr.bf16.mxu1 %v7011_v42  ;;  %v5979_v2 = vld [vmem:[#allocation9 + $0xa8] sm:$0xff]   ;;  %v1933_v37 = vrot.slane %v1931_v16, 1 }
 0x207   : > { %3141 = vmatprep.mubr.bf16.mxu0 %v6817_v49  ;;  %5414 = vmatpush3.bf16.msra.mxu0 %v5956_v35  ;;  %v5958_v35 = vld [vmem:[#allocation2 + $0xa8] sm:$0xff]  }
 0x208   : > { %5415 = vmatprep.subr.bf16.mxu0 %v5965_v17  ;;  %v1919_v3 = vshll.u32 %v5958_v35, 16  ;;  %v1934_v23 = vor.u32 %v1933_v37, %v1929_v19  ;;  %v6022_v37 = vld [vmem:[#allocation2 + $0x18] sm:$0xff]  }
 0x20a   : > { %v1921_v56 = vrot.slane %v1919_v3, 1 }
 0x20b   : > { %5416 = vmatpush3.bf16.msra.mxu0 %v5965_v17  ;;  %v1917_v17 = vshrl.u32 %v5958_v35, 16  ;;  %v5969_v35 = vld [vmem:[#allocation2 + $0xc8] ss:$0 sps:$4 sm:$0x11]  }
 0x20c   : > { %5417 = vmatprep.subr.bf16.mxu0 %v5976_v28 }
 0x20d   : > { %2740 = vmatmul.mubr.bf16.gmra.mrb[56].mxu1 %v7016_v26  ;;  %v1922_v50 = vor.u32 %v1921_v56, %v1917_v17 }
 0x20e   : > { %3142 = vmatmul.mubr.bf16.gmra.mrb[56].mxu0 %v6814_v22  ;;  %2747 = vmatprep.mubr.bf16.mxu1 %v7020_v27  ;;  %v7029_v22 = vsel %vm1747_vm10, %v1910_v39, %v1914_v53  ;;  %v7046_v39 = vld [vmem:[#allocation2 + $0xa8] sm:$0xff]  }
 0x20f   : > { %3149 = vmatprep.mubr.bf16.mxu0 %v6854_v47  ;;  %5418 = vmatpush3.bf16.msra.mxu0 %v5976_v28  ;;  %v5963_v28 = vld [vmem:[#allocation2 + $0xbc] ss:$0 sps:$4 sm:$0x11]   ;;  %v7041_v9 = vsel %vm1747_vm10, %v1922_v50, %v1926_v15  ;;  %v7064_v50 = vld [vmem:[#allocation2 + $0xc0] sm:$0xff]   ;;  %v403_v15 = vld [vmem:[#allocation2 + $0xcc] sm:$0x1] }
 0x210   : > { %5419 = vmatprep.subr.bf16.mxu0 %v5979_v2  ;;  %v404_v16 = vsel %vm6506_vm2, 0, %v403_v15 }
 0x211   : > { %405 = vst [vmem:[#allocation2 + $0xcc] sm:$0x1] %v404_v16 }
 0x213   : > { %5420 = vmatpush3.bf16.msra.mxu0 %v5979_v2  ;;  %v1936_v2 = vshll.u32 %v5963_v28, 16  ;;  %v459_v28 = vld [vmem:[#allocation2 + $0xd4] sm:$0x1] }
 0x214   : > { %5421 = vmatprep.subr.bf16.mxu0 %v5980_v11  ;;  %v460_v19 = vsel %vm6528_vm4, 0, %v459_v28 }
 0x215   : > { %2748 = vmatmul.mubr.bf16.gmra.mrb[60].mxu1 %v7025_v4  ;;  %v1938_v45 = vrot.slane %v1936_v2, 1  ;;  %461 = vst [vmem:[#allocation2 + $0xd4] sm:$0x1] %v460_v19 }
 0x216   : > { %3150 = vmatmul.mubr.bf16.gmra.mrb[60].mxu0 %v6856_v48  ;;  %2755 = vmatprep.mubr.bf16.mxu1 %v7029_v22 }
 0x217   : > { %3157 = vmatprep.mubr.bf16.mxu0 %v6897_v36  ;;  %5422 = vmatpush3.bf16.msra.mxu0 %v5980_v11  ;;  %v1943_v11 = vshll.u32 %v5968_v38, 16  ;;  %v7050_v53 = vsel %vm1747_vm10, %v1934_v23, %v1938_v45 }
 0x218   : > { %5423 = vmatprep.subr.bf16.mxu0 %v5981_v6  ;;  %v5992_v23 = vld [vmem:[#allocation2 + $0xcc] sm:$0xff]  }
 0x219   : > { %v1945_v3 = vrot.slane %v1943_v11, 1  ;;  %v5997_v11 = vld [vmem:[#allocation10] sm:$0xff]  }
 0x21a   : > { %5505 = vmatprep.subr.bf16.mxu1 %v5997_v11 }
 0x21b   : > { %5424 = vmatpush3.bf16.msra.mxu0 %v5981_v6  ;;  %v1948_v6 = vshll.u32 %v5969_v35, 16  ;;  %v1946_v17 = vor.u32 %v1945_v3, %v1941_v60  ;;  %v1955_v35 = vshll.u32 %v5992_v23, 16  ;;  %v1953_v60 = vshrl.u32 %v5992_v23, 16 }
 0x21c   : > { %5457 = vmatprep.subr.bf16.mxu0 %v7034_v41 }
 0x21d   : > { %2756 = vmatmul.mubr.bf16.gmra.mrb[64].mxu1 %v7036_v55  ;;  %v1950_v56 = vrot.slane %v1948_v6, 1  ;;  %v1957_v3 = vrot.slane %v1955_v35, 1 }
 0x21e   : > { %3158 = vmatmul.mubr.bf16.gmra.mrb[64].mxu0 %v6899_v43  ;;  %2763 = vmatprep.mubr.bf16.mxu1 %v7041_v9 }
 0x21f   : > { %3165 = vmatprep.mubr.bf16.mxu0 %v6935_v33  ;;  %v7059_v12 = vsel %vm1747_vm10, %v1946_v17, %v1950_v56 }
 0x225   : > { %2764 = vmatmul.mubr.bf16.gmra.mrb[68].mxu1 %v7046_v39 }
 0x226   : > { %3166 = vmatmul.mubr.bf16.gmra.mrb[68].mxu0 %v6932_v61  ;;  %2771 = vmatprep.mubr.bf16.mxu1 %v7050_v53 }
 0x227   : > { %3173 = vmatprep.mubr.bf16.mxu0 %v6949_v29 }
 0x22d   : > { %2772 = vmatmul.mubr.bf16.gmra.mrb[72].mxu1 %v7055_v52 }
 0x22e   : > { %3174 = vmatmul.mubr.bf16.gmra.mrb[72].mxu0 %v6952_v54  ;;  %2779 = vmatprep.mubr.bf16.mxu1 %v7059_v12 }
 0x22f   : > { %3181 = vmatprep.mubr.bf16.mxu0 %v6962_v34 }
 0x235   : > { %2780 = vmatmul.mubr.bf16.gmra.mrb[76].mxu1 %v7064_v50 }
 0x236   : > { %3182 = vmatmul.mubr.bf16.gmra.mrb[76].mxu0 %v6971_v18  ;;  %3689 = vmatprep.mubr.bf16.mxu1 %v6817_v49  ;;  %v2199_v49 = vrot.slane %v5982_v7, 1 }
 0x237   : > { %3189 = vmatprep.mubr.bf16.mxu0 %v6981_v21 }
 0x23d   : > { %3690 = vmatmul.mubr.bf16.vlgmr.msra.gmra.mrb[80].mxu1 %v6022_v37 }
 0x23e   : > { %3190 = vmatmul.mubr.bf16.gmra.mrb[80].mxu0 %v6986_v5  ;;  %3697 = vmatprep.mubr.bf16.mxu1 %v6854_v47  ;;  %v2200_v47 = vrot.slane %v5983_v31, 1  ;;  %v5994_v31 = vld [vmem:[#allocation2 + $0xcc] sm:$0xff]  }
 0x23f   : > { %3197 = vmatprep.mubr.bf16.mxu0 %v6993_v32  ;;  %5506 = vmatpush3.bf16.msra.mxu1 %v5997_v11 }
 0x245   : > { %3698 = vmatmul.mubr.bf16.gmra.mrb[84].mxu1 %v6856_v48  ;;  %v2201_v48 = vsel %vm2198_vm9, %v2199_v49, %v2200_v47 }
 0x246   : > { %3198 = vmatmul.mubr.bf16.gmra.mrb[84].mxu0 %v6998_v14  ;;  %3705 = vmatprep.mubr.bf16.mxu1 %v6897_v36  ;;  %v5985_v36 = vld [vmem:[#allocation9 + $0x208] sm:$0xff]  }
 0x247   : > { %3205 = vmatprep.mubr.bf16.mxu0 %v7002_v24 }
 0x24d   : > { %3706 = vmatmul.mubr.bf16.gmra.mrb[88].mxu1 %v6899_v43  ;;  %v5986_v43 = vld [vmem:[#allocation9 + $0x210] sm:$0xff]  }
 0x24e   : > { %3206 = vmatmul.mubr.bf16.gmra.mrb[88].mxu0 %v7007_v8  ;;  %3713 = vmatprep.mubr.bf16.mxu1 %v6935_v33 }
 0x24f   : > { %3213 = vmatprep.mubr.bf16.mxu0 %v7011_v42 }
 0x255   : > { %3714 = vmatmul.mubr.bf16.gmra.mrb[92].mxu1 %v6932_v61  ;;  %v5987_v61 = vld [vmem:[#allocation9 + $0x218] sm:$0xff]  }
 0x256   : > { %3214 = vmatmul.mubr.bf16.gmra.mrb[92].mxu0 %v7016_v26  ;;  %3721 = vmatprep.mubr.bf16.mxu1 %v6949_v29 }
 0x257   : > { %3221 = vmatprep.mubr.bf16.mxu0 %v7020_v27 }
 0x25d   : > { %3722 = vmatmul.mubr.bf16.gmra.mrb[96].mxu1 %v6952_v54 }
 0x25e   : > { %3222 = vmatmul.mubr.bf16.gmra.mrb[96].mxu0 %v7025_v4  ;;  %3729 = vmatprep.mubr.bf16.mxu1 %v6962_v34 }
 0x25f   : > { %3229 = vmatprep.mubr.bf16.mxu0 %v7029_v22 }
 0x265   : > { %3730 = vmatmul.mubr.bf16.gmra.mrb[100].mxu1 %v6971_v18 }
 0x266   : > { %3230 = vmatmul.mubr.bf16.gmra.mrb[100].mxu0 %v7036_v55  ;;  %3737 = vmatprep.mubr.bf16.mxu1 %v6981_v21  ;;  %v5989_v21 = vld [vmem:[#allocation9 + $0x228] sm:$0xff]  }
 0x267   : > { %3237 = vmatprep.mubr.bf16.mxu0 %v7041_v9 }
 0x26d   : > { %3738 = vmatmul.mubr.bf16.gmra.mrb[104].mxu1 %v6986_v5 }
 0x26e   : > { %3238 = vmatmul.mubr.bf16.gmra.mrb[104].mxu0 %v7046_v39  ;;  %3745 = vmatprep.mubr.bf16.mxu1 %v6993_v32  ;;  %v5990_v32 = vld [vmem:[#allocation9 + $0x230] sm:$0xff]  }
 0x26f   : > { %3245 = vmatprep.mubr.bf16.mxu0 %v7050_v53 }
 0x275   : > { %3746 = vmatmul.mubr.bf16.gmra.mrb[108].mxu1 %v6998_v14 }
 0x276   : > { %3246 = vmatmul.mubr.bf16.gmra.mrb[108].mxu0 %v7055_v52  ;;  %3753 = vmatprep.mubr.bf16.mxu1 %v7002_v24 }
 0x277   : > { %5425 = vmatprep.mubr.bf16.mxu0 %v2201_v48 }
 0x27d   : > { %3754 = vmatmul.mubr.bf16.gmra.mrb[112].mxu1 %v7007_v8 }
 0x27e   : > { %5426 = vmatmul.mubr.bf16.vlgmr.msra.gmra.mrb[16].mxu0 %v6754_v59  ;;  %3761 = vmatprep.mubr.bf16.mxu1 %v7011_v42  ;;  %v5988_v59 = vld [vmem:[#allocation9 + $0x220] sm:$0xff]  }
 0x27f   : > { %5458 = vmatpush3.bf16.msra.mxu0 %v7034_v41  ;;  %5429 = vmatprep.mubr.bf16.mxu0 %v6762_v1 }
 0x280   : > { %5459 = vmatprep.subr.bf16.mxu0 %v5985_v36 }
 0x283   : > { %5460 = vmatpush3.bf16.msra.mxu0 %v5985_v36 }
 0x284   : > { %5461 = vmatprep.subr.bf16.mxu0 %v5986_v43 }
 0x285   : > { %3762 = vmatmul.mubr.bf16.gmra.mrb[116].mxu1 %v7016_v26 }
 0x286   : > { %5430 = vmatmul.mubr.bf16.gmra.mrb[20].mxu0 %v6820_v51  ;;  %3769 = vmatprep.mubr.bf16.mxu1 %v7020_v27  ;;  %v5991_v27 = vld [vmem:[#allocation9 + $0x238] sm:$0xff]  }
 0x287   : > { %5433 = vmatprep.mubr.bf16.mxu0 %v6835_v25  ;;  %5462 = vmatpush3.bf16.msra.mxu0 %v5986_v43  ;;  %v4897_v33 = vpop.f32.mrb[16].mxu1 }
 0x288   : > { %5463 = vmatprep.subr.bf16.mxu0 %v5987_v61  ;;  %v4898_v29 = vpop.f32.mrb[17].mxu1 }
 0x289   : > { %v7114_v54 = vadd.f32 %v4898_v29, %v4897_v33  ;;  %v4900_v34 = vpop.f32.mrb[18].mxu1 }
 0x28a   : > { %v4901_v18 = vpop.f32.mrb[19].mxu1 }
 0x28b   : > { %5464 = vmatpush3.bf16.msra.mxu0 %v5987_v61  ;;  %v7117_v5 = vadd.f32 %v4901_v18, %v4900_v34  ;;  %v5999_v34 = vld [vmem:[#allocation10 + $0x10] sm:$0xff]  }
 0x28c   : > { %5465 = vmatprep.subr.bf16.mxu0 %v5988_v59 }
 0x28d   : > { %3770 = vmatmul.mubr.bf16.gmra.mrb[120].mxu1 %v7025_v4 }
 0x28e   : > { %5434 = vmatmul.mubr.bf16.gmra.mrb[24].mxu0 %v6849_v40  ;;  %3777 = vmatprep.mubr.bf16.mxu1 %v7029_v22 }
 0x28f   : > { %5437 = vmatprep.mubr.bf16.mxu0 %v6872_v13  ;;  %5466 = vmatpush3.bf16.msra.mxu0 %v5988_v59  ;;  %v4903_v14 = vpop.f32.mrb[20].mxu1 }
 0x290   : > { %5467 = vmatprep.subr.bf16.mxu0 %v5989_v21  ;;  %v4904_v24 = vpop.f32.mrb[21].mxu1 }
 0x291   : > { %v7122_v8 = vadd.f32 %v4904_v24, %v4903_v14  ;;  %v4906_v42 = vpop.f32.mrb[22].mxu1 }
 0x292   : > { %v4907_v26 = vpop.f32.mrb[23].mxu1 }
 0x293   : > { %5468 = vmatpush3.bf16.msra.mxu0 %v5989_v21  ;;  %v7125_v4 = vadd.f32 %v4907_v26, %v4906_v42 }
 0x294   : > { %5469 = vmatprep.subr.bf16.mxu0 %v5990_v32 }
 0x295   : > { %3778 = vmatmul.mubr.bf16.gmra.mrb[124].mxu1 %v7036_v55 }
 0x296   : > { %5438 = vmatmul.mubr.bf16.gmra.mrb[28].mxu0 %v6909_v46  ;;  %3785 = vmatprep.mubr.bf16.mxu1 %v7041_v9  ;;  %v5993_v9 = vld [vmem:[#allocation2 + $0xd4] ss:$0 sps:$4 sm:$0x11]  }
 0x297   : > { %5441 = vmatprep.mubr.bf16.mxu0 %v6914_v62  ;;  %5470 = vmatpush3.bf16.msra.mxu0 %v5990_v32  ;;  %v1960_v6 = vshll.u32 %v5993_v9, 16 }
 0x298   : > { %5471 = vmatprep.subr.bf16.mxu0 %v5991_v27 }
 0x299   : > { %v4909_v22 = vpop.f32.mrb[24].mxu1  ;;  %v1962_v17 = vrot.slane %v1960_v6, 1 }
 0x29a   : > { %v4910_v41 = vpop.f32.mrb[25].mxu1 }
 0x29b   : > { %v7130_v2 = vadd.f32 %v4910_v41, %v4909_v22  ;;  %v4912_v38 = vpop.f32.mrb[26].mxu1  ;;  %5472 = vmatpush3.bf16.msra.mxu0 %v5991_v27  ;;  %v6000_v41 = vld [vmem:[#allocation10 + $0x18] sm:$0xff]  }
 0x29c   : > { %v4913_v45 = vpop.f32.mrb[27].mxu1 }
 0x29d   : > { %3786 = vmatmul.mubr.bf16.gmra.mrb[128].mxu1 %v7046_v39  ;;  %v7133_v55 = vadd.f32 %v4913_v45, %v4912_v38 }
 0x29e   : > { %5442 = vmatmul.mubr.bf16.gmra.mrb[32].mxu0 %v6922_v57  ;;  %3793 = vmatprep.mubr.bf16.mxu1 %v7050_v53  ;;  %v1958_v53 = vor.u32 %v1957_v3, %v1953_v60 }
 0x29f   : > { %5445 = vmatprep.mubr.bf16.mxu0 %v6942_v0 }
 0x2a0   : > { %v1963_v37 = vsel %vm1747_vm10, %v1958_v53, %v1962_v17  ;;  %v6001_v17 = vld [vmem:[#allocation10 + $0x20] sm:$0xff]  }
 0x2a5   : > { %3794 = vmatmul.mubr.bf16.gmra.mrb[132].mxu1 %v7055_v52  ;;  %v5998_v52 = vld [vmem:[#allocation10 + $0x8] sm:$0xff]  }
 0x2a6   : > { %5446 = vmatmul.mubr.bf16.gmra.mrb[36].mxu0 %v6939_v58  ;;  %3801 = vmatprep.mubr.bf16.mxu1 %v7059_v12 }
 0x2a7   : > { %5449 = vmatprep.mubr.bf16.mxu0 %v6958_v10  ;;  %v4915_v39 = vpop.f32.mrb[28].mxu1  ;;  %5507 = vmatprep.subr.bf16.mxu1 %v5998_v52 }
 0x2a8   : > { %v4916_v56 = vpop.f32.mrb[29].mxu1  ;;  %5508 = vmatpush3.bf16.msra.mxu1 %v5998_v52 }
 0x2a9   : > { %v7142_v15 = vadd.f32 %v4916_v56, %v4915_v39  ;;  %v4918_v28 = vpop.f32.mrb[30].mxu1  ;;  %5509 = vmatprep.subr.bf16.mxu1 %v5999_v34 }
 0x2aa   : > { %v4919_v16 = vpop.f32.mrb[31].mxu1 }
 0x2ab   : > { %v7144_v19 = vadd.f32 %v4919_v16, %v4918_v28 }
 0x2ac   : > { %5510 = vmatpush3.bf16.msra.mxu1 %v5999_v34 }
 0x2ad   : > { %3802 = vmatmul.mubr.bf16.gmra.mrb[136].mxu1 %v7064_v50  ;;  %5511 = vmatprep.subr.bf16.mxu1 %v6000_v41 }
 0x2ae   : > { %5450 = vmatmul.mubr.bf16.gmra.mrb[40].mxu0 %v6955_v63  ;;  %3809 = vmatprep.mubr.bf16.mxu1 %v1963_v37 }
 0x2af   : > { %5453 = vmatprep.mubr.bf16.mxu0 %v6974_v20 }
 0x2b0   : > { %v4921_v12 = vpop.f32.mrb[32].mxu1  ;;  %5512 = vmatpush3.bf16.msra.mxu1 %v6000_v41 }
 0x2b1   : > { %v4922_v7 = vpop.f32.mrb[33].mxu1  ;;  %5513 = vmatprep.subr.bf16.mxu1 %v6001_v17 }
 0x2b2   : > { %v7150_v49 = vadd.f32 %v4922_v7, %v4921_v12  ;;  %v4924_v47 = vpop.f32.mrb[34].mxu1 }
 0x2b3   : > { %v4925_v48 = vpop.f32.mrb[35].mxu1 }
 0x2b4   : > { %v7152_v36 = vadd.f32 %v4925_v48, %v4924_v47  ;;  %5514 = vmatpush3.bf16.msra.mxu1 %v6001_v17 }
 0x2b5   : > { %3810 = vmatmul.mubr.bf16.gmra.mrb[140].mxu1 %v5994_v31 }
 0x2b6   : > { %5454 = vmatmul.mubr.bf16.gmra.mrb[44].mxu0 %v6977_v44 }
 0x2b7   : > { %5473 = vmatprep.mubr.bf16.mxu0 %v6762_v1 }
 0x2b8   : > { %v4927_v50 = vpop.f32.mrb[36].mxu1 }
 0x2b9   : > { %v4928_v43 = vpop.f32.mrb[37].mxu1 }
 0x2ba   : > { %v7156_v61 = vadd.f32 %v4928_v43, %v4927_v50  ;;  %v4930_v59 = vpop.f32.mrb[38].mxu1 }
 0x2bb   : > { %v4931_v33 = vpop.f32.mrb[39].mxu1 }
 0x2bc   : > { %v7158_v29 = vadd.f32 %v4931_v33, %v4930_v59 }
 0x2be   : > { %5474 = vmatmul.mubr.bf16.vlgmr.msra.gmra.mrb[16].mxu0 %v6820_v51 }
 0x2bf   : > { %5477 = vmatprep.mubr.bf16.mxu0 %v6835_v25 }
 0x2c0   : > { %v4933_v18 = vpop.f32.mrb[40].mxu1 }
 0x2c1   : > { %v4934_v21 = vpop.f32.mrb[41].mxu1 }
 0x2c2   : > { %v7162_v32 = vadd.f32 %v4934_v21, %v4933_v18  ;;  %v4936_v14 = vpop.f32.mrb[42].mxu1 }
 0x2c3   : > { %v4937_v1 = vpop.f32.mrb[43].mxu1 }
 0x2c4   : > { %v7164_v24 = vadd.f32 %v4937_v1, %v4936_v14 }
 0x2c6   : > { %5478 = vmatmul.mubr.bf16.gmra.mrb[20].mxu0 %v6849_v40 }
 0x2c7   : > { %5481 = vmatprep.mubr.bf16.mxu0 %v6872_v13 }
 0x2c8   : > { %v4939_v42 = vpop.f32.mrb[44].mxu1 }
 0x2c9   : > { %v4940_v26 = vpop.f32.mrb[45].mxu1 }
 0x2ca   : > { %v7168_v51 = vadd.f32 %v4940_v26, %v4939_v42  ;;  %v4942_v25 = vpop.f32.mrb[46].mxu1  ;;  %v6002_v26 = vld [vmem:[#allocation10 + $0x28] sm:$0xff]  }
 0x2cb   : > { %v4943_v27 = vpop.f32.mrb[47].mxu1  ;;  %5515 = vmatprep.subr.bf16.mxu1 %v6002_v26 }
 0x2cc   : > { %v7170_v22 = vadd.f32 %v4943_v27, %v4942_v25  ;;  %5516 = vmatpush3.bf16.msra.mxu1 %v6002_v26 }
 0x2ce   : > { %5482 = vmatmul.mubr.bf16.gmra.mrb[24].mxu0 %v6909_v46 }
 0x2cf   : > { %5485 = vmatprep.mubr.bf16.mxu0 %v6914_v62 }
 0x2d0   : > { %v4945_v38 = vpop.f32.mrb[48].mxu1 }
 0x2d1   : > { %v5033_v23 = vpop.f32.mrb[48].mxu0  ;;  %v4946_v45 = vpop.f32.mrb[49].mxu1 }
 0x2d2   : > { %v5034_v40 = vpop.f32.mrb[49].mxu0  ;;  %v7174_v9 = vadd.f32 %v4946_v45, %v4945_v38  ;;  %v4948_v13 = vpop.f32.mrb[50].mxu1  ;;  %v5995_v45 = vld [vmem:[#allocation2 + $0xcc] sm:$0xfe]  }
 0x2d3   : > { %v5035_v35 = vadd.f32 %v5034_v40, %v5033_v23  ;;  %v5036_v11 = vpop.f32.mrb[50].mxu0  ;;  %v4949_v60 = vpop.f32.mrb[51].mxu1 }
 0x2d4   : > { %v5037_v3 = vpop.f32.mrb[51].mxu0  ;;  %v7176_v6 = vadd.f32 %v4949_v60, %v4948_v13 }
 0x2d5   : > { %v7179_v46 = vadd.f32 %v5035_v35, %v7114_v54  ;;  %v5038_v62 = vadd.f32 %v5037_v3, %v5036_v11  ;;  %v5996_v35 = vld [vmem:[#allocation2 + $0xd4] ss:$0 sps:$4 sm:$0x11]   ;;  %v2250_v3 = vrot.slane %v5995_v45, 1 }
 0x2d6   : > { %5486 = vmatmul.mubr.bf16.gmra.mrb[28].mxu0 %v6922_v57 }
 0x2d7   : > { %v7183_v39 = vadd.f32 %v5038_v62, %v7117_v5  ;;  %5489 = vmatprep.mubr.bf16.mxu0 %v6942_v0  ;;  %v2251_v62 = vrot.slane %v5996_v35, 1 }
 0x2d8   : > { %v4951_v53 = vpop.f32.mrb[52].mxu1 }
 0x2d9   : > { %v5039_v56 = vpop.f32.mrb[52].mxu0  ;;  %v4952_v28 = vpop.f32.mrb[53].mxu1 }
 0x2da   : > { %v5040_v16 = vpop.f32.mrb[53].mxu0  ;;  %v7186_v37 = vadd.f32 %v4952_v28, %v4951_v53  ;;  %v4954_v52 = vpop.f32.mrb[54].mxu1 }
 0x2db   : > { %v5041_v12 = vadd.f32 %v5040_v16, %v5039_v56  ;;  %v5042_v54 = vpop.f32.mrb[54].mxu0  ;;  %v4955_v7 = vpop.f32.mrb[55].mxu1 }
 0x2dc   : > { %v5043_v31 = vpop.f32.mrb[55].mxu0  ;;  %v7188_v57 = vadd.f32 %v4955_v7, %v4954_v52 }
 0x2dd   : > { %v7191_v5 = vadd.f32 %v5041_v12, %v7122_v8  ;;  %v5044_v0 = vadd.f32 %v5043_v31, %v5042_v54  ;;  %v2252_v54 = vsel %vm2198_vm9, %v2250_v3, %v2251_v62 }
 0x2de   : > { %5490 = vmatmul.mubr.bf16.gmra.mrb[32].mxu0 %v6939_v58 }
 0x2df   : > { %v7195_v47 = vadd.f32 %v5044_v0, %v7125_v4  ;;  %5493 = vmatprep.mubr.bf16.mxu0 %v6958_v10 }
 0x2e0   : > { %v4957_v48 = vpop.f32.mrb[56].mxu1 }
 0x2e1   : > { %v5045_v50 = vpop.f32.mrb[56].mxu0  ;;  %v4958_v43 = vpop.f32.mrb[57].mxu1 }
 0x2e2   : > { %v5046_v59 = vpop.f32.mrb[57].mxu0  ;;  %v7198_v33 = vadd.f32 %v4958_v43, %v4957_v48  ;;  %v4960_v34 = vpop.f32.mrb[58].mxu1 }
 0x2e3   : > { %v5047_v18 = vadd.f32 %v5046_v59, %v5045_v50  ;;  %v5048_v21 = vpop.f32.mrb[58].mxu0  ;;  %v4961_v14 = vpop.f32.mrb[59].mxu1  ;;  %v6003_v50 = vld [vmem:[#allocation10 + $0x30] sm:$0xff]  }
 0x2e4   : > { %v5049_v8 = vpop.f32.mrb[59].mxu0  ;;  %v7200_v1 = vadd.f32 %v4961_v14, %v4960_v34  ;;  %5517 = vmatprep.subr.bf16.mxu1 %v6003_v50 }
 0x2e5   : > { %v7203_v58 = vadd.f32 %v5047_v18, %v7130_v2  ;;  %v5050_v4 = vadd.f32 %v5049_v8, %v5048_v21  ;;  %5518 = vmatpush3.bf16.msra.mxu1 %v6003_v50 }
 0x2e6   : > { %5494 = vmatmul.mubr.bf16.gmra.mrb[36].mxu0 %v6955_v63 }
 0x2e7   : > { %v7207_v10 = vadd.f32 %v5050_v4, %v7133_v55  ;;  %5497 = vmatprep.mubr.bf16.mxu0 %v6974_v20 }
 0x2e8   : > { %v4963_v42 = vpop.f32.mrb[60].mxu1 }
 0x2e9   : > { %v5051_v25 = vpop.f32.mrb[60].mxu0  ;;  %v4964_v27 = vpop.f32.mrb[61].mxu1 }
 0x2ea   : > { %v5052_v41 = vpop.f32.mrb[61].mxu0  ;;  %v7210_v38 = vadd.f32 %v4964_v27, %v4963_v42  ;;  %v4966_v23 = vpop.f32.mrb[62].mxu1 }
 0x2eb   : > { %v5053_v2 = vadd.f32 %v5052_v41, %v5051_v25  ;;  %v5054_v40 = vpop.f32.mrb[62].mxu0  ;;  %v4967_v13 = vpop.f32.mrb[63].mxu1 }
 0x2ec   : > { %v5055_v63 = vpop.f32.mrb[63].mxu0  ;;  %v7212_v55 = vadd.f32 %v4967_v13, %v4966_v23 }
 0x2ed   : > { %v7215_v20 = vadd.f32 %v5053_v2, %v7142_v15  ;;  %v5056_v11 = vadd.f32 %v5055_v63, %v5054_v40 }
 0x2ee   : > { %5498 = vmatmul.mubr.bf16.gmra.mrb[40].mxu0 %v6977_v44 }
 0x2ef   : > { %v7219_v60 = vadd.f32 %v5056_v11, %v7144_v19  ;;  %5501 = vmatprep.mubr.bf16.mxu0 %v6989_v30 }
 0x2f0   : > { %v4969_v53 = vpop.f32.mrb[64].mxu1 }
 0x2f1   : > { %v5057_v17 = vpop.f32.mrb[64].mxu0  ;;  %v4970_v56 = vpop.f32.mrb[65].mxu1 }
 0x2f2   : > { %v5058_v28 = vpop.f32.mrb[65].mxu0  ;;  %v7222_v16 = vadd.f32 %v4970_v56, %v4969_v53  ;;  %v4972_v52 = vpop.f32.mrb[66].mxu1 }
 0x2f3   : > { %v5059_v12 = vadd.f32 %v5058_v28, %v5057_v17  ;;  %v5060_v15 = vpop.f32.mrb[66].mxu0  ;;  %v4973_v7 = vpop.f32.mrb[67].mxu1  ;;  %v6004_v17 = vld [vmem:[#allocation10 + $0x38] sm:$0xff]  }
 0x2f4   : > { %v5061_v44 = vpop.f32.mrb[67].mxu0  ;;  %v7225_v31 = vadd.f32 %v4973_v7, %v4972_v52  ;;  %5519 = vmatprep.subr.bf16.mxu1 %v6004_v17 }
 0x2f5   : > { %v7228_v19 = vadd.f32 %v5059_v12, %v7150_v49  ;;  %v5062_v30 = vadd.f32 %v5061_v44, %v5060_v15  ;;  %5520 = vmatpush3.bf16.msra.mxu1 %v6004_v17 }
 0x2f6   : > { %5502 = vmatmul.mubr.bf16.gmra.mrb[44].mxu0 %v2252_v54 }
 0x2f7   : > { %v7231_v0 = vadd.f32 %v5062_v30, %v7152_v36 }
 0x2f8   : > { %v4975_v48 = vpop.f32.mrb[68].mxu1 }
 0x2f9   : > { %v5063_v43 = vpop.f32.mrb[68].mxu0  ;;  %v4976_v59 = vpop.f32.mrb[69].mxu1 }
 0x2fa   : > { %v5064_v34 = vpop.f32.mrb[69].mxu0  ;;  %v7233_v18 = vadd.f32 %v4976_v59, %v4975_v48  ;;  %v4978_v21 = vpop.f32.mrb[70].mxu1 }
 0x2fb   : > { %v5065_v14 = vadd.f32 %v5064_v34, %v5063_v43  ;;  %v5066_v8 = vpop.f32.mrb[70].mxu0  ;;  %v4979_v4 = vpop.f32.mrb[71].mxu1 }
 0x2fc   : > { %v5067_v49 = vpop.f32.mrb[71].mxu0  ;;  %v7235_v42 = vadd.f32 %v4979_v4, %v4978_v21 }
 0x2fd   : > { %v7238_v26 = vadd.f32 %v5065_v14, %v7156_v61  ;;  %v5068_v36 = vadd.f32 %v5067_v49, %v5066_v8 }
 0x2ff   : > { %v7241_v25 = vadd.f32 %v5068_v36, %v7158_v29 }
 0x300   : > { %v4981_v27 = vpop.f32.mrb[72].mxu1 }
 0x301   : > { %v5069_v41 = vpop.f32.mrb[72].mxu0  ;;  %v4982_v23 = vpop.f32.mrb[73].mxu1 }
 0x302   : > { %v5070_v45 = vpop.f32.mrb[73].mxu0  ;;  %v7243_v2 = vadd.f32 %v4982_v23, %v4981_v27  ;;  %v4984_v40 = vpop.f32.mrb[74].mxu1 }
 0x303   : > { %v5071_v13 = vadd.f32 %v5070_v45, %v5069_v41  ;;  %v5072_v35 = vpop.f32.mrb[74].mxu0  ;;  %v4985_v63 = vpop.f32.mrb[75].mxu1 }
 0x304   : > { %v5073_v11 = vpop.f32.mrb[75].mxu0  ;;  %v7245_v3 = vadd.f32 %v4985_v63, %v4984_v40 }
 0x305   : > { %v7248_v61 = vadd.f32 %v5071_v13, %v7162_v32  ;;  %v5074_v62 = vadd.f32 %v5073_v11, %v5072_v35 }
 0x307   : > { %v7251_v29 = vadd.f32 %v5074_v62, %v7164_v24 }
 0x308   : > { %v4987_v53 = vpop.f32.mrb[76].mxu1 }
 0x309   : > { %v5075_v56 = vpop.f32.mrb[76].mxu0  ;;  %v4988_v28 = vpop.f32.mrb[77].mxu1 }
 0x30a   : > { %v5076_v52 = vpop.f32.mrb[77].mxu0  ;;  %v7253_v12 = vadd.f32 %v4988_v28, %v4987_v53  ;;  %v4990_v15 = vpop.f32.mrb[78].mxu1 }
 0x30b   : > { %v5077_v54 = vadd.f32 %v5076_v52, %v5075_v56  ;;  %v5078_v7 = vpop.f32.mrb[78].mxu0  ;;  %v4991_v44 = vpop.f32.mrb[79].mxu1 }
 0x30c   : > { %v5079_v30 = vpop.f32.mrb[79].mxu0  ;;  %v7255_v32 = vadd.f32 %v4991_v44, %v4990_v15 }
 0x30d   : > { %v7258_v48 = vadd.f32 %v5077_v54, %v7168_v51  ;;  %v5080_v24 = vadd.f32 %v5079_v30, %v5078_v7 }
 0x30f   : > { %v7261_v50 = vadd.f32 %v5080_v24, %v7170_v22 }
 0x310   : > { %v5169_v43 = vpop.f32.mrb[80].mxu1 }
 0x311   : > { %v5081_v59 = vpop.f32.mrb[80].mxu0  ;;  %v5170_v34 = vpop.f32.mrb[81].mxu1 }
 0x312   : > { %v5082_v21 = vpop.f32.mrb[81].mxu0  ;;  %v5171_v14 = vadd.f32 %v5170_v34, %v5169_v43  ;;  %v5172_v8 = vpop.f32.mrb[82].mxu1 }
 0x313   : > { %v5083_v4 = vadd.f32 %v5082_v21, %v5081_v59  ;;  %v5084_v49 = vpop.f32.mrb[82].mxu0  ;;  %v5173_v36 = vpop.f32.mrb[83].mxu1 }
 0x314   : > { %v5085_v27 = vpop.f32.mrb[83].mxu0  ;;  %v5174_v41 = vadd.f32 %v5173_v36, %v5172_v8  ;;  %v7264_v23 = vadd.f32 %v7179_v46, %v5171_v14 }
 0x315   : > { %v7267_v51 = vadd.f32 %v5083_v4, %v7174_v9  ;;  %v5086_v45 = vadd.f32 %v5085_v27, %v5084_v49 }
 0x316   : > { %v7270_v22 = vadd.f32 %v7183_v39, %v5174_v41 }
 0x317   : > { %v7273_v40 = vadd.f32 %v5086_v45, %v7176_v6 }
 0x318   : > { %v5175_v13 = vpop.f32.mrb[84].mxu1 }
 0x319   : > { %v5087_v35 = vpop.f32.mrb[84].mxu0  ;;  %v5176_v63 = vpop.f32.mrb[85].mxu1 }
 0x31a   : > { %v5088_v11 = vpop.f32.mrb[85].mxu0  ;;  %v5177_v62 = vadd.f32 %v5176_v63, %v5175_v13  ;;  %v5178_v53 = vpop.f32.mrb[86].mxu1 }
 0x31b   : > { %v5089_v17 = vadd.f32 %v5088_v11, %v5087_v35  ;;  %v5090_v56 = vpop.f32.mrb[86].mxu0  ;;  %v5179_v46 = vpop.f32.mrb[87].mxu1 }
 0x31c   : > { %v5091_v28 = vpop.f32.mrb[87].mxu0  ;;  %v5180_v52 = vadd.f32 %v5179_v46, %v5178_v53  ;;  %v7276_v9 = vadd.f32 %v7191_v5, %v5177_v62 }
 0x31d   : > { %v7279_v39 = vadd.f32 %v5089_v17, %v7186_v37  ;;  %v5092_v15 = vadd.f32 %v5091_v28, %v5090_v56 }
 0x31e   : > { %v7282_v6 = vadd.f32 %v7195_v47, %v5180_v52 }
 0x31f   : > { %v7285_v54 = vadd.f32 %v5092_v15, %v7188_v57 }
 0x320   : > { %v5181_v7 = vpop.f32.mrb[88].mxu1 }
 0x321   : > { %v5093_v44 = vpop.f32.mrb[88].mxu0  ;;  %v5182_v30 = vpop.f32.mrb[89].mxu1 }
 0x322   : > { %v5094_v24 = vpop.f32.mrb[89].mxu0  ;;  %v5183_v43 = vadd.f32 %v5182_v30, %v5181_v7  ;;  %v5184_v59 = vpop.f32.mrb[90].mxu1 }
 0x323   : > { %v5095_v34 = vadd.f32 %v5094_v24, %v5093_v44  ;;  %v5096_v21 = vpop.f32.mrb[90].mxu0  ;;  %v5185_v5 = vpop.f32.mrb[91].mxu1 }
 0x324   : > { %v5097_v14 = vpop.f32.mrb[91].mxu0  ;;  %v5186_v8 = vadd.f32 %v5185_v5, %v5184_v59  ;;  %v7288_v37 = vadd.f32 %v7203_v58, %v5183_v43 }
 0x325   : > { %v7291_v47 = vadd.f32 %v5095_v34, %v7198_v33  ;;  %v5098_v4 = vadd.f32 %v5097_v14, %v5096_v21 }
 0x326   : > { %v7294_v57 = vadd.f32 %v7207_v10, %v5186_v8 }
 0x327   : > { %v7297_v49 = vadd.f32 %v5098_v4, %v7200_v1 }
 0x328   : > { %v5187_v36 = vpop.f32.mrb[92].mxu1 }
 0x329   : > { %v5099_v27 = vpop.f32.mrb[92].mxu0  ;;  %v5188_v41 = vpop.f32.mrb[93].mxu1 }
 0x32a   : > { %v5100_v45 = vpop.f32.mrb[93].mxu0  ;;  %v5189_v13 = vadd.f32 %v5188_v41, %v5187_v36  ;;  %v5190_v35 = vpop.f32.mrb[94].mxu1 }
 0x32b   : > { %v5101_v63 = vadd.f32 %v5100_v45, %v5099_v27  ;;  %v5102_v11 = vpop.f32.mrb[94].mxu0  ;;  %v5191_v58 = vpop.f32.mrb[95].mxu1 }
 0x32c   : > { %v5103_v62 = vpop.f32.mrb[95].mxu0  ;;  %v5192_v53 = vadd.f32 %v5191_v58, %v5190_v35  ;;  %v7300_v33 = vadd.f32 %v7215_v20, %v5189_v13 }
 0x32d   : > { %v7303_v10 = vadd.f32 %v5101_v63, %v7210_v38  ;;  %v5104_v17 = vadd.f32 %v5103_v62, %v5102_v11 }
 0x32e   : > { %v7306_v1 = vadd.f32 %v7219_v60, %v5192_v53 }
 0x32f   : > { %v7309_v56 = vadd.f32 %v5104_v17, %v7212_v55 }
 0x330   : > { %v5193_v46 = vpop.f32.mrb[96].mxu1 }
 0x331   : > { %v5105_v28 = vpop.f32.mrb[96].mxu0  ;;  %v5194_v52 = vpop.f32.mrb[97].mxu1 }
 0x332   : > { %v5106_v15 = vpop.f32.mrb[97].mxu0  ;;  %v5195_v7 = vadd.f32 %v5194_v52, %v5193_v46  ;;  %v5196_v44 = vpop.f32.mrb[98].mxu1 }
 0x333   : > { %v5107_v30 = vadd.f32 %v5106_v15, %v5105_v28  ;;  %v5108_v24 = vpop.f32.mrb[98].mxu0  ;;  %v5197_v20 = vpop.f32.mrb[99].mxu1 }
 0x334   : > { %v5109_v43 = vpop.f32.mrb[99].mxu0  ;;  %v5198_v59 = vadd.f32 %v5197_v20, %v5196_v44  ;;  %v7312_v38 = vadd.f32 %v7228_v19, %v5195_v7 }
 0x335   : > { %v7315_v60 = vadd.f32 %v5107_v30, %v7222_v16  ;;  %v5110_v34 = vadd.f32 %v5109_v43, %v5108_v24 }
 0x336   : > { %v7318_v55 = vadd.f32 %v7231_v0, %v5198_v59 }
 0x337   : > { %v7321_v21 = vadd.f32 %v5110_v34, %v7225_v31 }
 0x338   : > { %v5199_v5 = vpop.f32.mrb[100].mxu1 }
 0x339   : > { %v5111_v14 = vpop.f32.mrb[100].mxu0  ;;  %v5200_v8 = vpop.f32.mrb[101].mxu1 }
 0x33a   : > { %v5112_v4 = vpop.f32.mrb[101].mxu0  ;;  %v5201_v36 = vadd.f32 %v5200_v8, %v5199_v5  ;;  %v5202_v27 = vpop.f32.mrb[102].mxu1 }
 0x33b   : > { %v5113_v41 = vadd.f32 %v5112_v4, %v5111_v14  ;;  %v5114_v45 = vpop.f32.mrb[102].mxu0  ;;  %v5203_v19 = vpop.f32.mrb[103].mxu1 }
 0x33c   : > { %v5115_v13 = vpop.f32.mrb[103].mxu0  ;;  %v5204_v35 = vadd.f32 %v5203_v19, %v5202_v27  ;;  %v7324_v16 = vadd.f32 %v7238_v26, %v5201_v36 }
 0x33d   : > { %v7327_v0 = vadd.f32 %v5113_v41, %v7233_v18  ;;  %v5116_v63 = vadd.f32 %v5115_v13, %v5114_v45 }
 0x33e   : > { %v7330_v31 = vadd.f32 %v7241_v25, %v5204_v35 }
 0x33f   : > { %v7333_v11 = vadd.f32 %v5116_v63, %v7235_v42 }
 0x340   : > { %v5205_v58 = vpop.f32.mrb[104].mxu1 }
 0x341   : > { %v5117_v62 = vpop.f32.mrb[104].mxu0  ;;  %v5206_v53 = vpop.f32.mrb[105].mxu1 }
 0x342   : > { %v5118_v17 = vpop.f32.mrb[105].mxu0  ;;  %v5207_v46 = vadd.f32 %v5206_v53, %v5205_v58  ;;  %v5208_v28 = vpop.f32.mrb[106].mxu1 }
 0x343   : > { %v5119_v52 = vadd.f32 %v5118_v17, %v5117_v62  ;;  %v5120_v15 = vpop.f32.mrb[106].mxu0  ;;  %v5209_v26 = vpop.f32.mrb[107].mxu1 }
 0x344   : > { %v5121_v7 = vpop.f32.mrb[107].mxu0  ;;  %v5210_v44 = vadd.f32 %v5209_v26, %v5208_v28  ;;  %v7336_v18 = vadd.f32 %v7248_v61, %v5207_v46 }
 0x345   : > { %v7339_v25 = vadd.f32 %v5119_v52, %v7243_v2  ;;  %v5122_v30 = vadd.f32 %v5121_v7, %v5120_v15 }
 0x346   : > { %v7342_v42 = vadd.f32 %v7251_v29, %v5210_v44 }
 0x347   : > { %v7345_v24 = vadd.f32 %v5122_v30, %v7245_v3 }
 0x348   : > { %v5211_v20 = vpop.f32.mrb[108].mxu1 }
 0x349   : > { %v5123_v43 = vpop.f32.mrb[108].mxu0  ;;  %v5212_v59 = vpop.f32.mrb[109].mxu1 }
 0x34a   : > { %v5124_v34 = vpop.f32.mrb[109].mxu0  ;;  %v5213_v5 = vadd.f32 %v5212_v59, %v5211_v20  ;;  %v5214_v14 = vpop.f32.mrb[110].mxu1 }
 0x34b   : > { %v5125_v8 = vadd.f32 %v5124_v34, %v5123_v43  ;;  %v5126_v4 = vpop.f32.mrb[110].mxu0  ;;  %v5215_v61 = vpop.f32.mrb[111].mxu1 }
 0x34c   : > { %v5127_v36 = vpop.f32.mrb[111].mxu0  ;;  %v5216_v27 = vadd.f32 %v5215_v61, %v5214_v14  ;;  %v7348_v2 = vadd.f32 %v7258_v48, %v5213_v5 }
 0x34d   : > { %v7351_v29 = vadd.f32 %v5125_v8, %v7253_v12  ;;  %v5128_v41 = vadd.f32 %v5127_v36, %v5126_v4 }
 0x34e   : > { %v7354_v3 = vadd.f32 %v7261_v50, %v5216_v27 }
 0x34f   : > { %v7357_v45 = vadd.f32 %v5128_v41, %v7255_v32 }
 0x350   : > { %v5217_v19 = vpop.f32.mrb[112].mxu1 }
 0x351   : > { %v5218_v13 = vpop.f32.mrb[113].mxu1 }
 0x352   : > { %v5219_v35 = vadd.f32 %v5218_v13, %v5217_v19  ;;  %v5220_v63 = vpop.f32.mrb[114].mxu1 }
 0x353   : > { %v5221_v58 = vpop.f32.mrb[115].mxu1 }
 0x354   : > { %v5222_v62 = vadd.f32 %v5221_v58, %v5220_v63  ;;  %v7360_v53 = vadd.f32 %v7267_v51, %v5219_v35 }
 0x356   : > { %v7363_v48 = vadd.f32 %v7273_v40, %v5222_v62 }
 0x358   : > { %v5223_v12 = vpop.f32.mrb[116].mxu1 }
 0x359   : > { %v5224_v17 = vpop.f32.mrb[117].mxu1 }
 0x35a   : > { %v5225_v46 = vadd.f32 %v5224_v17, %v5223_v12  ;;  %v5226_v50 = vpop.f32.mrb[118].mxu1 }
 0x35b   : > { %v5227_v28 = vpop.f32.mrb[119].mxu1 }
 0x35c   : > { %v5228_v52 = vadd.f32 %v5227_v28, %v5226_v50  ;;  %v7366_v32 = vadd.f32 %v7279_v39, %v5225_v46 }
 0x35e   : > { %v7369_v15 = vadd.f32 %v7285_v54, %v5228_v52 }
 0x360   : > { %v5229_v26 = vpop.f32.mrb[120].mxu1 }
 0x361   : > { %v5230_v7 = vpop.f32.mrb[121].mxu1 }
 0x362   : > { %v5231_v44 = vadd.f32 %v5230_v7, %v5229_v26  ;;  %v5232_v51 = vpop.f32.mrb[122].mxu1 }
 0x363   : > { %v5233_v30 = vpop.f32.mrb[123].mxu1 }
 0x364   : > { %v5234_v20 = vadd.f32 %v5233_v30, %v5232_v51  ;;  %v7372_v40 = vadd.f32 %v7291_v47, %v5231_v44 }
 0x366   : > { %v7375_v43 = vadd.f32 %v7297_v49, %v5234_v20 }
 0x368   : > { %v5235_v59 = vpop.f32.mrb[124].mxu1 }
 0x369   : > { %v5236_v34 = vpop.f32.mrb[125].mxu1 }
 0x36a   : > { %v5237_v5 = vadd.f32 %v5236_v34, %v5235_v59  ;;  %v5238_v39 = vpop.f32.mrb[126].mxu1 }
 0x36b   : > { %v5239_v14 = vpop.f32.mrb[127].mxu1 }
 0x36c   : > { %v5240_v8 = vadd.f32 %v5239_v14, %v5238_v39  ;;  %v7378_v54 = vadd.f32 %v7303_v10, %v5237_v5 }
 0x36e   : > { %v7381_v4 = vadd.f32 %v7309_v56, %v5240_v8 }
 0x370   : > { %v5241_v61 = vpop.f32.mrb[128].mxu1 }
 0x371   : > { %v5242_v36 = vpop.f32.mrb[129].mxu1 }
 0x372   : > { %v5243_v27 = vadd.f32 %v5242_v36, %v5241_v61  ;;  %v5244_v47 = vpop.f32.mrb[130].mxu1 }
 0x373   : > { %v5245_v41 = vpop.f32.mrb[131].mxu1 }
 0x374   : > { %v5246_v19 = vadd.f32 %v5245_v41, %v5244_v47  ;;  %v7384_v49 = vadd.f32 %v7315_v60, %v5243_v27 }
 0x376   : > { %v7387_v13 = vadd.f32 %v7321_v21, %v5246_v19 }
 0x378   : > { %v5247_v35 = vpop.f32.mrb[132].mxu1 }
 0x379   : > { %v5248_v63 = vpop.f32.mrb[133].mxu1 }
 0x37a   : > { %v5249_v58 = vadd.f32 %v5248_v63, %v5247_v35  ;;  %v5250_v10 = vpop.f32.mrb[134].mxu1 }
 0x37b   : > { %v5251_v62 = vpop.f32.mrb[135].mxu1 }
 0x37c   : > { %v5252_v12 = vadd.f32 %v5251_v62, %v5250_v10  ;;  %v7390_v56 = vadd.f32 %v7327_v0, %v5249_v58 }
 0x37e   : > { %v7393_v17 = vadd.f32 %v7333_v11, %v5252_v12 }
 0x380   : > { %v5253_v46 = vpop.f32.mrb[136].mxu1 }
 0x381   : > { %v5254_v50 = vpop.f32.mrb[137].mxu1 }
 0x382   : > { %v5255_v28 = vadd.f32 %v5254_v50, %v5253_v46  ;;  %v5256_v60 = vpop.f32.mrb[138].mxu1 }
 0x383   : > { %v5257_v52 = vpop.f32.mrb[139].mxu1 }
 0x384   : > { %v5258_v26 = vadd.f32 %v5257_v52, %v5256_v60  ;;  %v7396_v21 = vadd.f32 %v7339_v25, %v5255_v28  ;;  %v7410_v25 = vld [vmem:[%s7619_s4] ss:$0 sm:$0xff] }
 0x386   : > { %v7399_v7 = vadd.f32 %v7345_v24, %v5258_v26 }
 0x388   : > { %v5259_v44 = vpop.f32.mrb[140].mxu1 }
 0x389   : > { %v5260_v51 = vpop.f32.mrb[141].mxu1 }
 0x38a   : > { %v5261_v30 = vadd.f32 %v5260_v51, %v5259_v44  ;;  %v5262_v0 = vpop.f32.mrb[142].mxu1 }
 0x38b   : > { %v5263_v20 = vpop.f32.mrb[143].mxu1 }
 0x38c   : > { %v5264_v59 = vadd.f32 %v5263_v20, %v5262_v0  ;;  %v7402_v11 = vadd.f32 %v7351_v29, %v5261_v30 }
 0x38e   : > { %v7405_v34 = vadd.f32 %v7357_v45, %v5264_v59 }
 0x391   : > { %v5475_v5 = vpop.f32.mrb[16].mxu0 }
 0x392   : > { %v5571_v24 = vadd.f32 %v7276_v9, %v5475_v5  ;;  %v3852_v39 = vpop.f32.mrb[17].mxu0 }
 0x393   : > { %v5574_v14 = vadd.f32 %v7264_v23, %v3852_v39  ;;  %v5476_v8 = vpop.f32.mrb[18].mxu0 }
 0x394   : > { %v4020_v61 = vadd.f32 %v5571_v24, %v7410_v25  ;;  %v5577_v29 = vadd.f32 %v7282_v6, %v5476_v8  ;;  %v3855_v36 = vpop.f32.mrb[19].mxu0 }
 0x395   : > { %v4018_v45 = vadd.f32 %v5574_v14, %v7410_v25  ;;  %v5580_v27 = vadd.f32 %v7270_v22, %v3855_v36 }
 0x396   : > { %v4021_v47 = vadd.f32 %v5577_v29, %v7410_v25  ;;  %v4052_v19 = vmax.f32 %v4020_v61, 0.0 }
 0x397   : > { %v4019_v41 = vadd.f32 %v5580_v27, %v7410_v25  ;;  %v4050_v9 = vmax.f32 %v4018_v45, 0.0 }
 0x398   : > { %v4053_v35 = vmax.f32 %v4021_v47, 0.0 }
 0x399   : > { %v4051_v63 = vmax.f32 %v4019_v41, 0.0  ;;  %v5479_v58 = vpop.f32.mrb[20].mxu0 }
 0x39a   : > { %v4083_v23 = vpack.c.bf16 %v4053_v35, %v4052_v19  ;;  %v5583_v10 = vadd.f32 %v7300_v33, %v5479_v58  ;;  %v3868_v62 = vpop.f32.mrb[21].mxu0 }
 0x39b   : > { %v5586_v6 = vadd.f32 %v7288_v37, %v3868_v62  ;;  %v5480_v12 = vpop.f32.mrb[22].mxu0  ;;  %v4082_v46 = vpack.c.bf16 %v4051_v63, %v4050_v9 }
 0x39c   : > { %v4024_v50 = vadd.f32 %v5583_v10, %v7410_v25  ;;  %v5589_v22 = vadd.f32 %v7306_v1, %v5480_v12  ;;  %v3871_v28 = vpop.f32.mrb[23].mxu0 }
 0x39d   : > { %v4022_v60 = vadd.f32 %v5586_v6, %v7410_v25  ;;  %v5592_v52 = vadd.f32 %v7294_v57, %v3871_v28  ;;  %5521 = vmatprep.mubr.bf16.mxu1 %v4082_v46 }
 0x39e   : > { %v4025_v26 = vadd.f32 %v5589_v22, %v7410_v25  ;;  %5522 = vmatmul.mubr.bf16.vlgmr.msra.gmra.mrb[144].mxu1 %v4083_v23  ;;  %v4056_v44 = vmax.f32 %v4024_v50, 0.0 }
 0x39f   : > { %v4023_v33 = vadd.f32 %v5592_v52, %v7410_v25  ;;  %v4054_v37 = vmax.f32 %v4022_v60, 0.0 }
 0x3a0   : > { %v4057_v51 = vmax.f32 %v4025_v26, 0.0 }
 0x3a1   : > { %v4055_v30 = vmax.f32 %v4023_v33, 0.0  ;;  %v5483_v0 = vpop.f32.mrb[24].mxu0 }
 0x3a2   : > { %v5595_v20 = vadd.f32 %v7324_v16, %v5483_v0  ;;  %v3884_v59 = vpop.f32.mrb[25].mxu0  ;;  %v4085_v1 = vpack.c.bf16 %v4057_v51, %v4056_v44 }
 0x3a3   : > { %v5598_v5 = vadd.f32 %v7312_v38, %v3884_v59  ;;  %v5484_v24 = vpop.f32.mrb[26].mxu0  ;;  %v4084_v39 = vpack.c.bf16 %v4055_v30, %v4054_v37 }
 0x3a4   : > { %v4028_v57 = vadd.f32 %v5595_v20, %v7410_v25  ;;  %v5601_v14 = vadd.f32 %v7330_v31, %v5484_v24  ;;  %v3887_v8 = vpop.f32.mrb[27].mxu0 }
 0x3a5   : > { %v4026_v61 = vadd.f32 %v5598_v5, %v7410_v25  ;;  %v5604_v29 = vadd.f32 %v7318_v55, %v3887_v8  ;;  %5525 = vmatprep.mubr.bf16.mxu1 %v4084_v39 }
 0x3a6   : > { %v4029_v36 = vadd.f32 %v5601_v14, %v7410_v25  ;;  %5526 = vmatmul.mubr.bf16.gmra.mrb[148].mxu1 %v4085_v1  ;;  %v4060_v45 = vmax.f32 %v4028_v57, 0.0 }
 0x3a7   : > { %v4027_v16 = vadd.f32 %v5604_v29, %v7410_v25  ;;  %v4058_v38 = vmax.f32 %v4026_v61, 0.0 }
 0x3a8   : > { %v4061_v27 = vmax.f32 %v4029_v36, 0.0 }
 0x3a9   : > { %v4059_v47 = vmax.f32 %v4027_v16, 0.0  ;;  %v5487_v41 = vpop.f32.mrb[28].mxu0 }
 0x3aa   : > { %v5607_v19 = vadd.f32 %v7348_v2, %v5487_v41  ;;  %v3900_v35 = vpop.f32.mrb[29].mxu0  ;;  %v4087_v31 = vpack.c.bf16 %v4061_v27, %v4060_v45 }
 0x3ab   : > { %v5610_v9 = vadd.f32 %v7336_v18, %v3900_v35  ;;  %v5488_v63 = vpop.f32.mrb[30].mxu0  ;;  %v4086_v58 = vpack.c.bf16 %v4059_v47, %v4058_v38 }
 0x3ac   : > { %v4032_v55 = vadd.f32 %v5607_v19, %v7410_v25  ;;  %v5613_v23 = vadd.f32 %v7354_v3, %v5488_v63  ;;  %v3903_v10 = vpop.f32.mrb[31].mxu0 }
 0x3ad   : > { %v4030_v62 = vadd.f32 %v5610_v9, %v7410_v25  ;;  %v5616_v6 = vadd.f32 %v7342_v42, %v3903_v10  ;;  %5529 = vmatprep.mubr.bf16.mxu1 %v4086_v58 }
 0x3ae   : > { %v4033_v12 = vadd.f32 %v5613_v23, %v7410_v25  ;;  %5530 = vmatmul.mubr.bf16.gmra.mrb[152].mxu1 %v4087_v31  ;;  %v4064_v46 = vmax.f32 %v4032_v55, 0.0 }
 0x3af   : > { %v4031_v2 = vadd.f32 %v5616_v6, %v7410_v25  ;;  %v4062_v18 = vmax.f32 %v4030_v62, 0.0 }
 0x3b0   : > { %v4065_v50 = vmax.f32 %v4033_v12, 0.0 }
 0x3b1   : > { %v4063_v22 = vmax.f32 %v4031_v2, 0.0  ;;  %v5491_v28 = vpop.f32.mrb[32].mxu0 }
 0x3b2   : > { %v5619_v60 = vadd.f32 %v7366_v32, %v5491_v28  ;;  %v3916_v52 = vpop.f32.mrb[33].mxu0  ;;  %v4089_v3 = vpack.c.bf16 %v4065_v50, %v4064_v46 }
 0x3b3   : > { %v5622_v26 = vadd.f32 %v7360_v53, %v3916_v52  ;;  %v5492_v33 = vpop.f32.mrb[34].mxu0  ;;  %v4088_v44 = vpack.c.bf16 %v4063_v22, %v4062_v18 }
 0x3b4   : > { %v4036_v42 = vadd.f32 %v5619_v60, %v7410_v25  ;;  %v5625_v51 = vadd.f32 %v7369_v15, %v5492_v33  ;;  %v3919_v37 = vpop.f32.mrb[35].mxu0 }
 0x3b5   : > { %v4034_v30 = vadd.f32 %v5622_v26, %v7410_v25  ;;  %v5628_v0 = vadd.f32 %v7363_v48, %v3919_v37  ;;  %5533 = vmatprep.mubr.bf16.mxu1 %v4088_v44 }
 0x3b6   : > { %v4037_v20 = vadd.f32 %v5625_v51, %v7410_v25  ;;  %5534 = vmatmul.mubr.bf16.gmra.mrb[156].mxu1 %v4089_v3  ;;  %v4068_v59 = vmax.f32 %v4036_v42, 0.0 }
 0x3b7   : > { %v4035_v32 = vadd.f32 %v5628_v0, %v7410_v25  ;;  %v4066_v53 = vmax.f32 %v4034_v30, 0.0 }
 0x3b8   : > { %v4069_v1 = vmax.f32 %v4037_v20, 0.0  ;;  %v6023_v20 = vld [vmem:[%s6488_s20 + $0x8] sm:$0xff]  }
 0x3b9   : > { %v4067_v5 = vmax.f32 %v4035_v32, 0.0  ;;  %v5495_v24 = vpop.f32.mrb[36].mxu0  ;;  %v4332_v32 = vunpack.c.l.bf16 %v6023_v20 }
 0x3ba   : > { %v5631_v39 = vadd.f32 %v7378_v54, %v5495_v24  ;;  %v3932_v57 = vpop.f32.mrb[37].mxu0  ;;  %v4091_v15 = vpack.c.bf16 %v4069_v1, %v4068_v59  ;;  %v6024_v59 = vld [vmem:[%s6488_s20] sm:$0xff]   ;;  %v4333_v24 = vunpack.c.h.bf16 %v6023_v20 }
 0x3bb   : > { %v5634_v14 = vadd.f32 %v7372_v40, %v3932_v57  ;;  %v5496_v8 = vpop.f32.mrb[38].mxu0  ;;  %v4090_v61 = vpack.c.bf16 %v4067_v5, %v4066_v53  ;;  %v4330_v1 = vunpack.c.l.bf16 %v6024_v59 }
 0x3bc   : > { %v4040_v48 = vadd.f32 %v5631_v39, %v7410_v25  ;;  %v5637_v29 = vadd.f32 %v7381_v4, %v5496_v8  ;;  %v3935_v36 = vpop.f32.mrb[39].mxu0  ;;  %v4331_v39 = vunpack.c.h.bf16 %v6024_v59  ;;  %v6029_v59 = vld [vmem:[%s6488_s20 + $0x38] sm:$0xff]  }
 0x3bd   : > { %v4038_v16 = vadd.f32 %v5634_v14, %v7410_v25  ;;  %v5640_v45 = vadd.f32 %v7375_v43, %v3935_v36  ;;  %5537 = vmatprep.mubr.bf16.mxu1 %v4090_v61 }
 0x3be   : > { %v4041_v27 = vadd.f32 %v5637_v29, %v7410_v25  ;;  %5538 = vmatmul.mubr.bf16.gmra.mrb[160].mxu1 %v4091_v15  ;;  %v4072_v38 = vmax.f32 %v4040_v48, 0.0 }
 0x3bf   : > { %v4039_v54 = vadd.f32 %v5640_v45, %v7410_v25  ;;  %v4070_v40 = vmax.f32 %v4038_v16, 0.0 }
 0x3c0   : > { %v4073_v47 = vmax.f32 %v4041_v27, 0.0 }
 0x3c1   : > { %v4071_v41 = vmax.f32 %v4039_v54, 0.0  ;;  %v5499_v19 = vpop.f32.mrb[40].mxu0 }
 0x3c2   : > { %v5643_v35 = vadd.f32 %v7390_v56, %v5499_v19  ;;  %v3948_v31 = vpop.f32.mrb[41].mxu0  ;;  %v4093_v4 = vpack.c.bf16 %v4073_v47, %v4072_v38  ;;  %v6025_v38 = vld [vmem:[%s6488_s20 + $0x18] sm:$0xff]   ;;  %v6026_v19 = vld [vmem:[%s6488_s20 + $0x10] sm:$0xff]  }
 0x3c3   : > { %v5646_v9 = vadd.f32 %v7384_v49, %v3948_v31  ;;  %v5500_v63 = vpop.f32.mrb[42].mxu0  ;;  %v4092_v58 = vpack.c.bf16 %v4071_v41, %v4070_v40  ;;  %v4336_v47 = vunpack.c.l.bf16 %v6025_v38 }
 0x3c4   : > { %v4044_v43 = vadd.f32 %v5643_v35, %v7410_v25  ;;  %v5649_v55 = vadd.f32 %v7393_v17, %v5500_v63  ;;  %v3951_v23 = vpop.f32.mrb[43].mxu0  ;;  %v4334_v35 = vunpack.c.l.bf16 %v6026_v19 }
 0x3c5   : > { %v4042_v10 = vadd.f32 %v5646_v9, %v7410_v25  ;;  %v5652_v62 = vadd.f32 %v7387_v13, %v3951_v23  ;;  %5541 = vmatprep.mubr.bf16.mxu1 %v4092_v58  ;;  %v4337_v9 = vunpack.c.h.bf16 %v6025_v38 }
 0x3c6   : > { %v4045_v6 = vadd.f32 %v5649_v55, %v7410_v25  ;;  %5542 = vmatmul.mubr.bf16.gmra.mrb[164].mxu1 %v4093_v4  ;;  %v4076_v12 = vmax.f32 %v4044_v43, 0.0  ;;  %v4335_v43 = vunpack.c.h.bf16 %v6026_v19 }
 0x3c7   : > { %v4043_v56 = vadd.f32 %v5652_v62, %v7410_v25  ;;  %v4074_v49 = vmax.f32 %v4042_v10, 0.0 }
 0x3c8   : > { %v4077_v2 = vmax.f32 %v4045_v6, 0.0 }
 0x3c9   : > { %v4075_v46 = vmax.f32 %v4043_v56, 0.0  ;;  %v5503_v50 = vpop.f32.mrb[44].mxu0 }
 0x3ca   : > { %v5655_v18 = vadd.f32 %v7402_v11, %v5503_v50  ;;  %v3964_v22 = vpop.f32.mrb[45].mxu0  ;;  %v4095_v17 = vpack.c.bf16 %v4077_v2, %v4076_v12  ;;  %v6027_v50 = vld [vmem:[%s6488_s20 + $0x28] sm:$0xff]  }
 0x3cb   : > { %v5658_v28 = vadd.f32 %v7396_v21, %v3964_v22  ;;  %v5504_v60 = vpop.f32.mrb[46].mxu0  ;;  %v4094_v52 = vpack.c.bf16 %v4075_v46, %v4074_v49 }
 0x3cc   : > { %v4048_v13 = vadd.f32 %v5655_v18, %v7410_v25  ;;  %v5661_v3 = vadd.f32 %v7405_v34, %v5504_v60  ;;  %v3967_v26 = vpop.f32.mrb[47].mxu0  ;;  %v4340_v18 = vunpack.c.l.bf16 %v6027_v50 }
 0x3cd   : > { %v4046_v33 = vadd.f32 %v5658_v28, %v7410_v25  ;;  %v5664_v44 = vadd.f32 %v7399_v7, %v3967_v26  ;;  %5545 = vmatprep.mubr.bf16.mxu1 %v4094_v52  ;;  %v7479_v7 = vld [vmem:[%s7621_s6] ss:$0 sm:$0xff]  ;;  %v6028_v28 = vld [vmem:[%s6488_s20 + $0x20] sm:$0xff]  }
 0x3ce   : > { %v4049_v11 = vadd.f32 %v5661_v3, %v7410_v25  ;;  %5546 = vmatmul.mubr.bf16.gmra.mrb[168].mxu1 %v4095_v17  ;;  %v4080_v42 = vmax.f32 %v4048_v13, 0.0  ;;  %v4338_v60 = vunpack.c.l.bf16 %v6028_v28  ;;  %v4341_v3 = vunpack.c.h.bf16 %v6027_v50 }
 0x3cf   : > { %v4047_v21 = vadd.f32 %v5664_v44, %v7410_v25  ;;  %v4078_v37 = vmax.f32 %v4046_v33, 0.0  ;;  %v4339_v44 = vunpack.c.h.bf16 %v6028_v28 }
 0x3d0   : > { %v4081_v51 = vmax.f32 %v4049_v11, 0.0 }
 0x3d1   : > { %v4079_v30 = vmax.f32 %v4047_v21, 0.0 }
 0x3d2   : > { %v4097_v0 = vpack.c.bf16 %v4081_v51, %v4080_v42 }
 0x3d3   : > { %v4096_v34 = vpack.c.bf16 %v4079_v30, %v4078_v37 }
 0x3d5   : > { %5549 = vmatprep.mubr.bf16.mxu1 %v4096_v34 }
 0x3d6   : > { %5550 = vmatmul.mubr.bf16.gmra.mrb[172].mxu1 %v4097_v0 }
 0x471   : > { %v5523_v53 = vpop.f32.mrb[144].mxu1 }
 0x472   : > { %v4212_v25 = vadd.f32 %v5523_v53, %v7479_v7  ;;  %v4203_v5 = vpop.f32.mrb[145].mxu1 }
 0x473   : > { %v4204_v57 = vadd.f32 %v7479_v7, %v4203_v5  ;;  %v5524_v15 = vpop.f32.mrb[146].mxu1  ;;  %v6030_v5 = vld [vmem:[%s6488_s20 + $0x30] sm:$0xff]  }
 0x474   : > { %v4364_v14 = vadd.f32 %v4332_v32, %v4212_v25  ;;  %v4215_v8 = vadd.f32 %v5524_v15, %v7479_v7  ;;  %v4206_v61 = vpop.f32.mrb[147].mxu1  ;;  %v4345_v15 = vunpack.c.h.bf16 %v6029_v59 }
 0x475   : > { %v4362_v48 = vadd.f32 %v4330_v1, %v4204_v57  ;;  %v4207_v29 = vadd.f32 %v7479_v7, %v4206_v61  ;;  %v4344_v1 = vunpack.c.l.bf16 %v6029_v59  ;;  %v4343_v61 = vunpack.c.h.bf16 %v6030_v5 }
 0x476   : > { %v4396_v36 = vmax.f32 %v4364_v14, 0.0  ;;  %v4365_v16 = vadd.f32 %v4333_v24, %v4215_v8  ;;  %v4342_v24 = vunpack.c.l.bf16 %v6030_v5 }
 0x477   : > { %v4394_v45 = vmax.f32 %v4362_v48, 0.0  ;;  %v4363_v27 = vadd.f32 %v4331_v39, %v4207_v29 }
 0x478   : > { %4428 = vst [vmem:[%s7488_s16 + $0x10] sm:$0xff] %v4396_v36  ;;  %v4397_v54 = vmax.f32 %v4365_v16, 0.0 }
 0x479   : > { %4426 = vst [vmem:[%s7488_s16] sm:$0xff] %v4394_v45  ;;  %v4395_v40 = vmax.f32 %v4363_v27, 0.0  ;;  %v5527_v41 = vpop.f32.mrb[148].mxu1 }
 0x47a   : > { %4429 = vst [vmem:[%s7488_s16 + $0x18] sm:$0xff] %v4397_v54  ;;  %v4228_v31 = vadd.f32 %v5527_v41, %v7479_v7  ;;  %v4219_v4 = vpop.f32.mrb[149].mxu1  ;;  %v6031_v41 = vld [vmem:[%s6488_s20 + $0x48] sm:$0xff]  }
 0x47b   : > { %4427 = vst [vmem:[%s7488_s16 + $0x8] sm:$0xff] %v4395_v40  ;;  %v4220_v63 = vadd.f32 %v7479_v7, %v4219_v4  ;;  %v5528_v58 = vpop.f32.mrb[150].mxu1  ;;  %v4348_v19 = vunpack.c.l.bf16 %v6031_v41 }
 0x47c   : > { %v4368_v55 = vadd.f32 %v4336_v47, %v4228_v31  ;;  %v4231_v23 = vadd.f32 %v5528_v58, %v7479_v7  ;;  %v4222_v10 = vpop.f32.mrb[151].mxu1 }
 0x47d   : > { %v4366_v62 = vadd.f32 %v4334_v35, %v4220_v63  ;;  %v4223_v6 = vadd.f32 %v7479_v7, %v4222_v10  ;;  %v6032_v35 = vld [vmem:[%s6488_s20 + $0x40] sm:$0xff]  }
 0x47e   : > { %v4400_v56 = vmax.f32 %v4368_v55, 0.0  ;;  %v4369_v12 = vadd.f32 %v4337_v9, %v4231_v23  ;;  %v4346_v31 = vunpack.c.l.bf16 %v6032_v35  ;;  %v4347_v55 = vunpack.c.h.bf16 %v6032_v35 }
 0x47f   : > { %v4398_v2 = vmax.f32 %v4366_v62, 0.0  ;;  %v4367_v49 = vadd.f32 %v4335_v43, %v4223_v6  ;;  %v4349_v43 = vunpack.c.h.bf16 %v6031_v41 }
 0x480   : > { %4432 = vst [vmem:[%s7488_s16 + $0x30] sm:$0xff] %v4400_v56  ;;  %v4401_v46 = vmax.f32 %v4369_v12, 0.0 }
 0x481   : > { %4430 = vst [vmem:[%s7488_s16 + $0x20] sm:$0xff] %v4398_v2  ;;  %v4399_v22 = vmax.f32 %v4367_v49, 0.0  ;;  %v5531_v17 = vpop.f32.mrb[152].mxu1 }
 0x482   : > { %4433 = vst [vmem:[%s7488_s16 + $0x38] sm:$0xff] %v4401_v46  ;;  %v4244_v52 = vadd.f32 %v5531_v17, %v7479_v7  ;;  %v4235_v13 = vpop.f32.mrb[153].mxu1  ;;  %v6033_v17 = vld [vmem:[%s6488_s20 + $0x58] sm:$0xff]  }
 0x483   : > { %4431 = vst [vmem:[%s7488_s16 + $0x28] sm:$0xff] %v4399_v22  ;;  %v4236_v26 = vadd.f32 %v7479_v7, %v4235_v13  ;;  %v5532_v33 = vpop.f32.mrb[154].mxu1  ;;  %v4352_v28 = vunpack.c.l.bf16 %v6033_v17  ;;  %v6034_v13 = vld [vmem:[%s6488_s20 + $0x50] sm:$0xff]  }
 0x484   : > { %v4372_v11 = vadd.f32 %v4340_v18, %v4244_v52  ;;  %v4247_v21 = vadd.f32 %v5532_v33, %v7479_v7  ;;  %v4238_v42 = vpop.f32.mrb[155].mxu1 }
 0x485   : > { %v4370_v51 = vadd.f32 %v4338_v60, %v4236_v26  ;;  %v4239_v37 = vadd.f32 %v7479_v7, %v4238_v42  ;;  %v4351_v42 = vunpack.c.h.bf16 %v6034_v13 }
 0x486   : > { %v4404_v30 = vmax.f32 %v4372_v11, 0.0  ;;  %v4373_v0 = vadd.f32 %v4341_v3, %v4247_v21  ;;  %v4350_v3 = vunpack.c.l.bf16 %v6034_v13 }
 0x487   : > { %v4402_v34 = vmax.f32 %v4370_v51, 0.0  ;;  %v4371_v20 = vadd.f32 %v4339_v44, %v4239_v37  ;;  %v4353_v44 = vunpack.c.h.bf16 %v6033_v17 }
 0x488   : > { %4436 = vst [vmem:[%s7488_s16 + $0x50] sm:$0xff] %v4404_v30  ;;  %v4405_v32 = vmax.f32 %v4373_v0, 0.0 }
 0x489   : > { %4434 = vst [vmem:[%s7488_s16 + $0x40] sm:$0xff] %v4402_v34  ;;  %v4403_v53 = vmax.f32 %v4371_v20, 0.0  ;;  %v5535_v25 = vpop.f32.mrb[156].mxu1 }
 0x48a   : > { %4437 = vst [vmem:[%s7488_s16 + $0x58] sm:$0xff] %v4405_v32  ;;  %v4260_v39 = vadd.f32 %v5535_v25, %v7479_v7  ;;  %v4251_v57 = vpop.f32.mrb[157].mxu1  ;;  %v6035_v25 = vld [vmem:[%s6488_s20 + $0x68] sm:$0xff]  }
 0x48b   : > { %4435 = vst [vmem:[%s7488_s16 + $0x48] sm:$0xff] %v4403_v53  ;;  %v4252_v14 = vadd.f32 %v7479_v7, %v4251_v57  ;;  %v5536_v8 = vpop.f32.mrb[158].mxu1  ;;  %v4356_v5 = vunpack.c.l.bf16 %v6035_v25  ;;  %v6036_v57 = vld [vmem:[%s6488_s20 + $0x60] sm:$0xff]  }
 0x48c   : > { %v4376_v48 = vadd.f32 %v4344_v1, %v4260_v39  ;;  %v4263_v29 = vadd.f32 %v5536_v8, %v7479_v7  ;;  %v4254_v36 = vpop.f32.mrb[159].mxu1 }
 0x48d   : > { %v4374_v16 = vadd.f32 %v4342_v24, %v4252_v14  ;;  %v4255_v45 = vadd.f32 %v7479_v7, %v4254_v36  ;;  %v4355_v36 = vunpack.c.h.bf16 %v6036_v57 }
 0x48e   : > { %v4408_v27 = vmax.f32 %v4376_v48, 0.0  ;;  %v4377_v54 = vadd.f32 %v4345_v15, %v4263_v29  ;;  %v4354_v15 = vunpack.c.l.bf16 %v6036_v57 }
 0x48f   : > { %v4406_v38 = vmax.f32 %v4374_v16, 0.0  ;;  %v4375_v47 = vadd.f32 %v4343_v61, %v4255_v45  ;;  %v4357_v61 = vunpack.c.h.bf16 %v6035_v25 }
 0x490   : > { %4440 = vst [vmem:[%s7488_s16 + $0x70] sm:$0xff] %v4408_v27  ;;  %v4409_v40 = vmax.f32 %v4377_v54, 0.0 }
 0x491   : > { %4438 = vst [vmem:[%s7488_s16 + $0x60] sm:$0xff] %v4406_v38  ;;  %v4407_v4 = vmax.f32 %v4375_v47, 0.0  ;;  %v5539_v9 = vpop.f32.mrb[160].mxu1 }
 0x492   : > { %4441 = vst [vmem:[%s7488_s16 + $0x78] sm:$0xff] %v4409_v40  ;;  %v4276_v63 = vadd.f32 %v5539_v9, %v7479_v7  ;;  %v4267_v58 = vpop.f32.mrb[161].mxu1 }
 0x493   : > { %4439 = vst [vmem:[%s7488_s16 + $0x68] sm:$0xff] %v4407_v4  ;;  %v4268_v23 = vadd.f32 %v7479_v7, %v4267_v58  ;;  %v5540_v10 = vpop.f32.mrb[162].mxu1  ;;  %v6038_v58 = vld [vmem:[%s6488_s20 + $0x70] sm:$0xff]  }
 0x494   : > { %v4380_v62 = vadd.f32 %v4348_v19, %v4276_v63  ;;  %v4279_v6 = vadd.f32 %v5540_v10, %v7479_v7  ;;  %v4270_v56 = vpop.f32.mrb[163].mxu1 }
 0x495   : > { %v4378_v12 = vadd.f32 %v4346_v31, %v4268_v23  ;;  %v4271_v2 = vadd.f32 %v7479_v7, %v4270_v56  ;;  %v6037_v31 = vld [vmem:[%s6488_s20 + $0x78] sm:$0xff]   ;;  %v4359_v56 = vunpack.c.h.bf16 %v6038_v58 }
 0x496   : > { %v4412_v49 = vmax.f32 %v4380_v62, 0.0  ;;  %v4381_v46 = vadd.f32 %v4349_v43, %v4279_v6  ;;  %v4360_v4 = vunpack.c.l.bf16 %v6037_v31  ;;  %v4358_v43 = vunpack.c.l.bf16 %v6038_v58 }
 0x497   : > { %v4410_v50 = vmax.f32 %v4378_v12, 0.0  ;;  %v4379_v18 = vadd.f32 %v4347_v55, %v4271_v2  ;;  %v4361_v10 = vunpack.c.h.bf16 %v6037_v31 }
 0x498   : > { %4444 = vst [vmem:[%s7488_s16 + $0x90] sm:$0xff] %v4412_v49  ;;  %v4413_v22 = vmax.f32 %v4381_v46, 0.0 }
 0x499   : > { %4442 = vst [vmem:[%s7488_s16 + $0x80] sm:$0xff] %v4410_v50  ;;  %v4411_v60 = vmax.f32 %v4379_v18, 0.0  ;;  %v5543_v52 = vpop.f32.mrb[164].mxu1 }
 0x49a   : > { %4445 = vst [vmem:[%s7488_s16 + $0x98] sm:$0xff] %v4413_v22  ;;  %v4292_v26 = vadd.f32 %v5543_v52, %v7479_v7  ;;  %v4283_v33 = vpop.f32.mrb[165].mxu1 }
 0x49b   : > { %4443 = vst [vmem:[%s7488_s16 + $0x88] sm:$0xff] %v4411_v60  ;;  %v4284_v11 = vadd.f32 %v7479_v7, %v4283_v33  ;;  %v5544_v21 = vpop.f32.mrb[166].mxu1 }
 0x49c   : > { %v4384_v51 = vadd.f32 %v4352_v28, %v4292_v26  ;;  %v4295_v37 = vadd.f32 %v5544_v21, %v7479_v7  ;;  %v4286_v30 = vpop.f32.mrb[167].mxu1 }
 0x49d   : > { %v4382_v0 = vadd.f32 %v4350_v3, %v4284_v11  ;;  %v4287_v34 = vadd.f32 %v7479_v7, %v4286_v30 }
 0x49e   : > { %v4416_v20 = vmax.f32 %v4384_v51, 0.0  ;;  %v4385_v32 = vadd.f32 %v4353_v44, %v4295_v37 }
 0x49f   : > { %v4414_v59 = vmax.f32 %v4382_v0, 0.0  ;;  %v4383_v1 = vadd.f32 %v4351_v42, %v4287_v34 }
 0x4a0   : > { %4448 = vst [vmem:[%s7488_s16 + $0xb0] sm:$0xff] %v4416_v20  ;;  %v4417_v53 = vmax.f32 %v4385_v32, 0.0 }
 0x4a1   : > { %4446 = vst [vmem:[%s7488_s16 + $0xa0] sm:$0xff] %v4414_v59  ;;  %v4415_v24 = vmax.f32 %v4383_v1, 0.0  ;;  %v5547_v39 = vpop.f32.mrb[168].mxu1 }
 0x4a2   : > { %4449 = vst [vmem:[%s7488_s16 + $0xb8] sm:$0xff] %v4417_v53  ;;  %v4308_v14 = vadd.f32 %v5547_v39, %v7479_v7  ;;  %v4299_v8 = vpop.f32.mrb[169].mxu1 }
 0x4a3   : > { %4447 = vst [vmem:[%s7488_s16 + $0xa8] sm:$0xff] %v4415_v24  ;;  %v4300_v48 = vadd.f32 %v7479_v7, %v4299_v8  ;;  %v5548_v29 = vpop.f32.mrb[170].mxu1 }
 0x4a4   : > { %v4388_v16 = vadd.f32 %v4356_v5, %v4308_v14  ;;  %v4311_v45 = vadd.f32 %v5548_v29, %v7479_v7  ;;  %v4302_v27 = vpop.f32.mrb[171].mxu1 }
 0x4a5   : > { %v4386_v54 = vadd.f32 %v4354_v15, %v4300_v48  ;;  %v4303_v38 = vadd.f32 %v7479_v7, %v4302_v27 }
 0x4a6   : > { %v4420_v47 = vmax.f32 %v4388_v16, 0.0  ;;  %v4389_v40 = vadd.f32 %v4357_v61, %v4311_v45 }
 0x4a7   : > { %v4418_v41 = vmax.f32 %v4386_v54, 0.0  ;;  %v4387_v19 = vadd.f32 %v4355_v36, %v4303_v38 }
 0x4a8   : > { %4452 = vst [vmem:[%s7488_s16 + $0xd0] sm:$0xff] %v4420_v47  ;;  %v4421_v35 = vmax.f32 %v4389_v40, 0.0 }
 0x4a9   : > { %4450 = vst [vmem:[%s7488_s16 + $0xc0] sm:$0xff] %v4418_v41  ;;  %v4419_v9 = vmax.f32 %v4387_v19, 0.0  ;;  %v5551_v63 = vpop.f32.mrb[172].mxu1 }
 0x4aa   : > { %4453 = vst [vmem:[%s7488_s16 + $0xd8] sm:$0xff] %v4421_v35  ;;  %v4324_v55 = vadd.f32 %v5551_v63, %v7479_v7  ;;  %v4315_v23 = vpop.f32.mrb[173].mxu1 }
 0x4ab   : > { %4451 = vst [vmem:[%s7488_s16 + $0xc8] sm:$0xff] %v4419_v9  ;;  %v4316_v62 = vadd.f32 %v7479_v7, %v4315_v23  ;;  %v5552_v6 = vpop.f32.mrb[174].mxu1 }
 0x4ac   : > { %v4392_v12 = vadd.f32 %v4360_v4, %v4324_v55  ;;  %v4327_v2 = vadd.f32 %v5552_v6, %v7479_v7  ;;  %v4318_v49 = vpop.f32.mrb[175].mxu1 }
 0x4ad   : > { %v4390_v46 = vadd.f32 %v4358_v43, %v4316_v62  ;;  %v4319_v50 = vadd.f32 %v7479_v7, %v4318_v49 }
 0x4ae   : > { %v4424_v18 = vmax.f32 %v4392_v12, 0.0  ;;  %v4393_v22 = vadd.f32 %v4361_v10, %v4327_v2 }
 0x4af   : > { %v4422_v17 = vmax.f32 %v4390_v46, 0.0  ;;  %v4391_v28 = vadd.f32 %v4359_v56, %v4319_v50 }
 0x4b0   : > { %4456 = vst [vmem:[%s7488_s16 + $0xf0] sm:$0xff] %v4424_v18  ;;  %v4425_v60 = vmax.f32 %v4393_v22, 0.0 }
 0x4b1   : > { %4454 = vst [vmem:[%s7488_s16 + $0xe0] sm:$0xff] %v4422_v17  ;;  %v4423_v7 = vmax.f32 %v4391_v28, 0.0 }
 0x4b2   : > { %4457 = vst [vmem:[%s7488_s16 + $0xf8] sm:$0xff] %v4425_v60 }
 0x4b3   : > { %4455 = vst [vmem:[%s7488_s16 + $0xe8] sm:$0xff] %v4423_v7 }
 0x4b4   : > { %6166 = shalt.err (!%p6163_p4)
}
 0x4b5   : > { %s6167_s14 = scalar_lea.hbm %s7566_s30, 4096  ;;  %s6171_s21 = scalar_lea.hbm %s7622_s7, 8192 }
 0x4b6   : > { %p6168_p9 = scmp.ne.s32.totalorder %s7566_s30, %s6167_s14  ;;  %p6172_p8 = scmp.lt.u32.totalorder %s7566_s30, %s7622_s7 }
 0x4b7   : > { %p6173_p13 = scmp.lt.u32.totalorder %s6171_s21, %s6167_s14  ;;  %p6175_p10 = scmp.lt.u32.totalorder %s6167_s14, %s7566_s30 }
 0x4b8   : > { %p6169_p0 = pnand %p6168_p9, %p6433_p5 }
 0x4b9   : > { %p6174_p6 = por %p6173_p13, %p6172_p8 }
 0x4ba   : > { %p6170_p11 = pneg %p6169_p0 }
 0x4bb   : > { %p6176_p3 = por %p6175_p10, %p6174_p6 }
 0x4bd   : > { %p6177_p7 = pnand %p6176_p3, %p6170_p11 }
 0x4bf   : > { %6180 = shalt.err (!%p6177_p7)
}
 0x4c0   : > { %s6237_s11 = smov 128   ;;  %s6238_s20 = smov 8  }
 0x4c1   : > { %5743 = dma.vmem_to_hbm [thread:$0]  (%p6433_p5), %s7568_s23, 4096, %s7566_s30, %s4459_s28, %s6237_s11, %s6237_s11, %s6238_s20  }
 0x4c2 PF: > { %s7650_s9 = sld [smem:[#allocation17_spill]]  ;;  %s4487_s13 = sand.u32 1, %s6215_s24  }
 0x4c3   : > { %p7652_p1 = scmp.ge.s32.totalorder %s6227_s27, 2  ;;  %s4488_s15 = scalar_lea.sflag [#allocation6], %s4487_s13 }
 0x4c8   : > { %p7651_p12 = scmp.ne.s32.totalorder %s7650_s9, 0 }
 0x4ca   : > { %p5760_p2 = pnand %p7652_p1, %p7651_p12 }
 0x4cc   : > { %6210 = dma.done.wait (!%p5760_p2), %s4488_s15, 4096  }
 0x4cd   : > { %6212 = vsyncadd (!%p5760_p2), %s4488_s15, 4294963200  ;;  %p22_p4 = scmp.ge.s32.totalorder %s6419_s22, 4   ;;  %s7653_s24 = smov %s6219_s25 }
 0x4ce   : > { %s7654_s25 = smov %s6223_s26  ;;  %s7655_s26 = smov %s6429_s18 }
 0x4cf   : > { %s7656_s27 = smov %s6419_s22  ;;  %24 = sbr.rel (!%p22_p4) target bundleno = 7 (0x7), region = 111 }
 0x4d6   :  { %4493 = vsyncpa [#allocation5], 1 }
 0x4d7   :  { %4495 = vsyncpa [#allocation5 + $0x1], 1 }
 0x4d8   :  { %4496 = vsyncpa [#allocation8], 1 }
 0x4d9   :  { %4497 = vsyncpa [#allocation11], 1 }
 0x4da   :  { %4498 = vsyncpa [#allocation6], 1 }
 0x4db   :  { %4500 = vsyncpa [#allocation6 + $0x1], 1 }

</bundles_post_ra>
